<compile_context>
chip_gen: v5e
topology: v5e:2x2
jax: 0.10.0
libtpu: 0.0.40
codegen_flags: <defaults>
</compile_context>

<pallas_src>
import functools

import jax
import jax.numpy as jnp
from jax import lax
from jax.experimental import pallas as pl
from jax.experimental.pallas import tpu as pltpu

EPS = 1e-6  # matches partial(nn.BatchNorm2d, eps=1e-06)


def _vmem_limit_bytes():
    """Generation-aware scoped-VMEM budget.  None -> compiler default."""
    try:
        kind = jax.devices()[0].device_kind.lower()
    except Exception:
        return None
    if "v5" in kind or "v6" in kind:
        return 96 * 1024 * 1024      # 128 MiB physical on v5e/v6e
    if "v7" in kind or "7x" in kind:
        return 48 * 1024 * 1024      # 64 MiB physical per TC on v7x
    return None


# -----------------------------------------------------------------------------
# Fused kernel (one grid step = one image)
# -----------------------------------------------------------------------------
def _convblock_kernel(res_conv, H, W,
                      xp_ref, mask_ref, w1_ref, b1_ref, w2_ref, b2_ref,
                      w3_ref, *rest):
    if res_conv:
        wr_ref, shf_ref, x2_ref, out_ref, h1p = rest
    else:
        wr_ref = None
        shf_ref, x2_ref, out_ref, h1p = rest

    Wp = W + 2
    HWp = H * Wp                    # rows of the padded-row output layout
    n_pad = (H + 2) * Wp            # rows of the zero-padded conv1 plane
    med = w1_ref.shape[1]

    # ---- conv1 (1x1) + bn1 + relu on the zero-padded plane.  The mask
    #      restores exact zeros in the halo ring (relu(b1) != 0 there).
    xp = xp_ref[0]                                                  # (n_pad, Cin) bf16
    h1 = jnp.dot(xp, w1_ref[...], preferred_element_type=jnp.float32)
    h1 = jnp.maximum(h1 + b1_ref[...], 0.0) * mask_ref[...]
    h1p[0:n_pad, :] = h1.astype(jnp.bfloat16)
    # Tail rows back the junk columns of the last image row; zero them so no
    # uninitialized VMEM is ever read.
    h1p[n_pad:, :] = jnp.zeros((h1p.shape[0] - n_pad, med), jnp.bfloat16)

    # ---- conv2 (3x3) + bn2 + relu: nine CONTIGUOUS-tap dots, f32 accumulation.
    acc = jnp.dot(h1p[0:HWp, :], w2_ref[0], preferred_element_type=jnp.float32)
    for k in range(1, 9):
        d = (k // 3) * Wp + (k % 3)
        acc = acc + jnp.dot(h1p[d:d + HWp, :], w2_ref[k],
                            preferred_element_type=jnp.float32)
    x2p = jnp.maximum(acc + b2_ref[...], 0.0)                       # (HWp, med) f32

    # ---- conv3 (1x1) + bn3 (+ residual) + relu, still in padded-row layout.
    y3 = jnp.dot(x2p.astype(jnp.bfloat16), w3_ref[...],
                 preferred_element_type=jnp.float32)
    xres = xp[W + 3:W + 3 + HWp, :]      # residual: contiguous slice of padded x
    if res_conv:
        y3 = y3 + jnp.dot(xres, wr_ref[...], preferred_element_type=jnp.float32)
    else:
        y3 = y3 + xres.astype(jnp.float32)          # identity residual: plain add
    outp = jnp.maximum(y3 + shf_ref[...], 0.0)                      # (HWp, cout) f32

    # ---- discard the two pad columns per row, store bf16 outputs.
    cout = outp.shape[-1]
    x2_ref[0] = x2p.reshape(H, Wp, med)[:, :W, :].astype(jnp.bfloat16)
    out_ref[0] = outp.reshape(H, Wp, cout)[:, :W, :].astype(jnp.bfloat16)


def _fused_convblock(xp, mask, w1s, b1, w2s, b2, w3s, wrs, shf, *, H, W, res_conv):
    N, n_pad, cin = xp.shape
    med = w1s.shape[1]
    cout = w3s.shape[1]

    kernel = functools.partial(_convblock_kernel, res_conv, H, W)

    in_specs = [
        pl.BlockSpec((1, n_pad, cin), lambda n: (n, 0, 0)),
        pl.BlockSpec((n_pad, 1), lambda n: (0, 0)),
        pl.BlockSpec((cin, med), lambda n: (0, 0)),
        pl.BlockSpec((1, med), lambda n: (0, 0)),
        pl.BlockSpec((9, med, med), lambda n: (0, 0, 0)),
        pl.BlockSpec((1, med), lambda n: (0, 0)),
        pl.BlockSpec((med, cout), lambda n: (0, 0)),
    ]
    args = [xp, mask, w1s, b1, w2s, b2, w3s]
    if res_conv:
        in_specs.append(pl.BlockSpec((cin, cout), lambda n: (0, 0)))
        args.append(wrs)
    in_specs.append(pl.BlockSpec((1, cout), lambda n: (0, 0)))
    args.append(shf)

    return pl.pallas_call(
        kernel,
        out_shape=(jax.ShapeDtypeStruct((N, H, W, med), jnp.bfloat16),
                   jax.ShapeDtypeStruct((N, H, W, cout), jnp.bfloat16)),
        grid_spec=pltpu.PrefetchScalarGridSpec(
            num_scalar_prefetch=0,
            grid=(N,),
            in_specs=in_specs,
            out_specs=(pl.BlockSpec((1, H, W, med), lambda n: (n, 0, 0, 0)),
                       pl.BlockSpec((1, H, W, cout), lambda n: (n, 0, 0, 0))),
            scratch_shapes=[pltpu.VMEM(((H + 3) * (W + 2), med), jnp.bfloat16)]),
        compiler_params=pltpu.CompilerParams(
            dimension_semantics=("parallel",),
            vmem_limit_bytes=_vmem_limit_bytes()),
    )(*args)


# -----------------------------------------------------------------------------
# Parameter setup + forward (glue in plain JAX)
# -----------------------------------------------------------------------------
def fold_bn(gamma, beta, mean, var):
    scale = gamma / jnp.sqrt(var + EPS)
    shift = beta - mean * scale
    return scale.reshape(1, -1), shift.reshape(1, -1)


def make_bn_params(c, seed_off):
    gamma = 1.0 + 0.01 * jnp.arange(c, dtype=jnp.float32) + 0.001 * seed_off
    beta = 0.02 * jnp.arange(c, dtype=jnp.float32) - 0.01 * seed_off
    mean = 0.03 * jnp.arange(c, dtype=jnp.float32)
    var = 1.0 + 0.05 * jnp.arange(c, dtype=jnp.float32)
    return gamma, beta, mean, var


def make_params(key, inplanes, outplanes):
    med = outplanes // 4
    k1, k2, k3, k4 = jax.random.split(key, 4)
    return dict(
        w1=0.2 * jax.random.normal(k1, (inplanes, med), jnp.float32),
        w2_hwio=0.2 * jax.random.normal(k2, (3, 3, med, med), jnp.float32),
        w3=0.2 * jax.random.normal(k3, (med, outplanes), jnp.float32),
        wr=0.2 * jax.random.normal(k4, (inplanes, outplanes), jnp.float32),
        bn1=make_bn_params(med, 1),
        bn2=make_bn_params(med, 2),
        bn3=make_bn_params(outplanes, 3),
        bnr=make_bn_params(outplanes, 4),
    )


def _fold_weights(params, res_conv):
    """BN-scale folding on the host in f32, then cast to bf16 for the MXU."""
    s1, b1 = fold_bn(*params["bn1"])
    s2, b2 = fold_bn(*params["bn2"])
    s3, b3 = fold_bn(*params["bn3"])
    med = params["w1"].shape[1]
    w1s = (params["w1"] * s1).astype(jnp.bfloat16)                       # (Cin, med)
    w2s = (params["w2_hwio"] * s2).reshape(9, med, med).astype(jnp.bfloat16)
    w3s = (params["w3"] * s3).astype(jnp.bfloat16)                       # (med, cout)
    if res_conv:
        sr, br = fold_bn(*params["bnr"])
        wrs = (params["wr"] * sr).astype(jnp.bfloat16)                   # (Cin, cout)
        shf = b3 + br
    else:
        wrs = None
        shf = b3
    return w1s, b1, w2s, b2, w3s, wrs, shf


def conv_block_forward(x_nchw, params, res_conv=True):
    """Pallas ConvBlock forward (eval-mode BN, stride=1, groups=1, x_t=None,
    return_x_2=True).  Returns (x, x2) in NCHW, f32 (values at bf16 precision)."""
    N, Cin, H, W = x_nchw.shape
    cout = params["w3"].shape[1]
    if not res_conv:
        assert Cin == cout, "identity residual requires inplanes == outplanes"

    # NCHW -> NHWC once; pad only the *input* so every 3x3 tap inside the
    # kernel is a contiguous slice (the conv1 activation never leaves VMEM).
    x_nhwc = jnp.transpose(x_nchw, (0, 2, 3, 1)).astype(jnp.bfloat16)
    xp = jnp.pad(x_nhwc, ((0, 0), (1, 1), (1, 1), (0, 0)))
    xp = xp.reshape(N, (H + 2) * (W + 2), Cin)

    # Interior mask of the padded plane (kills relu(b1) in the halo ring).
    mask = jnp.pad(jnp.ones((H, W), jnp.float32), ((1, 1), (1, 1)))
    mask = mask.reshape((H + 2) * (W + 2), 1)

    w1s, b1, w2s, b2, w3s, wrs, shf = _fold_weights(params, res_conv)

    x2_nhwc, out_nhwc = _fused_convblock(xp, mask, w1s, b1, w2s, b2, w3s, wrs,
                                         shf, H=H, W=W, res_conv=res_conv)

    out = jnp.transpose(out_nhwc, (0, 3, 1, 2)).astype(jnp.float32)
    x2 = jnp.transpose(x2_nhwc, (0, 3, 1, 2)).astype(jnp.float32)
    return out, x2


# -----------------------------------------------------------------------------
# Reference: same module math via XLA ops (same bf16/f32 mixed precision) —
# validates padding/tap-indexing/fusion logic of the Pallas kernel.
# -----------------------------------------------------------------------------
def conv_block_ref(x_nchw, params, res_conv=True):
    s1, b1 = fold_bn(*params["bn1"])
    s2, b2 = fold_bn(*params["bn2"])
    s3, b3 = fold_bn(*params["bn3"])

    x = jnp.transpose(x_nchw, (0, 2, 3, 1)).astype(jnp.bfloat16)

    w1s = (params["w1"] * s1).astype(jnp.bfloat16)
    h1 = jnp.einsum("nhwc,cd->nhwd", x, w1s,
                    preferred_element_type=jnp.float32) + b1
    h1 = jnp.maximum(h1, 0.0).astype(jnp.bfloat16)

    w2s = (params["w2_hwio"] * s2).astype(jnp.bfloat16)
    y2 = lax.conv_general_dilated(
        h1, w2s, window_strides=(1, 1), padding="SAME",
        dimension_numbers=("NHWC", "HWIO", "NHWC"),
        preferred_element_type=jnp.float32)
    x2 = jnp.maximum(y2 + b2, 0.0)

    w3s = (params["w3"] * s3).astype(jnp.bfloat16)
    y3 = jnp.einsum("nhwc,cd->nhwd", x2.astype(jnp.bfloat16), w3s,
                    preferred_element_type=jnp.float32) + b3
    if res_conv:
        sr, br = fold_bn(*params["bnr"])
        wrs = (params["wr"] * sr).astype(jnp.bfloat16)
        resid = jnp.einsum("nhwc,cd->nhwd", x, wrs,
                           preferred_element_type=jnp.float32) + br
    else:
        resid = x.astype(jnp.float32)
    out = jnp.maximum(y3 + resid, 0.0)
    return jnp.transpose(out, (0, 3, 1, 2)), jnp.transpose(x2, (0, 3, 1, 2))


# -----------------------------------------------------------------------------
if __name__ == "__main__":
    key = jax.random.PRNGKey(0)
    k1, k2, k3, k4 = jax.random.split(key, 4)

    # Case 1: projection residual (res_conv=True), inplanes != outplanes.
    N, inplanes, H, W = 2, 4, 16, 16
    outplanes = 16                       # med_planes = outplanes // 4 = 4
    x = jax.random.normal(k1, (N, inplanes, H, W), jnp.float32)
    params = make_params(k2, inplanes, outplanes)
    fwd = jax.jit(functools.partial(conv_block_forward, res_conv=True))
    out, x2 = fwd(x, params)
    out = jax.block_until_ready(out)
    x2 = jax.block_until_ready(x2)
    ref_out, ref_x2 = conv_block_ref(x, params, res_conv=True)
    assert out.shape == (N, outplanes, H, W)
    assert x2.shape == (N, outplanes // 4, H, W)
    assert jnp.allclose(out, ref_out, atol=3e-2, rtol=3e-2)
    assert jnp.allclose(x2, ref_x2, atol=3e-2, rtol=3e-2)

    # Case 2: identity residual (res_conv=False), inplanes == outplanes.
    N2, planes, H2, W2 = 2, 16, 8, 8
    x_b = jax.random.normal(k3, (N2, planes, H2, W2), jnp.float32)
    params_b = make_params(k4, planes, planes)
    fwd_b = jax.jit(functools.partial(conv_block_forward, res_conv=False))
    out_b, x2_b = fwd_b(x_b, params_b)
    out_b = jax.block_until_ready(out_b)
    x2_b = jax.block_until_ready(x2_b)
    ref_out_b, ref_x2_b = conv_block_ref(x_b, params_b, res_conv=False)
    assert out_b.shape == (N2, planes, H2, W2)
    assert x2_b.shape == (N2, planes // 4, H2, W2)
    assert jnp.allclose(out_b, ref_out_b, atol=3e-2, rtol=3e-2)
    assert jnp.allclose(x2_b, ref_x2_b, atol=3e-2, rtol=3e-2)

    print("KERNEL_OK")
</pallas_src>

<mosaic_0001>
module attributes {stable_mosaic.version = 11 : i64} {
  func.func @_convblock_kernel(%arg0: i32, %arg1: memref<1x324x4xbf16, #tpu.memory_space<vmem>>, %arg2: memref<324x1xf32, #tpu.memory_space<vmem>>, %arg3: memref<4x4xbf16, #tpu.memory_space<vmem>>, %arg4: memref<1x4xf32, #tpu.memory_space<vmem>>, %arg5: memref<9x4x4xbf16, #tpu.memory_space<vmem>>, %arg6: memref<1x4xf32, #tpu.memory_space<vmem>>, %arg7: memref<4x16xbf16, #tpu.memory_space<vmem>>, %arg8: memref<4x16xbf16, #tpu.memory_space<vmem>>, %arg9: memref<1x16xf32, #tpu.memory_space<vmem>>, %arg10: memref<1x16x16x4xbf16, #tpu.memory_space<vmem>>, %arg11: memref<1x16x16x16xbf16, #tpu.memory_space<vmem>>, %arg12: memref<342x4xbf16, #tpu.memory_space<vmem>>) attributes {dimension_semantics = [#tpu.dimension_semantics<parallel>], iteration_bounds = array<i64: 2>, scalar_prefetch = 0 : i64, scratch_operands = 1 : i64, tpu.core_type = #tpu.core_type<tc>, window_params = [{transform_indices = @transform_0, window_bounds = array<i64: 1, 324, 4>}, {pipeline_mode = #tpu.pipeline_mode<synchronous>, transform_indices = @transform_1, window_bounds = array<i64: 324, 1>}, {pipeline_mode = #tpu.pipeline_mode<synchronous>, transform_indices = @transform_2, window_bounds = array<i64: 4, 4>}, {pipeline_mode = #tpu.pipeline_mode<synchronous>, transform_indices = @transform_3, window_bounds = array<i64: 1, 4>}, {pipeline_mode = #tpu.pipeline_mode<synchronous>, transform_indices = @transform_4, window_bounds = array<i64: 9, 4, 4>}, {pipeline_mode = #tpu.pipeline_mode<synchronous>, transform_indices = @transform_5, window_bounds = array<i64: 1, 4>}, {pipeline_mode = #tpu.pipeline_mode<synchronous>, transform_indices = @transform_6, window_bounds = array<i64: 4, 16>}, {pipeline_mode = #tpu.pipeline_mode<synchronous>, transform_indices = @transform_7, window_bounds = array<i64: 4, 16>}, {pipeline_mode = #tpu.pipeline_mode<synchronous>, transform_indices = @transform_8, window_bounds = array<i64: 1, 16>}, {transform_indices = @transform_9, window_bounds = array<i64: 1, 16, 16, 4>}, {transform_indices = @transform_10, window_bounds = array<i64: 1, 16, 16, 16>}]} {
    %c0 = arith.constant 0 : index
    %c0_0 = arith.constant 0 : index
    %c0_1 = arith.constant 0 : index
    %0 = vector.load %arg1[%c0, %c0_0, %c0_1] : memref<1x324x4xbf16, #tpu.memory_space<vmem>>, vector<1x324x4xbf16>
    %1 = vector.shape_cast %0 : vector<1x324x4xbf16> to vector<324x4xbf16>
    %c0_2 = arith.constant 0 : index
    %c0_3 = arith.constant 0 : index
    %2 = vector.load %arg3[%c0_2, %c0_3] : memref<4x4xbf16, #tpu.memory_space<vmem>>, vector<4x4xbf16>
    %cst = arith.constant dense<0.000000e+00> : vector<324x4xf32>
    %3 = tpu.matmul %1, %2, %cst {dimension_numbers = #tpu.dot_dimension_numbers<[1], [0], [0], [1], [0, 0, 1, 1], [], []>} : vector<324x4xbf16>, vector<4x4xbf16>, vector<324x4xf32> -> vector<324x4xf32>
    %c0_4 = arith.constant 0 : index
    %c0_5 = arith.constant 0 : index
    %4 = vector.load %arg4[%c0_4, %c0_5] : memref<1x4xf32, #tpu.memory_space<vmem>>, vector<1x4xf32>
    %5 = vector.broadcast %4 : vector<1x4xf32> to vector<324x4xf32>
    %6 = arith.addf %3, %5 : vector<324x4xf32>
    %cst_6 = arith.constant 0.000000e+00 : f32
    %7 = vector.broadcast %cst_6 : f32 to vector<324x4xf32>
    %8 = arith.maximumf %6, %7 : vector<324x4xf32>
    %c0_7 = arith.constant 0 : index
    %c0_8 = arith.constant 0 : index
    %9 = vector.load %arg2[%c0_7, %c0_8] : memref<324x1xf32, #tpu.memory_space<vmem>>, vector<324x1xf32>
    %10 = vector.broadcast %9 : vector<324x1xf32> to vector<324x4xf32>
    %11 = arith.mulf %8, %10 : vector<324x4xf32>
    %12 = arith.truncf %11 : vector<324x4xf32> to vector<324x4xbf16>
    %c0_9 = arith.constant 0 : index
    %c0_10 = arith.constant 0 : index
    %13 = vector.load %arg12[%c0_9, %c0_10] : memref<342x4xbf16, #tpu.memory_space<vmem>>, vector<324x4xbf16>
    tpu.vector_store %arg12[%c0_9, %c0_10], %12 {strides = array<i32>} : memref<342x4xbf16, #tpu.memory_space<vmem>>, vector<324x4xbf16>,
    %cst_11 = arith.constant 0.000000e+00 : bf16
    %14 = vector.broadcast %cst_11 : bf16 to vector<18x4xbf16>
    %c324 = arith.constant 324 : index
    %c0_12 = arith.constant 0 : index
    %15 = vector.load %arg12[%c324, %c0_12] : memref<342x4xbf16, #tpu.memory_space<vmem>>, vector<18x4xbf16>
    tpu.vector_store %arg12[%c324, %c0_12], %14 {strides = array<i32>} : memref<342x4xbf16, #tpu.memory_space<vmem>>, vector<18x4xbf16>,
    %c0_13 = arith.constant 0 : index
    %c0_14 = arith.constant 0 : index
    %16 = vector.load %arg12[%c0_13, %c0_14] : memref<342x4xbf16, #tpu.memory_space<vmem>>, vector<288x4xbf16>
    %c0_15 = arith.constant 0 : index
    %c0_16 = arith.constant 0 : index
    %c0_17 = arith.constant 0 : index
    %17 = vector.load %arg5[%c0_15, %c0_16, %c0_17] : memref<9x4x4xbf16, #tpu.memory_space<vmem>>, vector<1x4x4xbf16>
    %18 = vector.shape_cast %17 : vector<1x4x4xbf16> to vector<4x4xbf16>
    %cst_18 = arith.constant dense<0.000000e+00> : vector<288x4xf32>
    %19 = tpu.matmul %16, %18, %cst_18 {dimension_numbers = #tpu.dot_dimension_numbers<[1], [0], [0], [1], [0, 0, 1, 1], [], []>} : vector<288x4xbf16>, vector<4x4xbf16>, vector<288x4xf32> -> vector<288x4xf32>
    %c1 = arith.constant 1 : index
    %c0_19 = arith.constant 0 : index
    %20 = vector.load %arg12[%c1, %c0_19] : memref<342x4xbf16, #tpu.memory_space<vmem>>, vector<288x4xbf16>
    %c1_20 = arith.constant 1 : index
    %c0_21 = arith.constant 0 : index
    %c0_22 = arith.constant 0 : index
    %21 = vector.load %arg5[%c1_20, %c0_21, %c0_22] : memref<9x4x4xbf16, #tpu.memory_space<vmem>>, vector<1x4x4xbf16>
    %22 = vector.shape_cast %21 : vector<1x4x4xbf16> to vector<4x4xbf16>
    %cst_23 = arith.constant dense<0.000000e+00> : vector<288x4xf32>
    %23 = tpu.matmul %20, %22, %cst_23 {dimension_numbers = #tpu.dot_dimension_numbers<[1], [0], [0], [1], [0, 0, 1, 1], [], []>} : vector<288x4xbf16>, vector<4x4xbf16>, vector<288x4xf32> -> vector<288x4xf32>
    %24 = arith.addf %19, %23 : vector<288x4xf32>
    %c2 = arith.constant 2 : index
    %c0_24 = arith.constant 0 : index
    %25 = vector.load %arg12[%c2, %c0_24] : memref<342x4xbf16, #tpu.memory_space<vmem>>, vector<288x4xbf16>
    %c2_25 = arith.constant 2 : index
    %c0_26 = arith.constant 0 : index
    %c0_27 = arith.constant 0 : index
    %26 = vector.load %arg5[%c2_25, %c0_26, %c0_27] : memref<9x4x4xbf16, #tpu.memory_space<vmem>>, vector<1x4x4xbf16>
    %27 = vector.shape_cast %26 : vector<1x4x4xbf16> to vector<4x4xbf16>
    %cst_28 = arith.constant dense<0.000000e+00> : vector<288x4xf32>
    %28 = tpu.matmul %25, %27, %cst_28 {dimension_numbers = #tpu.dot_dimension_numbers<[1], [0], [0], [1], [0, 0, 1, 1], [], []>} : vector<288x4xbf16>, vector<4x4xbf16>, vector<288x4xf32> -> vector<288x4xf32>
    %29 = arith.addf %24, %28 : vector<288x4xf32>
    %c18 = arith.constant 18 : index
    %c0_29 = arith.constant 0 : index
    %30 = vector.load %arg12[%c18, %c0_29] : memref<342x4xbf16, #tpu.memory_space<vmem>>, vector<288x4xbf16>
    %c3 = arith.constant 3 : index
    %c0_30 = arith.constant 0 : index
    %c0_31 = arith.constant 0 : index
    %31 = vector.load %arg5[%c3, %c0_30, %c0_31] : memref<9x4x4xbf16, #tpu.memory_space<vmem>>, vector<1x4x4xbf16>
    %32 = vector.shape_cast %31 : vector<1x4x4xbf16> to vector<4x4xbf16>
    %cst_32 = arith.constant dense<0.000000e+00> : vector<288x4xf32>
    %33 = tpu.matmul %30, %32, %cst_32 {dimension_numbers = #tpu.dot_dimension_numbers<[1], [0], [0], [1], [0, 0, 1, 1], [], []>} : vector<288x4xbf16>, vector<4x4xbf16>, vector<288x4xf32> -> vector<288x4xf32>
    %34 = arith.addf %29, %33 : vector<288x4xf32>
    %c19 = arith.constant 19 : index
    %c0_33 = arith.constant 0 : index
    %35 = vector.load %arg12[%c19, %c0_33] : memref<342x4xbf16, #tpu.memory_space<vmem>>, vector<288x4xbf16>
    %c4 = arith.constant 4 : index
    %c0_34 = arith.constant 0 : index
    %c0_35 = arith.constant 0 : index
    %36 = vector.load %arg5[%c4, %c0_34, %c0_35] : memref<9x4x4xbf16, #tpu.memory_space<vmem>>, vector<1x4x4xbf16>
    %37 = vector.shape_cast %36 : vector<1x4x4xbf16> to vector<4x4xbf16>
    %cst_36 = arith.constant dense<0.000000e+00> : vector<288x4xf32>
    %38 = tpu.matmul %35, %37, %cst_36 {dimension_numbers = #tpu.dot_dimension_numbers<[1], [0], [0], [1], [0, 0, 1, 1], [], []>} : vector<288x4xbf16>, vector<4x4xbf16>, vector<288x4xf32> -> vector<288x4xf32>
    %39 = arith.addf %34, %38 : vector<288x4xf32>
    %c20 = arith.constant 20 : index
    %c0_37 = arith.constant 0 : index
    %40 = vector.load %arg12[%c20, %c0_37] : memref<342x4xbf16, #tpu.memory_space<vmem>>, vector<288x4xbf16>
    %c5 = arith.constant 5 : index
    %c0_38 = arith.constant 0 : index
    %c0_39 = arith.constant 0 : index
    %41 = vector.load %arg5[%c5, %c0_38, %c0_39] : memref<9x4x4xbf16, #tpu.memory_space<vmem>>, vector<1x4x4xbf16>
    %42 = vector.shape_cast %41 : vector<1x4x4xbf16> to vector<4x4xbf16>
    %cst_40 = arith.constant dense<0.000000e+00> : vector<288x4xf32>
    %43 = tpu.matmul %40, %42, %cst_40 {dimension_numbers = #tpu.dot_dimension_numbers<[1], [0], [0], [1], [0, 0, 1, 1], [], []>} : vector<288x4xbf16>, vector<4x4xbf16>, vector<288x4xf32> -> vector<288x4xf32>
    %44 = arith.addf %39, %43 : vector<288x4xf32>
    %c36 = arith.constant 36 : index
    %c0_41 = arith.constant 0 : index
    %45 = vector.load %arg12[%c36, %c0_41] : memref<342x4xbf16, #tpu.memory_space<vmem>>, vector<288x4xbf16>
    %c6 = arith.constant 6 : index
    %c0_42 = arith.constant 0 : index
    %c0_43 = arith.constant 0 : index
    %46 = vector.load %arg5[%c6, %c0_42, %c0_43] : memref<9x4x4xbf16, #tpu.memory_space<vmem>>, vector<1x4x4xbf16>
    %47 = vector.shape_cast %46 : vector<1x4x4xbf16> to vector<4x4xbf16>
    %cst_44 = arith.constant dense<0.000000e+00> : vector<288x4xf32>
    %48 = tpu.matmul %45, %47, %cst_44 {dimension_numbers = #tpu.dot_dimension_numbers<[1], [0], [0], [1], [0, 0, 1, 1], [], []>} : vector<288x4xbf16>, vector<4x4xbf16>, vector<288x4xf32> -> vector<288x4xf32>
    %49 = arith.addf %44, %48 : vector<288x4xf32>
    %c37 = arith.constant 37 : index
    %c0_45 = arith.constant 0 : index
    %50 = vector.load %arg12[%c37, %c0_45] : memref<342x4xbf16, #tpu.memory_space<vmem>>, vector<288x4xbf16>
    %c7 = arith.constant 7 : index
    %c0_46 = arith.constant 0 : index
    %c0_47 = arith.constant 0 : index
    %51 = vector.load %arg5[%c7, %c0_46, %c0_47] : memref<9x4x4xbf16, #tpu.memory_space<vmem>>, vector<1x4x4xbf16>
    %52 = vector.shape_cast %51 : vector<1x4x4xbf16> to vector<4x4xbf16>
    %cst_48 = arith.constant dense<0.000000e+00> : vector<288x4xf32>
    %53 = tpu.matmul %50, %52, %cst_48 {dimension_numbers = #tpu.dot_dimension_numbers<[1], [0], [0], [1], [0, 0, 1, 1], [], []>} : vector<288x4xbf16>, vector<4x4xbf16>, vector<288x4xf32> -> vector<288x4xf32>
    %54 = arith.addf %49, %53 : vector<288x4xf32>
    %c38 = arith.constant 38 : index
    %c0_49 = arith.constant 0 : index
    %55 = vector.load %arg12[%c38, %c0_49] : memref<342x4xbf16, #tpu.memory_space<vmem>>, vector<288x4xbf16>
    %c8 = arith.constant 8 : index
    %c0_50 = arith.constant 0 : index
    %c0_51 = arith.constant 0 : index
    %56 = vector.load %arg5[%c8, %c0_50, %c0_51] : memref<9x4x4xbf16, #tpu.memory_space<vmem>>, vector<1x4x4xbf16>
    %57 = vector.shape_cast %56 : vector<1x4x4xbf16> to vector<4x4xbf16>
    %cst_52 = arith.constant dense<0.000000e+00> : vector<288x4xf32>
    %58 = tpu.matmul %55, %57, %cst_52 {dimension_numbers = #tpu.dot_dimension_numbers<[1], [0], [0], [1], [0, 0, 1, 1], [], []>} : vector<288x4xbf16>, vector<4x4xbf16>, vector<288x4xf32> -> vector<288x4xf32>
    %59 = arith.addf %54, %58 : vector<288x4xf32>
    %c0_53 = arith.constant 0 : index
    %c0_54 = arith.constant 0 : index
    %60 = vector.load %arg6[%c0_53, %c0_54] : memref<1x4xf32, #tpu.memory_space<vmem>>, vector<1x4xf32>
    %61 = vector.broadcast %60 : vector<1x4xf32> to vector<288x4xf32>
    %62 = arith.addf %59, %61 : vector<288x4xf32>
    %cst_55 = arith.constant 0.000000e+00 : f32
    %63 = vector.broadcast %cst_55 : f32 to vector<288x4xf32>
    %64 = arith.maximumf %62, %63 : vector<288x4xf32>
    %65 = arith.truncf %64 : vector<288x4xf32> to vector<288x4xbf16>
    %c0_56 = arith.constant 0 : index
    %c0_57 = arith.constant 0 : index
    %66 = vector.load %arg7[%c0_56, %c0_57] : memref<4x16xbf16, #tpu.memory_space<vmem>>, vector<4x16xbf16>
    %cst_58 = arith.constant dense<0.000000e+00> : vector<288x16xf32>
    %67 = tpu.matmul %65, %66, %cst_58 {dimension_numbers = #tpu.dot_dimension_numbers<[1], [0], [0], [1], [0, 0, 1, 1], [], []>} : vector<288x4xbf16>, vector<4x16xbf16>, vector<288x16xf32> -> vector<288x16xf32>
    %68 = vector.extract_strided_slice %1 {offsets = [19, 0], sizes = [288, 4], strides = [1, 1]} : vector<324x4xbf16> to vector<288x4xbf16>
    %c0_59 = arith.constant 0 : index
    %c0_60 = arith.constant 0 : index
    %69 = vector.load %arg8[%c0_59, %c0_60] : memref<4x16xbf16, #tpu.memory_space<vmem>>, vector<4x16xbf16>
    %cst_61 = arith.constant dense<0.000000e+00> : vector<288x16xf32>
    %70 = tpu.matmul %68, %69, %cst_61 {dimension_numbers = #tpu.dot_dimension_numbers<[1], [0], [0], [1], [0, 0, 1, 1], [], []>} : vector<288x4xbf16>, vector<4x16xbf16>, vector<288x16xf32> -> vector<288x16xf32>
    %71 = arith.addf %67, %70 : vector<288x16xf32>
    %c0_62 = arith.constant 0 : index
    %c0_63 = arith.constant 0 : index
    %72 = vector.load %arg9[%c0_62, %c0_63] : memref<1x16xf32, #tpu.memory_space<vmem>>, vector<1x16xf32>
    %73 = vector.broadcast %72 : vector<1x16xf32> to vector<288x16xf32>
    %74 = arith.addf %71, %73 : vector<288x16xf32>
    %cst_64 = arith.constant 0.000000e+00 : f32
    %75 = vector.broadcast %cst_64 : f32 to vector<288x16xf32>
    %76 = arith.maximumf %74, %75 : vector<288x16xf32>
    %77 = vector.shape_cast %64 : vector<288x4xf32> to vector<16x18x4xf32>
    %78 = vector.extract_strided_slice %77 {offsets = [0, 0, 0], sizes = [16, 16, 4], strides = [1, 1, 1]} : vector<16x18x4xf32> to vector<16x16x4xf32>
    %79 = arith.truncf %78 : vector<16x16x4xf32> to vector<16x16x4xbf16>
    %c0_65 = arith.constant 0 : index
    %c0_66 = arith.constant 0 : index
    %c0_67 = arith.constant 0 : index
    %c0_68 = arith.constant 0 : index
    %80 = vector.load %arg10[%c0_65, %c0_66, %c0_67, %c0_68] : memref<1x16x16x4xbf16, #tpu.memory_space<vmem>>, vector<1x16x16x4xbf16>
    %81 = vector.shape_cast %80 : vector<1x16x16x4xbf16> to vector<16x16x4xbf16>
    %82 = vector.shape_cast %79 : vector<16x16x4xbf16> to vector<1x16x16x4xbf16>
    tpu.vector_store %arg10[%c0_65, %c0_66, %c0_67, %c0_68], %82 {strides = array<i32>} : memref<1x16x16x4xbf16, #tpu.memory_space<vmem>>, vector<1x16x16x4xbf16>,
    %83 = vector.shape_cast %76 : vector<288x16xf32> to vector<16x18x16xf32>
    %84 = vector.extract_strided_slice %83 {offsets = [0, 0, 0], sizes = [16, 16, 16], strides = [1, 1, 1]} : vector<16x18x16xf32> to vector<16x16x16xf32>
    %85 = arith.truncf %84 : vector<16x16x16xf32> to vector<16x16x16xbf16>
    %c0_69 = arith.constant 0 : index
    %c0_70 = arith.constant 0 : index
    %c0_71 = arith.constant 0 : index
    %c0_72 = arith.constant 0 : index
    %86 = vector.load %arg11[%c0_69, %c0_70, %c0_71, %c0_72] : memref<1x16x16x16xbf16, #tpu.memory_space<vmem>>, vector<1x16x16x16xbf16>
    %87 = vector.shape_cast %86 : vector<1x16x16x16xbf16> to vector<16x16x16xbf16>
    %88 = vector.shape_cast %85 : vector<16x16x16xbf16> to vector<1x16x16x16xbf16>
    tpu.vector_store %arg11[%c0_69, %c0_70, %c0_71, %c0_72], %88 {strides = array<i32>} : memref<1x16x16x16xbf16, #tpu.memory_space<vmem>>, vector<1x16x16x16xbf16>,
    return
  }
  func.func @transform_0(%arg0: i32) -> (i32, i32, i32) {
    %c0_i32 = arith.constant 0 : i32
    %c0_i32_0 = arith.constant 0 : i32
    %c0_i32_1 = arith.constant 0 : i32
    return %arg0, %c0_i32, %c0_i32_0 : i32, i32, i32
  }
  func.func @transform_1(%arg0: i32) -> (i32, i32) {
    %c0_i32 = arith.constant 0 : i32
    %c0_i32_0 = arith.constant 0 : i32
    %c0_i32_1 = arith.constant 0 : i32
    return %c0_i32, %c0_i32_0 : i32, i32
  }
  func.func @transform_2(%arg0: i32) -> (i32, i32) {
    %c0_i32 = arith.constant 0 : i32
    %c0_i32_0 = arith.constant 0 : i32
    %c0_i32_1 = arith.constant 0 : i32
    return %c0_i32, %c0_i32_0 : i32, i32
  }
  func.func @transform_3(%arg0: i32) -> (i32, i32) {
    %c0_i32 = arith.constant 0 : i32
    %c0_i32_0 = arith.constant 0 : i32
    %c0_i32_1 = arith.constant 0 : i32
    return %c0_i32, %c0_i32_0 : i32, i32
  }
  func.func @transform_4(%arg0: i32) -> (i32, i32, i32) {
    %c0_i32 = arith.constant 0 : i32
    %c0_i32_0 = arith.constant 0 : i32
    %c0_i32_1 = arith.constant 0 : i32
    %c0_i32_2 = arith.constant 0 : i32
    return %c0_i32, %c0_i32_0, %c0_i32_1 : i32, i32, i32
  }
  func.func @transform_5(%arg0: i32) -> (i32, i32) {
    %c0_i32 = arith.constant 0 : i32
    %c0_i32_0 = arith.constant 0 : i32
    %c0_i32_1 = arith.constant 0 : i32
    return %c0_i32, %c0_i32_0 : i32, i32
  }
  func.func @transform_6(%arg0: i32) -> (i32, i32) {
    %c0_i32 = arith.constant 0 : i32
    %c0_i32_0 = arith.constant 0 : i32
    %c0_i32_1 = arith.constant 0 : i32
    return %c0_i32, %c0_i32_0 : i32, i32
  }
  func.func @transform_7(%arg0: i32) -> (i32, i32) {
    %c0_i32 = arith.constant 0 : i32
    %c0_i32_0 = arith.constant 0 : i32
    %c0_i32_1 = arith.constant 0 : i32
    return %c0_i32, %c0_i32_0 : i32, i32
  }
  func.func @transform_8(%arg0: i32) -> (i32, i32) {
    %c0_i32 = arith.constant 0 : i32
    %c0_i32_0 = arith.constant 0 : i32
    %c0_i32_1 = arith.constant 0 : i32
    return %c0_i32, %c0_i32_0 : i32, i32
  }
  func.func @transform_9(%arg0: i32) -> (i32, i32, i32, i32) {
    %c0_i32 = arith.constant 0 : i32
    %c0_i32_0 = arith.constant 0 : i32
    %c0_i32_1 = arith.constant 0 : i32
    %c0_i32_2 = arith.constant 0 : i32
    return %arg0, %c0_i32, %c0_i32_0, %c0_i32_1 : i32, i32, i32, i32
  }
  func.func @transform_10(%arg0: i32) -> (i32, i32, i32, i32) {
    %c0_i32 = arith.constant 0 : i32
    %c0_i32_0 = arith.constant 0 : i32
    %c0_i32_1 = arith.constant 0 : i32
    %c0_i32_2 = arith.constant 0 : i32
    return %arg0, %c0_i32, %c0_i32_0, %c0_i32_1 : i32, i32, i32, i32
  }
}

</mosaic_0001>

<bundles_post_ra>
// kernel: conv_block_forward.1
= control target key start
LH: loop header
LB: loop body
LE: loop exit
PB: predicated region body
PF: predicated region fallthrough
CT: control target
= control target key end

     0   :  { %s6087_s13 = smov 0   ;;  %s8038_s0 = inlined_call_operand.vmem [shape: bf16[2,324,4], index: 0, kind: input, shape index: {}]   ;;  %s8039_s1 = inlined_call_operand.vmem [shape: f32[324,1], index: 1, kind: input, shape index: {}]   ;;  %s8040_s2 = inlined_call_operand.vmem [shape: bf16[4,4], index: 2, kind: input, shape index: {}]   ;;  %s8041_s3 = inlined_call_operand.vmem [shape: f32[1,4], index: 3, kind: input, shape index: {}]   ;;  %s8042_s4 = inlined_call_operand.vmem [shape: bf16[9,4,4], index: 4, kind: input, shape index: {}]   ;;  %s8043_s5 = inlined_call_operand.vmem [shape: f32[1,4], index: 5, kind: input, shape index: {}]   ;;  %s8044_s6 = inlined_call_operand.vmem [shape: bf16[4,16], index: 6, kind: input, shape index: {}]   ;;  %s8045_s7 = inlined_call_operand.vmem [shape: bf16[4,16], index: 7, kind: input, shape index: {}]   ;;  %s8046_s8 = inlined_call_operand.vmem [shape: f32[1,16], index: 8, kind: input, shape index: {}]   ;;  %s8047_s9 = inlined_call_operand.vmem [shape: bf16[2,16,16,4], index: 9, kind: output, shape index: {0}]   ;;  %s8048_s10 = inlined_call_operand.vmem [shape: bf16[2,16,16,16], index: 10, kind: output, shape index: {1}]  }
   0x1 LB: > { %s5381_s14 = sadd.s32 4294967295, %s6029_s13   ;;  %p5385_p0 = scmp.ge.s32.totalorder %s6029_s13, 1  ;;  %s6029_s13 = sphi %s6087_s13, %s21_s13  }
   0x2   : > { %p315_p1 = scmp.lt.s32.totalorder %s6029_s13, 3 }
   0x4   : > { %p316_p2 = pnand %p5385_p0, %p315_p1 }
   0x6   : > { %319 = sbr.rel (%p316_p2) target bundleno = 1390 (0x56e), region = 56 }
   0xb   : > { %vm1073_vm0 = vcmask 27648   ;;  %vm1116_vm1 = vcmask 27650   ;;  %v749_v0 = vld [vmem:[%s8039_s1 + $0x20] sm:$0xff]  ;;  %v747_v1 = vld [vmem:[%s8039_s1 + $0x10] sm:$0xff]  ;;  %v6031_v2 = vmov 0   ;;  %vm587_vm2 = vcmask 1041408  }
   0xc   : > { %5998 = vset.pattern.permute.xlu2 %v6031_v2  ;;  %1117 = vst.msk [vmem:[#allocation2 + $0xa0] sm:$0xc] %vm1116_vm1, %v6031_v2  ;;  %5997 = vset.pattern.permute.xlu1 %v6031_v2  ;;  %v745_v3 = vld [vmem:[%s8039_s1] sm:$0xff]  ;;  %p358_p3 = scmp.lt.s32.totalorder %s5381_s14, 1  ;;  %v750_v6 = vld [vmem:[%s8039_s1 + $0x28] sm:$0xff]  ;;  %v748_v7 = vld [vmem:[%s8039_s1 + $0x18] sm:$0xff] }
   0xd   : > { %v415_v4 = vld [vmem:[%s8040_s2] sm:$0x3]  ;;  %5996 = vset.pattern.permute.xlu0 %v6031_v2  ;;  %808 = vperm.xlu2 %5998, %v749_v0   ;;  %v746_v8 = vld [vmem:[%s8039_s1 + $0x8] sm:$0xff]  ;;  %vm523_vm3 = vcmask 31744   ;;  %v752_v11 = vld [vmem:[%s8039_s1 + $0x38] sm:$0xff]  ;;  %vm1703_vm4 = vcmask 1046528  }
   0xe   : > { %v589_v5 = vsel %vm587_vm2, %v415_v4, 0  ;;  %798 = vperm.xlu1 %5997, %v747_v1   ;;  %788 = vperm.xlu0 %5996, %v745_v3   ;;  %s8182_s14 = smov (!%p358_p3, %s5381_s14), 1  ;;  %v753_v10 = vld [vmem:[%s8039_s1 + $0x40] sm:$0xff]  ;;  %v751_v12 = vld [vmem:[%s8039_s1 + $0x30] sm:$0xff]  ;;  %v756_v13 = vld [vmem:[%s8039_s1 + $0x58] sm:$0xff]  ;;  %vm3635_vm6 = vcmask 1044480  }
   0xf   : > { %598 = vmatpush.bf16.msra.mxu0 %v589_v5  ;;  %5984 = vmatpush.bf16.msra.mxu1 %v589_v5  ;;  %s5986_s25 = smul.u32 164, %s8182_s14  ;;  %v755_v14 = vld [vmem:[%s8039_s1 + $0x50] sm:$0xff]  ;;  %v754_v15 = vld [vmem:[%s8039_s1 + $0x48] sm:$0xff]  ;;  %v757_v20 = vld [vmem:[%s8039_s1 + $0x60] sm:$0xff]  ;;  %vm1254_vm5 = vsmask.f32 7424 }
  0x10   : > { %5985 = vmatpush.bf16.msra.mxu2 %v589_v5  ;;  %v759_v18 = vld [vmem:[%s8039_s1 + $0x70] sm:$0xff]  ;;  %v758_v19 = vld [vmem:[%s8039_s1 + $0x68] sm:$0xff]  ;;  %v761_v22 = vld [vmem:[%s8039_s1 + $0x80] sm:$0xff]  ;;  %vm3266_vm7 = vsmask.f32 5376  ;;  %vm1114_vm8 = vcmask 25600  }
  0x11   : > { %s6123_s12 = scalar_lea.vmem %s8038_s0, %s5986_s25  ;;  %v762_v21 = vld [vmem:[%s8039_s1 + $0x88] sm:$0xff]  ;;  %v760_v23 = vld [vmem:[%s8039_s1 + $0x78] sm:$0xff]  ;;  %v765_v25 = vld [vmem:[%s8039_s1 + $0xa0] sm:$0xff]  ;;  %vm2669_vm9 = vcmask 1045504   ;;  %vm2300_vm10 = vsmask.f32 6400 }
  0x12   : > { %v5902_v9 = vld [vmem:[%s6123_s12] sm:$0xff]  ;;  %v5903_v16 = vld [vmem:[%s6123_s12 + $0x8] sm:$0xff]  ;;  %v5980_v17 = vld [vmem:[%s6123_s12 + $0x98] sm:$0xff]   ;;  %s5900_s28 = sshll.u32 %s8182_s14, 7  ;;  %vm5260_vm11 = vcmask 125952  }
  0x13   : > { %5467 = vmatmul.msk.bf16.vlgmr.msra.gmra.mxu0 %vm523_vm3, %v5902_v9  ;;  %5486 = vmatmul.msk.bf16.vlgmr.msra.gmra.mxu1 %vm523_vm3, %v5980_v17  ;;  %v5904_v24 = vld [vmem:[%s6123_s12 + $0x10] sm:$0xff]  ;;  %v764_v26 = vld [vmem:[%s8039_s1 + $0x98] sm:$0xff]  ;;  %v414_v28 = vld [vmem:[%s6123_s12 + $0xa0] sm:$0x3]  ;;  %s7439_s11 = scalar_lea.vmem %s8047_s9, %s5900_s28  ;;  %s7856_s20 = scalar_lea.vmem %s8048_s10, %s5900_s28 }
  0x14   : > { %v763_v27 = vld [vmem:[%s8039_s1 + $0x90] sm:$0xff]  ;;  %v501_v29 = vunpack.c.l.b16 %v414_v28  ;;  %v768_v31 = vld [vmem:[%s8039_s1 + $0xb8] sm:$0xff]  ;;  %v766_v33 = vld [vmem:[%s8039_s1 + $0xa8] sm:$0xff] }
  0x15   : > { %813 = vperm.xlu2 %5998, %v750_v6   ;;  %v767_v32 = vld [vmem:[%s8039_s1 + $0xb0] sm:$0xff]  ;;  %v5905_v34 = vld [vmem:[%s6123_s12 + $0x18] sm:$0xff]  ;;  %v770_v36 = vld [vmem:[%s8039_s1 + $0xc8] sm:$0xff] }
  0x16   : > { %803 = vperm.xlu1 %5997, %v748_v7   ;;  %793 = vperm.xlu0 %5996, %v746_v8   ;;  %v522_v30 = vpack.c.b16 %v501_v29, %v501_v29  ;;  %v771_v35 = vld [vmem:[%s8039_s1 + $0xd0] sm:$0xff]  ;;  %v769_v37 = vld [vmem:[%s8039_s1 + $0xc0] sm:$0xff]  ;;  %v774_v38 = vld [vmem:[%s8039_s1 + $0xe8] sm:$0xff] }
  0x17   : > { %v773_v39 = vld [vmem:[%s8039_s1 + $0xe0] sm:$0xff]  ;;  %v772_v40 = vld [vmem:[%s8039_s1 + $0xd8] sm:$0xff]  ;;  %v775_v44 = vld [vmem:[%s8039_s1 + $0xf0] sm:$0xff] }
  0x18   : > { %5487 = vmatmul.msk.bf16.vlgmr.msra.gmra.mxu2 %vm523_vm3, %v522_v30  ;;  %v5906_v41 = vld [vmem:[%s6123_s12 + $0x20] sm:$0xff]  ;;  %v776_v43 = vld [vmem:[%s8039_s1 + $0xf8] sm:$0xff]  ;;  %v779_v46 = vld [vmem:[%s8039_s1 + $0x110] sm:$0xff] }
  0x19   : > { %v777_v42 = vld [vmem:[%s8039_s1 + $0x100] sm:$0xff]  ;;  %v780_v45 = vld [vmem:[%s8039_s1 + $0x118] sm:$0xff]  ;;  %v778_v47 = vld [vmem:[%s8039_s1 + $0x108] sm:$0xff] }
  0x1a   : > { %v5907_v48 = vld [vmem:[%s6123_s12 + $0x28] sm:$0xff]  ;;  %v783_v50 = vld [vmem:[%s8039_s1 + $0x130] sm:$0xff]  ;;  %v781_v52 = vld [vmem:[%s8039_s1 + $0x120] sm:$0xff] }
  0x1b   : > { %v782_v51 = vld [vmem:[%s8039_s1 + $0x128] sm:$0xff]  ;;  %v785_v54 = vld [vmem:[%s8039_s1 + $0x140] sm:$0xf]  ;;  %v784_v55 = vld [vmem:[%s8039_s1 + $0x138] sm:$0xff] }
  0x1c   : > { %v5908_v56 = vld [vmem:[%s6123_s12 + $0x30] sm:$0xff]  ;;  %v5909_v61 = vld [vmem:[%s6123_s12 + $0x38] sm:$0xff]  ;;  %v1157_v1 = vld [vmem:[%s8042_s4] sm:$0x3] }
  0x1d   : > { %828 = vperm.xlu2 %5998, %v753_v10   ;;  %v1596_v2 = vsel %vm587_vm2, %v1157_v1, 0  ;;  %v6273_v6 = vld [vmem:[%s8041_s3] ss:$0 sm:$0xff]  ;;  %v5593_v17 = vld [vmem:[%s8042_s4 + $0x4] sm:$0x3]  ;;  %v5911_v28 = vld [vmem:[%s6123_s12 + $0x48] sm:$0xff] }
  0x1e   : > { %823 = vperm.xlu1 %5997, %v752_v11   ;;  %818 = vperm.xlu0 %5996, %v751_v12   ;;  %v5910_v7 = vld [vmem:[%s6123_s12 + $0x40] sm:$0xff] }
  0x1f   : > { %1605 = vmatpush.bf16.msrb.mxu2 %v1596_v2 }
  0x23   : > { %5468 = vmatmul.msk.bf16.gmra.mxu0 %vm523_vm3, %v5903_v16 }
  0x25   : > { %843 = vperm.xlu2 %5998, %v756_v13  }
  0x26   : > { %838 = vperm.xlu1 %5997, %v755_v14   ;;  %833 = vperm.xlu0 %5996, %v754_v15  }
  0x2d   : > { %858 = vperm.xlu2 %5998, %v759_v18  }
  0x2e   : > { %853 = vperm.xlu1 %5997, %v758_v19   ;;  %848 = vperm.xlu0 %5996, %v757_v20   ;;  %v5488_v19 = vld [vmem:[%s8042_s4 + $0x2] sm:$0x3] }
  0x2f   : > { %v1458_v20 = vsel %vm587_vm2, %v5488_v19, 0 }
  0x30   : > { %1467 = vmatpush.bf16.msrb.mxu1 %v1458_v20 }
  0x33   : > { %5469 = vmatmul.msk.bf16.gmra.mxu0 %vm523_vm3, %v5904_v24 }
  0x35   : > { %873 = vperm.xlu2 %5998, %v762_v21   ;;  %v1796_v21 = vsel %vm587_vm2, %v5593_v17, 0 }
  0x36   : > { %868 = vperm.xlu1 %5997, %v761_v22   ;;  %863 = vperm.xlu0 %5996, %v760_v23  }
  0x37   : > { %1805 = vmatpush.bf16.msra.mxu3 %v1796_v21 }
  0x3d   : > { %888 = vperm.xlu2 %5998, %v765_v25  }
  0x3e   : > { %883 = vperm.xlu1 %5997, %v764_v26   ;;  %878 = vperm.xlu0 %5996, %v763_v27  }
  0x43   : > { %5470 = vmatmul.msk.bf16.gmra.mxu0 %vm523_vm3, %v5905_v34 }
  0x45   : > { %903 = vperm.xlu2 %5998, %v768_v31   ;;  %v5699_v31 = vld [vmem:[%s8042_s4 + $0x8] sm:$0x3] }
  0x46   : > { %898 = vperm.xlu1 %5997, %v767_v32   ;;  %893 = vperm.xlu0 %5996, %v766_v33   ;;  %v2526_v32 = vsel %vm587_vm2, %v5699_v31, 0 }
  0x47   : > { %2535 = vmatpush.bf16.msra.mxu2 %v2526_v32 }
  0x4d   : > { %918 = vperm.xlu2 %5998, %v771_v35  }
  0x4e   : > { %913 = vperm.xlu1 %5997, %v770_v36   ;;  %908 = vperm.xlu0 %5996, %v769_v37  }
  0x53   : > { %5471 = vmatmul.msk.bf16.gmra.mxu0 %vm523_vm3, %v5906_v41 }
  0x55   : > { %933 = vperm.xlu2 %5998, %v774_v38  }
  0x56   : > { %928 = vperm.xlu1 %5997, %v773_v39   ;;  %923 = vperm.xlu0 %5996, %v772_v40  }
  0x5d   : > { %948 = vperm.xlu2 %5998, %v777_v42   ;;  %v5612_v42 = vld [vmem:[%s8042_s4 + $0x6] sm:$0x3] }
  0x5e   : > { %943 = vperm.xlu1 %5997, %v776_v43   ;;  %938 = vperm.xlu0 %5996, %v775_v44   ;;  %v2157_v43 = vsel %vm587_vm2, %v5612_v42, 0 }
  0x5f   : > { %2166 = vmatpush.bf16.msra.mxu1 %v2157_v43 }
  0x63   : > { %5472 = vmatmul.msk.bf16.gmra.mxu0 %vm523_vm3, %v5907_v48 }
  0x65   : > { %963 = vperm.xlu2 %5998, %v780_v45  }
  0x66   : > { %958 = vperm.xlu1 %5997, %v779_v46   ;;  %953 = vperm.xlu0 %5996, %v778_v47  }
  0x67   : > { %v6231_v49 = vpop.permute.xlu2 %808 }
  0x6d   : > { %978 = vperm.xlu2 %5998, %v783_v50  }
  0x6e   : > { %973 = vperm.xlu1 %5997, %v782_v51   ;;  %968 = vperm.xlu0 %5996, %v781_v52   ;;  %v5912_v51 = vld [vmem:[%s6123_s12 + $0x50] sm:$0xff] }
  0x6f   : > { %v6242_v53 = vpop.permute.xlu2 %813 }
  0x73   : > { %5473 = vmatmul.msk.bf16.gmra.mxu0 %vm523_vm3, %v5908_v56 }
  0x76   : > { %988 = vperm.xlu1 %5997, %v785_v54   ;;  %983 = vperm.xlu0 %5996, %v784_v55  }
  0x77   : > { %v6252_v57 = vpop.permute.xlu2 %828 }
  0x7f   : > { %v6254_v58 = vpop.permute.xlu2 %843 }
  0x80   : > { %v799_v59 = vpop.permute.xlu1 %798  ;;  %v789_v60 = vpop.permute.xlu0 %788 }
  0x83   : > { %5474 = vmatmul.msk.bf16.gmra.mxu0 %vm523_vm3, %v5909_v61 }
  0x87   : > { %v6258_v62 = vpop.permute.xlu2 %858 }
  0x88   : > { %v804_v63 = vpop.permute.xlu1 %803  ;;  %v794_v0 = vpop.permute.xlu0 %793 }
  0x8f   : > { %v6264_v3 = vpop.permute.xlu2 %873 }
  0x90   : > { %v6266_v4 = vpop.permute.xlu1 %823  ;;  %v6268_v5 = vpop.permute.xlu0 %818 }
  0x91   : > { %v600_v8 = vpop.f32.mrf.mxu0 }
  0x92   : > { %v601_v9 = vadd.f32 %v6273_v6, %v600_v8 }
  0x93   : > { %5475 = vmatmul.msk.bf16.gmra.mxu0 %vm523_vm3, %v5910_v7 }
  0x94   : > { %v704_v10 = vmax.f32 %v601_v9, 0.0 }
  0x96   : > { %v991_v14 = vmul.f32 %v789_v60, %v704_v10 }
  0x97   : > { %v6278_v11 = vpop.permute.xlu2 %888 }
  0x98   : > { %v6280_v12 = vpop.permute.xlu1 %838  ;;  %v6282_v13 = vpop.permute.xlu0 %833  ;;  %v1032_v15 = vpack.c.bf16 %v991_v14, %v991_v14 }
  0x99   : > { %v602_v16 = vpop.f32.mrf.mxu0 }
  0x9a   : > { %1074 = vst.msk [vmem:[#allocation2] sm:$0xf] %vm1073_vm0, %v1032_v15  ;;  %v603_v18 = vadd.f32 %v6273_v6, %v602_v16  ;;  %v695_v15 = vpop.f32.mrf.mxu1 }
  0x9c   : > { %v705_v22 = vmax.f32 %v603_v18, 0.0 }
  0x9e   : > { %v992_v26 = vmul.f32 %v794_v0, %v705_v22 }
  0x9f   : > { %v6294_v23 = vpop.permute.xlu2 %903 }
  0xa0   : > { %v6296_v24 = vpop.permute.xlu1 %853  ;;  %v6298_v25 = vpop.permute.xlu0 %848  ;;  %v1033_v27 = vpack.c.bf16 %v992_v26, %v992_v26 }
  0xa1   : > { %v605_v29 = vpop.f32.mrf.mxu0  ;;  %v5982_v1 = vld [vmem:[#allocation2] sm:$0xe] }
  0xa2   : > { %1075 = vst.msk [vmem:[#allocation2 + $0x4] sm:$0xf] %vm1073_vm0, %v1033_v27  ;;  %v606_v30 = vadd.f32 %v6273_v6, %v605_v29  ;;  %v696_v29 = vadd.f32 %v6273_v6, %v695_v15 }
  0xa3   : > { %5476 = vmatmul.msk.bf16.gmra.mxu0 %vm523_vm3, %v5911_v28 }
  0xa4   : > { %v706_v33 = vmax.f32 %v606_v30, 0.0 }
  0xa6   : > { %v993_v37 = vmul.f32 %v799_v59, %v706_v33  ;;  %v5913_v33 = vld [vmem:[%s6123_s12 + $0x58] sm:$0xff] }
  0xa7   : > { %v6308_v34 = vpop.permute.xlu2 %918 }
  0xa8   : > { %v6310_v35 = vpop.permute.xlu1 %868  ;;  %v6312_v36 = vpop.permute.xlu0 %863  ;;  %v1034_v38 = vpack.c.bf16 %v993_v37, %v993_v37 }
  0xa9   : > { %v607_v39 = vpop.f32.mrf.mxu0  ;;  %v5977_v40 = vld [vmem:[#allocation2] sm:$0xff]  }
  0xaa   : > { %1076 = vst.msk [vmem:[#allocation2 + $0x8] sm:$0xf] %vm1073_vm0, %v1034_v38  ;;  %v608_v41 = vadd.f32 %v6273_v6, %v607_v39  ;;  %5575 = vmatmul.msk.bf16.vlgmr.msrb.gmra.mxu2 %vm523_vm3, %v5977_v40  ;;  %v5981_v59 = vld [vmem:[#allocation2] sm:$0xf0]  ;;  %v1258_v60 = vshll.u32 %v5977_v40, 16  ;;  %v1256_v16 = vshrl.u32 %v5977_v40, 16  ;;  %v6356_v40 = vpop.f32.mrf.mxu2 }
  0xab   : > { %v5983_v2 = vor.u32 %v5982_v1, %v5981_v59  ;;  %v742_v38 = vmax.f32 %v696_v29, 0.0 }
  0xac   : > { %v707_v44 = vmax.f32 %v608_v41, 0.0  ;;  %v1260_v8 = vrot.slane %v1258_v60, 1 }
  0xad   : > { %v1704_v17 = vrot.slane %v5983_v2, 1 }
  0xae   : > { %v994_v48 = vmul.f32 %v804_v63, %v707_v44  ;;  %v1261_v21 = vor.u32 %v1260_v8, %v1256_v16 }
  0xaf   : > { %v6321_v45 = vpop.permute.xlu2 %933 }
  0xb0   : > { %v6323_v46 = vpop.permute.xlu1 %883  ;;  %v6325_v47 = vpop.permute.xlu0 %878  ;;  %v1035_v50 = vpack.c.bf16 %v994_v48, %v994_v48 }
  0xb1   : > { %v610_v52 = vpop.f32.mrf.mxu0 }
  0xb2   : > { %1077 = vst.msk [vmem:[#allocation2 + $0xc] sm:$0xf] %vm1073_vm0, %v1035_v50  ;;  %v611_v54 = vadd.f32 %v6273_v6, %v610_v52  ;;  %v702_v1 = vpop.f32.mrf.mxu2 }
  0xb3   : > { %5477 = vmatmul.msk.bf16.gmra.mxu0 %vm523_vm3, %v5912_v51 }
  0xb4   : > { %v708_v55 = vmax.f32 %v611_v54, 0.0 }
  0xb6   : > { %v995_v63 = vmul.f32 %v6231_v49, %v708_v55 }
  0xb7   : > { %v6331_v56 = vpop.permute.xlu2 %948 }
  0xb8   : > { %v6333_v61 = vpop.permute.xlu1 %898  ;;  %v6335_v0 = vpop.permute.xlu0 %893  ;;  %v1036_v7 = vpack.c.bf16 %v995_v63, %v995_v63 }
  0xb9   : > { %v612_v9 = vpop.f32.mrf.mxu0  ;;  %v5921_v10 = vld [vmem:[#allocation2 + $0x8] sm:$0xff] }
  0xba   : > { %1078 = vst.msk [vmem:[#allocation2 + $0x10] sm:$0xf] %vm1073_vm0, %v1036_v7  ;;  %v613_v14 = vadd.f32 %v6273_v6, %v612_v9  ;;  %5576 = vmatmul.msk.bf16.gmra.mxu2 %vm523_vm3, %v5921_v10  ;;  %v1705_v18 = vrot.slane %v5921_v10, 1  ;;  %v1263_v19 = vshll.u32 %v5921_v10, 16  ;;  %v1267_v60 = vshrl.u32 %v5921_v10, 16  ;;  %v5914_v10 = vld [vmem:[%s6123_s12 + $0x60] sm:$0xff] }
  0xbc   : > { %v709_v49 = vmax.f32 %v613_v14, 0.0  ;;  %v1706_v27 = vsel %vm1703_vm4, %v1704_v17, %v1705_v18  ;;  %v1265_v28 = vrot.slane %v1263_v19, 1 }
  0xbd   : > { %5594 = vmatmul.msk.bf16.vlgmr.msra.gmra.mxu3 %vm523_vm3, %v1706_v27 }
  0xbe   : > { %v996_v30 = vmul.f32 %v6242_v53, %v709_v49  ;;  %v1266_v31 = vsel %vm1254_vm5, %v1261_v21, %v1265_v28  ;;  %v1269_v9 = vor.u32 %v1267_v60, %v1265_v28 }
  0xbf   : > { %v6341_v20 = vpop.permute.xlu2 %963  ;;  %5557 = vmatmul.msk.bf16.vlgmr.msrb.gmra.mxu1 %vm523_vm3, %v1266_v31 }
  0xc0   : > { %v6343_v22 = vpop.permute.xlu1 %913  ;;  %v6345_v26 = vpop.permute.xlu0 %908  ;;  %v1037_v32 = vpack.c.bf16 %v996_v30, %v996_v30 }
  0xc1   : > { %v615_v37 = vpop.f32.mrf.mxu0  ;;  %v2899_v27 = vld [vmem:[#allocation2 + $0x10] sm:$0xc] }
  0xc2   : > { %1079 = vst.msk [vmem:[#allocation2 + $0x14] sm:$0xf] %vm1073_vm0, %v1037_v32  ;;  %v616_v39 = vadd.f32 %v6273_v6, %v615_v37  ;;  %v2975_v30 = vunpack.c.l.b16 %v2899_v27  ;;  %v3629_v32 = vld [vmem:[#allocation2 + $0x10] sm:$0x8] }
  0xc3   : > { %5478 = vmatmul.msk.bf16.gmra.mxu0 %vm523_vm3, %v5913_v33 }
  0xc4   : > { %v710_v41 = vmax.f32 %v616_v39, 0.0 }
  0xc6   : > { %v997_v48 = vmul.f32 %v6268_v5, %v710_v41  ;;  %v3633_v41 = vunpack.c.l.b16 %v3629_v32 }
  0xc7   : > { %v979_v53 = vpop.permute.xlu2 %978 }
  0xc8   : > { %v1029_v42 = vmul.f32 %v979_v53, %v742_v38  ;;  %v6359_v43 = vpop.permute.xlu1 %928  ;;  %v6361_v44 = vpop.permute.xlu0 %923  ;;  %v1038_v51 = vpack.c.bf16 %v997_v48, %v997_v48 }
  0xc9   : > { %v617_v52 = vpop.f32.mrf.mxu0  ;;  %v5922_v54 = vld [vmem:[#allocation2 + $0x10] sm:$0xff]  ;;  %v697_v48 = vpop.f32.mrf.mxu1 }
  0xca   : > { %v1070_v50 = vpack.c.bf16 %v1029_v42, %v1029_v42  ;;  %1080 = vst.msk [vmem:[#allocation2 + $0x18] sm:$0xf] %vm1073_vm0, %v1038_v51  ;;  %v618_v55 = vadd.f32 %v6273_v6, %v617_v52  ;;  %5577 = vmatmul.msk.bf16.gmra.mxu2 %vm523_vm3, %v5922_v54  ;;  %v1707_v59 = vrot.slane %v5922_v54, 1  ;;  %v1271_v63 = vshll.u32 %v5922_v54, 16  ;;  %v2900_v19 = vld [vmem:[#allocation2 + $0x14] sm:$0xf] }
  0xcb   : > { %v1275_v42 = vshrl.u32 %v5922_v54, 16 }
  0xcc   : > { %1112 = vst.msk [vmem:[#allocation2 + $0x98] sm:$0xf] %vm1073_vm0, %v1070_v50  ;;  %v711_v2 = vmax.f32 %v618_v55, 0.0  ;;  %v1708_v8 = vsel %vm1703_vm4, %v1705_v18, %v1707_v59  ;;  %v1273_v14 = vrot.slane %v1271_v63, 1  ;;  %v2976_v18 = vunpack.c.l.b16 %v2900_v19 }
  0xcd   : > { %5595 = vmatmul.msk.bf16.gmra.mxu3 %vm523_vm3, %v1708_v8 }
  0xce   : > { %v998_v15 = vmul.f32 %v6266_v4, %v711_v2  ;;  %v1274_v16 = vsel %vm1254_vm5, %v1269_v9, %v1273_v14  ;;  %v6386_v33 = vpack.c.b16 %v2976_v18, %v2975_v30  ;;  %v3634_v52 = vpack.c.b16 %v2976_v18, %v3633_v41 }
  0xcf   : > { %5558 = vmatmul.msk.bf16.gmra.mxu1 %vm523_vm3, %v1274_v16  ;;  %v1277_v8 = vor.u32 %v1275_v42, %v1273_v14 }
  0xd0   : > { %v6368_v7 = vpop.permute.xlu1 %943  ;;  %v6370_v5 = vpop.permute.xlu0 %938  ;;  %v1039_v17 = vpack.c.bf16 %v998_v15, %v998_v15  ;;  %v3268_v55 = vshrl.u32 %v6386_v33, 16  ;;  %v3271_v63 = vshll.u32 %v6386_v33, 16  ;;  %v698_v15 = vadd.f32 %v6273_v6, %v697_v48 }
  0xd1   : > { %v620_v49 = vpop.f32.mrf.mxu0  ;;  %v3636_v19 = vrot.slane %v3634_v52, 3 }
  0xd2   : > { %1081 = vst.msk [vmem:[#allocation2 + $0x1c] sm:$0xf] %vm1073_vm0, %v1039_v17  ;;  %v621_v21 = vadd.f32 %v6273_v6, %v620_v49  ;;  %v701_v17 = vadd.f32 %v6273_v6, %v6356_v40  ;;  %v3273_v14 = vrot.slane %v3271_v63, 3  ;;  %v743_v30 = vmax.f32 %v698_v15, 0.0 }
  0xd3   : > { %5479 = vmatmul.msk.bf16.gmra.mxu0 %vm523_vm3, %v5914_v10 }
  0xd4   : > { %v712_v28 = vmax.f32 %v621_v21, 0.0  ;;  %v3270_v21 = vrot.slane %v3268_v55, 2  ;;  %v744_v32 = vmax.f32 %v701_v17, 0.0 }
  0xd6   : > { %v999_v31 = vmul.f32 %v6252_v57, %v712_v28 }
  0xd8   : > { %v6381_v4 = vpop.permute.xlu1 %958  ;;  %v6383_v29 = vpop.permute.xlu0 %953  ;;  %v1040_v37 = vpack.c.bf16 %v999_v31, %v999_v31 }
  0xd9   : > { %v622_v38 = vpop.f32.mrf.mxu0  ;;  %v6388_v39 = vld [vmem:[#allocation2 + $0x18] sm:$0xff] }
  0xda   : > { %1082 = vst.msk [vmem:[#allocation2 + $0x20] sm:$0xf] %vm1073_vm0, %v1040_v37  ;;  %v623_v53 = vadd.f32 %v6273_v6, %v622_v38  ;;  %5578 = vmatmul.msk.bf16.gmra.mxu2 %vm523_vm3, %v6388_v39  ;;  %v1709_v50 = vrot.slane %v6388_v39, 1  ;;  %v1279_v57 = vshll.u32 %v6388_v39, 16  ;;  %v6396_v51 = vld [vmem:[#allocation2 + $0x18] sm:$0xff] }
  0xdb   : > { %v3637_v49 = vrot.slane %v6396_v51, 3  ;;  %v3276_v18 = vshrl.u32 %v6396_v51, 16 }
  0xdc   : > { %v713_v60 = vmax.f32 %v623_v53, 0.0  ;;  %v1710_v2 = vsel %vm1703_vm4, %v1707_v59, %v1709_v50  ;;  %v1281_v9 = vrot.slane %v1279_v57, 1  ;;  %v5915_v59 = vld [vmem:[%s6123_s12 + $0x68] sm:$0xff]  ;;  %v3274_v53 = vor.u32 %v3273_v14, %v3270_v21 }
  0xdd   : > { %5596 = vmatmul.msk.bf16.gmra.mxu3 %vm523_vm3, %v1710_v2  ;;  %v6419_v40 = vsel %vm3635_vm6, %v3636_v19, %v3637_v49  ;;  %v3278_v37 = vrot.slane %v3276_v18, 2  ;;  %v1283_v19 = vshrl.u32 %v6388_v39, 16 }
  0xde   : > { %v1000_v16 = vmul.f32 %v6282_v13, %v713_v60  ;;  %v1282_v10 = vsel %vm1254_vm5, %v1277_v8, %v1281_v9  ;;  %v3279_v13 = vshll.u32 %v6396_v51, 16 }
  0xdf   : > { %5559 = vmatmul.msk.bf16.gmra.mxu1 %vm523_vm3, %v1282_v10  ;;  %v1285_v18 = vor.u32 %v1283_v19, %v1281_v9 }
  0xe0   : > { %v6400_v1 = vpop.permute.xlu1 %973  ;;  %v6402_v54 = vpop.permute.xlu0 %968  ;;  %v1041_v27 = vpack.c.bf16 %v1000_v16, %v1000_v16  ;;  %v3281_v38 = vrot.slane %v3279_v13, 3 }
  0xe1   : > { %v625_v28 = vpop.f32.mrf.mxu0 }
  0xe2   : > { %1083 = vst.msk [vmem:[#allocation2 + $0x24] sm:$0xf] %vm1073_vm0, %v1041_v27  ;;  %v626_v31 = vadd.f32 %v6273_v6, %v625_v28  ;;  %v3282_v42 = vor.u32 %v3281_v38, %v3278_v37  ;;  %v5916_v37 = vld [vmem:[%s6123_s12 + $0x70] sm:$0xff] }
  0xe3   : > { %5480 = vmatmul.msk.bf16.gmra.mxu0 %vm523_vm3, %v5915_v59 }
  0xe4   : > { %v714_v41 = vmax.f32 %v626_v31, 0.0  ;;  %v6426_v63 = vsel %vm3266_vm7, %v3274_v53, %v3282_v42 }
  0xe6   : > { %v1001_v52 = vmul.f32 %v6280_v12, %v714_v41 }
  0xe8   : > { %v989_v48 = vpop.permute.xlu1 %988  ;;  %v984_v57 = vpop.permute.xlu0 %983  ;;  %v1042_v2 = vpack.c.bf16 %v1001_v52, %v1001_v52 }
  0xe9   : > { %v1031_v55 = vmul.f32 %v989_v48, %v744_v32  ;;  %v1030_v60 = vmul.f32 %v984_v57, %v743_v30  ;;  %v627_v16 = vpop.f32.mrf.mxu0  ;;  %v5924_v17 = vld [vmem:[#allocation2 + $0x20] sm:$0xff] }
  0xea   : > { %1084 = vst.msk [vmem:[#allocation2 + $0x28] sm:$0xf] %vm1073_vm0, %v1042_v2  ;;  %v628_v10 = vadd.f32 %v6273_v6, %v627_v16  ;;  %5579 = vmatmul.msk.bf16.gmra.mxu2 %vm523_vm3, %v5924_v17  ;;  %v1711_v12 = vrot.slane %v5924_v17, 1  ;;  %v1287_v21 = vshll.u32 %v5924_v17, 16  ;;  %v6432_v27 = vld [vmem:[#allocation2 + $0x20] sm:$0xff]  ;;  %v1291_v16 = vshrl.u32 %v5924_v17, 16 }
  0xeb   : > { %v1072_v8 = vpack.c.bf16 %v1031_v55, %v1031_v55  ;;  %v1071_v15 = vpack.c.bf16 %v1030_v60, %v1030_v60  ;;  %v3639_v31 = vrot.slane %v6432_v27, 3  ;;  %v3285_v38 = vshrl.u32 %v6432_v27, 16  ;;  %v5917_v17 = vld [vmem:[%s6123_s12 + $0x78] sm:$0xff] }
  0xec   : > { %v715_v59 = vmax.f32 %v628_v10, 0.0  ;;  %v1712_v14 = vsel %vm1703_vm4, %v1709_v50, %v1711_v12  ;;  %v1289_v13 = vrot.slane %v1287_v21, 1  ;;  %v3288_v39 = vshll.u32 %v6432_v27, 16 }
  0xed   : > { %1115 = vst.msk [vmem:[#allocation2 + $0xa0] sm:$0x3] %vm1114_vm8, %v1072_v8  ;;  %5597 = vmatmul.msk.bf16.gmra.mxu3 %vm523_vm3, %v1712_v14  ;;  %v6447_v50 = vsel %vm3635_vm6, %v3637_v49, %v3639_v31  ;;  %v3287_v9 = vrot.slane %v3285_v38, 2 }
  0xee   : > { %1113 = vst.msk [vmem:[#allocation2 + $0x9c] sm:$0xf] %vm1073_vm0, %v1071_v15  ;;  %v1002_v28 = vmul.f32 %v6254_v58, %v715_v59  ;;  %v1290_v30 = vsel %vm1254_vm5, %v1285_v18, %v1289_v13  ;;  %v3290_v53 = vrot.slane %v3288_v39, 3 }
  0xef   : > { %5560 = vmatmul.msk.bf16.gmra.mxu1 %vm523_vm3, %v1290_v30 }
  0xf0   : > { %v1043_v32 = vpack.c.bf16 %v1002_v28, %v1002_v28  ;;  %v3291_v57 = vor.u32 %v3290_v53, %v3287_v9 }
  0xf1   : > { %v630_v41 = vpop.f32.mrf.mxu0 }
  0xf2   : > { %1085 = vst.msk [vmem:[#allocation2 + $0x2c] sm:$0xf] %vm1073_vm0, %v1043_v32  ;;  %v631_v58 = vadd.f32 %v6273_v6, %v630_v41  ;;  %v6454_v55 = vsel %vm3266_vm7, %v3282_v42, %v3291_v57  ;;  %v1293_v42 = vor.u32 %v1291_v16, %v1289_v13 }
  0xf3   : > { %5481 = vmatmul.msk.bf16.gmra.mxu0 %vm523_vm3, %v5916_v37 }
  0xf4   : > { %v716_v48 = vmax.f32 %v631_v58, 0.0 }
  0xf6   : > { %v1003_v52 = vmul.f32 %v6298_v25, %v716_v48 }
  0xf8   : > { %v1044_v60 = vpack.c.bf16 %v1003_v52, %v1003_v52 }
  0xf9   : > { %v632_v2 = vpop.f32.mrf.mxu0  ;;  %v5925_v8 = vld [vmem:[#allocation2 + $0x28] sm:$0xff] }
  0xfa   : > { %1086 = vst.msk [vmem:[#allocation2 + $0x30] sm:$0xf] %vm1073_vm0, %v1044_v60  ;;  %v633_v49 = vadd.f32 %v6273_v6, %v632_v2  ;;  %5580 = vmatmul.msk.bf16.gmra.mxu2 %vm523_vm3, %v5925_v8  ;;  %v1713_v15 = vrot.slane %v5925_v8, 1  ;;  %v1295_v10 = vshll.u32 %v5925_v8, 16  ;;  %v6459_v19 = vld [vmem:[#allocation2 + $0x28] sm:$0xff] }
  0xfb   : > { %v3641_v28 = vrot.slane %v6459_v19, 3  ;;  %v3294_v32 = vshrl.u32 %v6459_v19, 16  ;;  %v3297_v37 = vshll.u32 %v6459_v19, 16 }
  0xfc   : > { %v717_v21 = vmax.f32 %v633_v49, 0.0  ;;  %v1714_v25 = vsel %vm1703_vm4, %v1711_v12, %v1713_v15  ;;  %v1297_v59 = vrot.slane %v1295_v10, 1  ;;  %v1299_v49 = vshrl.u32 %v5925_v8, 16  ;;  %v5918_v8 = vld [vmem:[%s6123_s12 + $0x80] sm:$0xff] }
  0xfd   : > { %5598 = vmatmul.msk.bf16.gmra.mxu3 %vm523_vm3, %v1714_v25  ;;  %v6471_v12 = vsel %vm3635_vm6, %v3639_v31, %v3641_v28  ;;  %v3296_v13 = vrot.slane %v3294_v32, 2  ;;  %v3299_v39 = vrot.slane %v3297_v37, 3 }
  0xfe   : > { %v1004_v14 = vmul.f32 %v6296_v24, %v717_v21  ;;  %v1298_v18 = vsel %vm1254_vm5, %v1293_v42, %v1297_v59 }
  0xff   : > { %5561 = vmatmul.msk.bf16.gmra.mxu1 %vm523_vm3, %v1298_v18  ;;  %v3300_v58 = vor.u32 %v3299_v39, %v3296_v13 }
 0x100   : > { %v1045_v30 = vpack.c.bf16 %v1004_v14, %v1004_v14 }
 0x101   : > { %v635_v38 = vpop.f32.mrf.mxu0  ;;  %v6478_v53 = vsel %vm3266_vm7, %v3291_v57, %v3300_v58  ;;  %v1301_v57 = vor.u32 %v1299_v49, %v1297_v59 }
 0x102   : > { %1087 = vst.msk [vmem:[#allocation2 + $0x34] sm:$0xf] %vm1073_vm0, %v1045_v30  ;;  %v636_v24 = vadd.f32 %v6273_v6, %v635_v38 }
 0x103   : > { %5482 = vmatmul.msk.bf16.gmra.mxu0 %vm523_vm3, %v5917_v17  ;;  %8057 = vst [vmem:[#allocation3_spill] sm:$0xff] %v6478_v53 }
 0x104   : > { %v718_v41 = vmax.f32 %v636_v24, 0.0 }
 0x106   : > { %v1005_v9 = vmul.f32 %v6258_v62, %v718_v41 }
 0x108   : > { %v1046_v48 = vpack.c.bf16 %v1005_v9, %v1005_v9 }
 0x109   : > { %v637_v52 = vpop.f32.mrf.mxu0  ;;  %v5926_v60 = vld [vmem:[#allocation2 + $0x30] sm:$0xff] }
 0x10a   : > { %1088 = vst.msk [vmem:[#allocation2 + $0x38] sm:$0xf] %vm1073_vm0, %v1046_v48  ;;  %v638_v31 = vadd.f32 %v6273_v6, %v637_v52  ;;  %5581 = vmatmul.msk.bf16.gmra.mxu2 %vm523_vm3, %v5926_v60  ;;  %v1715_v2 = vrot.slane %v5926_v60, 1  ;;  %v1303_v16 = vshll.u32 %v5926_v60, 16  ;;  %v6483_v10 = vld [vmem:[#allocation2 + $0x30] sm:$0xff]  ;;  %v1307_v49 = vshrl.u32 %v5926_v60, 16 }
 0x10b   : > { %v3643_v18 = vrot.slane %v6483_v10, 3  ;;  %v3303_v17 = vshrl.u32 %v6483_v10, 16  ;;  %v3306_v32 = vshll.u32 %v6483_v10, 16 }
 0x10c   : > { %v719_v21 = vmax.f32 %v638_v31, 0.0  ;;  %v1716_v62 = vsel %vm1703_vm4, %v1713_v15, %v1715_v2  ;;  %v1305_v25 = vrot.slane %v1303_v16, 1 }
 0x10d   : > { %5599 = vmatmul.msk.bf16.gmra.mxu3 %vm523_vm3, %v1716_v62  ;;  %v6495_v15 = vsel %vm3635_vm6, %v3641_v28, %v3643_v18  ;;  %v3305_v59 = vrot.slane %v3303_v17, 2  ;;  %v3308_v38 = vrot.slane %v3306_v32, 3  ;;  %v5919_v17 = vld [vmem:[%s6123_s12 + $0x88] sm:$0xff] }
 0x10e   : > { %v1006_v42 = vmul.f32 %v6312_v36, %v719_v21  ;;  %v1306_v14 = vsel %vm1254_vm5, %v1301_v57, %v1305_v25  ;;  %8058 = vst [vmem:[#allocation4_spill] sm:$0xff] %v6495_v15 }
 0x10f   : > { %5562 = vmatmul.msk.bf16.gmra.mxu1 %vm523_vm3, %v1306_v14  ;;  %v3309_v13 = vor.u32 %v3308_v38, %v3305_v59 }
 0x110   : > { %v1047_v30 = vpack.c.bf16 %v1006_v42, %v1006_v42 }
 0x111   : > { %v640_v37 = vpop.f32.mrf.mxu0  ;;  %v6502_v41 = vsel %vm3266_vm7, %v3300_v58, %v3309_v13  ;;  %v1309_v58 = vor.u32 %v1307_v49, %v1305_v25 }
 0x112   : > { %1089 = vst.msk [vmem:[#allocation2 + $0x3c] sm:$0xf] %vm1073_vm0, %v1047_v30  ;;  %v641_v36 = vadd.f32 %v6273_v6, %v640_v37  ;;  %v5737_v30 = vld [vmem:[%s8042_s4 + $0xc] sm:$0x3] }
 0x113   : > { %5483 = vmatmul.msk.bf16.gmra.mxu0 %vm523_vm3, %v5918_v8  ;;  %8059 = vst [vmem:[#allocation5_spill] sm:$0xff] %v6502_v41 }
 0x114   : > { %v720_v24 = vmax.f32 %v641_v36, 0.0 }
 0x116   : > { %v1007_v39 = vmul.f32 %v6310_v35, %v720_v24 }
 0x118   : > { %v1048_v9 = vpack.c.bf16 %v1007_v39, %v1007_v39 }
 0x119   : > { %v642_v48 = vpop.f32.mrf.mxu0  ;;  %v5927_v52 = vld [vmem:[#allocation2 + $0x38] sm:$0xff] }
 0x11a   : > { %1090 = vst.msk [vmem:[#allocation2 + $0x40] sm:$0xf] %vm1073_vm0, %v1048_v9  ;;  %v643_v28 = vadd.f32 %v6273_v6, %v642_v48  ;;  %5582 = vmatmul.msk.bf16.gmra.mxu2 %vm523_vm3, %v5927_v52  ;;  %v1717_v31 = vrot.slane %v5927_v52, 1  ;;  %v1311_v16 = vshll.u32 %v5927_v52, 16  ;;  %v6507_v21 = vld [vmem:[#allocation2 + $0x38] sm:$0xff] }
 0x11b   : > { %v3645_v60 = vrot.slane %v6507_v21, 3  ;;  %v3312_v25 = vshrl.u32 %v6507_v21, 16  ;;  %v3315_v37 = vshll.u32 %v6507_v21, 16 }
 0x11c   : > { %v721_v62 = vmax.f32 %v643_v28, 0.0  ;;  %v1718_v35 = vsel %vm1703_vm4, %v1715_v2, %v1717_v31  ;;  %v1313_v57 = vrot.slane %v1311_v16, 1  ;;  %v3123_v2 = vsel %vm587_vm2, %v5737_v30, 0 }
 0x11d   : > { %5600 = vmatmul.msk.bf16.gmra.mxu3 %vm523_vm3, %v1718_v35  ;;  %3132 = vmatpush.bf16.msrb.mxu0 %v3123_v2  ;;  %v3314_v59 = vrot.slane %v3312_v25, 2  ;;  %v3317_v38 = vrot.slane %v3315_v37, 3  ;;  %v1315_v35 = vshrl.u32 %v5927_v52, 16  ;;  %v5920_v52 = vld [vmem:[%s6123_s12 + $0x90] sm:$0xff] }
 0x11e   : > { %v1008_v42 = vmul.f32 %v6264_v3, %v721_v62  ;;  %v1314_v14 = vsel %vm1254_vm5, %v1309_v58, %v1313_v57  ;;  %v6522_v3 = vsel %vm3635_vm6, %v3643_v18, %v3645_v60 }
 0x11f   : > { %5563 = vmatmul.msk.bf16.gmra.mxu1 %vm523_vm3, %v1314_v14  ;;  %8060 = vst [vmem:[#allocation6_spill] sm:$0xff] %v6522_v3  ;;  %v3318_v39 = vor.u32 %v3317_v38, %v3314_v59  ;;  %v1317_v30 = vor.u32 %v1315_v35, %v1313_v57  ;;  %v5718_v57 = vld [vmem:[%s8042_s4 + $0xa] sm:$0x3]  ;;  %v6867_v3 = vld [vmem:[#allocation2 + $0x98] sm:$0xff] }
 0x120   : > { %v1049_v8 = vpack.c.bf16 %v1008_v42, %v1008_v42  ;;  %8083 = vst [vmem:[#allocation27_spill] sm:$0xff] %v6867_v3 }
 0x121   : > { %v645_v32 = vpop.f32.mrf.mxu0  ;;  %v6530_v48 = vsel %vm3266_vm7, %v3309_v13, %v3318_v39 }
 0x122   : > { %1091 = vst.msk [vmem:[#allocation2 + $0x44] sm:$0xf] %vm1073_vm0, %v1049_v8  ;;  %v646_v36 = vadd.f32 %v6273_v6, %v645_v32 }
 0x123   : > { %5484 = vmatmul.msk.bf16.gmra.mxu0 %vm523_vm3, %v5919_v17  ;;  %8061 = vst [vmem:[#allocation7_spill] sm:$0xff] %v6530_v48 }
 0x124   : > { %v722_v24 = vmax.f32 %v646_v36, 0.0 }
 0x126   : > { %v1009_v9 = vmul.f32 %v6325_v47, %v722_v24 }
 0x128   : > { %v1050_v28 = vpack.c.bf16 %v1009_v9, %v1009_v9  ;;  %v2762_v9 = vsel %vm587_vm2, %v5718_v57, 0 }
 0x129   : > { %v647_v18 = vpop.f32.mrf.mxu0  ;;  %v5928_v49 = vld [vmem:[#allocation2 + $0x40] sm:$0xff]  ;;  %2771 = vmatpush.bf16.msrb.mxu3 %v2762_v9  ;;  %v3032_v9 = vrot.slane %v6396_v51, 2 }
 0x12a   : > { %1092 = vst.msk [vmem:[#allocation2 + $0x48] sm:$0xf] %vm1073_vm0, %v1050_v28  ;;  %v648_v16 = vadd.f32 %v6273_v6, %v647_v18  ;;  %5583 = vmatmul.msk.bf16.gmra.mxu2 %vm523_vm3, %v5928_v49  ;;  %v1719_v62 = vrot.slane %v5928_v49, 1  ;;  %v1319_v58 = vshll.u32 %v5928_v49, 16  ;;  %v6535_v42 = vld [vmem:[#allocation2 + $0x40] sm:$0xff] }
 0x12b   : > { %v3647_v25 = vrot.slane %v6535_v42, 3  ;;  %v3321_v37 = vshrl.u32 %v6535_v42, 16  ;;  %v3324_v36 = vshll.u32 %v6535_v42, 16 }
 0x12c   : > { %v723_v14 = vmax.f32 %v648_v16, 0.0  ;;  %v1720_v13 = vsel %vm1703_vm4, %v1717_v31, %v1719_v62  ;;  %v1321_v8 = vrot.slane %v1319_v58, 1 }
 0x12d   : > { %v1607_v47 = vpop.f32.mrf.mxu2  ;;  %5601 = vmatmul.msk.bf16.gmra.mxu3 %vm523_vm3, %v1720_v13  ;;  %v6547_v31 = vsel %vm3635_vm6, %v3645_v60, %v3647_v25  ;;  %v3323_v38 = vrot.slane %v3321_v37, 2  ;;  %v3326_v24 = vrot.slane %v3324_v36, 3 }
 0x12e   : > { %v1010_v17 = vmul.f32 %v6323_v46, %v723_v14  ;;  %v1322_v2 = vsel %vm1254_vm5, %v1317_v30, %v1321_v8  ;;  %8062 = vst [vmem:[#allocation8_spill] sm:$0xff] %v6547_v31 }
 0x12f   : > { %5564 = vmatmul.msk.bf16.gmra.mxu1 %vm523_vm3, %v1322_v2  ;;  %v3327_v18 = vor.u32 %v3326_v24, %v3323_v38  ;;  %v1323_v2 = vshrl.u32 %v5928_v49, 16 }
 0x130   : > { %v1051_v32 = vpack.c.bf16 %v1010_v17, %v1010_v17 }
 0x131   : > { %v650_v59 = vpop.f32.mrf.mxu0  ;;  %v6558_v35 = vsel %vm3266_vm7, %v3318_v39, %v3327_v18  ;;  %v1325_v39 = vor.u32 %v1323_v2, %v1321_v8 }
 0x132   : > { %1093 = vst.msk [vmem:[#allocation2 + $0x4c] sm:$0xf] %vm1073_vm0, %v1051_v32  ;;  %v651_v46 = vadd.f32 %v6273_v6, %v650_v59 }
 0x133   : > { %5485 = vmatmul.msk.bf16.gmra.mxu0 %vm523_vm3, %v5920_v52  ;;  %8063 = vst [vmem:[#allocation9_spill] sm:$0xff] %v6558_v35 }
 0x134   : > { %v724_v28 = vmax.f32 %v651_v46, 0.0 }
 0x135   : > { %v1609_v16 = vpop.f32.mrf.mxu2 }
 0x136   : > { %v1011_v60 = vmul.f32 %v6278_v11, %v724_v28 }
 0x138   : > { %v1052_v58 = vpack.c.bf16 %v1011_v60, %v1011_v60 }
 0x139   : > { %v652_v14 = vpop.f32.mrf.mxu0  ;;  %v5929_v13 = vld [vmem:[#allocation2 + $0x48] sm:$0xff] }
 0x13a   : > { %1094 = vst.msk [vmem:[#allocation2 + $0x50] sm:$0xf] %vm1073_vm0, %v1052_v58  ;;  %v653_v30 = vadd.f32 %v6273_v6, %v652_v14  ;;  %5584 = vmatmul.msk.bf16.gmra.mxu2 %vm523_vm3, %v5929_v13  ;;  %v1721_v17 = vrot.slane %v5929_v13, 1  ;;  %v1327_v32 = vshll.u32 %v5929_v13, 16  ;;  %v6563_v37 = vld [vmem:[#allocation2 + $0x48] sm:$0xff]  ;;  %v3031_v58 = vrot.slane %v6386_v33, 2 }
 0x13b   : > { %v3649_v28 = vrot.slane %v6563_v37, 3  ;;  %v3330_v60 = vshrl.u32 %v6563_v37, 16 }
 0x13c   : > { %v725_v52 = vmax.f32 %v653_v30, 0.0  ;;  %v1469_v36 = vpop.f32.mrf.mxu1  ;;  %v1722_v11 = vsel %vm1703_vm4, %v1719_v62, %v1721_v17  ;;  %v1329_v59 = vrot.slane %v1327_v32, 1  ;;  %v3033_v30 = vsel %vm2669_vm9, %v3031_v58, %v3032_v9 }
 0x13d   : > { %v1608_v57 = vadd.f32 %v1607_v47, %v1469_v36  ;;  %v1612_v38 = vpop.f32.mrf.mxu2  ;;  %5602 = vmatmul.msk.bf16.gmra.mxu3 %vm523_vm3, %v1722_v11  ;;  %v6580_v51 = vsel %vm3635_vm6, %v3647_v25, %v3649_v28  ;;  %v3332_v2 = vrot.slane %v3330_v60, 2 }
 0x13e   : > { %v1012_v46 = vmul.f32 %v6335_v0, %v725_v52  ;;  %v1330_v24 = vsel %vm1254_vm5, %v1325_v39, %v1329_v59  ;;  %v3333_v0 = vshll.u32 %v6563_v37, 16  ;;  %8064 = vst [vmem:[#allocation10_spill] sm:$0xff] %v6580_v51 }
 0x13f   : > { %5565 = vmatmul.msk.bf16.gmra.mxu1 %vm523_vm3, %v1330_v24 }
 0x140   : > { %v1053_v49 = vpack.c.bf16 %v1012_v46, %v1012_v46  ;;  %v1807_v8 = vpop.f32.mrf.mxu3  ;;  %v3335_v32 = vrot.slane %v3333_v0, 3  ;;  %v1331_v0 = vshrl.u32 %v5929_v13, 16 }
 0x141   : > { %v655_v62 = vpop.f32.mrf.mxu0  ;;  %v6577_v14 = vadd.f32 %v1807_v8, %v1608_v57 }
 0x142   : > { %1095 = vst.msk [vmem:[#allocation2 + $0x54] sm:$0xf] %vm1073_vm0, %v1053_v49  ;;  %v656_v47 = vadd.f32 %v6273_v6, %v655_v62  ;;  %v3336_v36 = vor.u32 %v3335_v32, %v3332_v2  ;;  %v1333_v2 = vor.u32 %v1331_v0, %v1329_v59 }
 0x143   : > { %5806 = vmatmul.msk.bf16.vlgmr.msrb.gmra.mxu0 %vm523_vm3, %v3033_v30 }
 0x144   : > { %v726_v52 = vmax.f32 %v656_v47, 0.0  ;;  %v1471_v33 = vpop.f32.mrf.mxu1  ;;  %v6586_v57 = vsel %vm3266_vm7, %v3327_v18, %v3336_v36 }
 0x145   : > { %v1610_v39 = vadd.f32 %v1609_v16, %v1471_v33  ;;  %v1614_v46 = vpop.f32.mrf.mxu2  ;;  %8065 = vst [vmem:[#allocation11_spill] sm:$0xff] %v6586_v57 }
 0x146   : > { %v1013_v11 = vmul.f32 %v6333_v61, %v726_v52 }
 0x148   : > { %v1054_v24 = vpack.c.bf16 %v1013_v11, %v1013_v11  ;;  %v1809_v25 = vpop.f32.mrf.mxu3 }
 0x149   : > { %v657_v49 = vpop.f32.mrf.mxu0  ;;  %v5930_v62 = vld [vmem:[#allocation2 + $0x50] sm:$0xff]  ;;  %v6590_v8 = vadd.f32 %v1809_v25, %v1610_v39 }
 0x14a   : > { %1096 = vst.msk [vmem:[#allocation2 + $0x58] sm:$0xf] %vm1073_vm0, %v1054_v24  ;;  %v658_v60 = vadd.f32 %v6273_v6, %v657_v49  ;;  %5585 = vmatmul.msk.bf16.gmra.mxu2 %vm523_vm3, %v5930_v62  ;;  %v1723_v58 = vrot.slane %v5930_v62, 1  ;;  %v1335_v61 = vshll.u32 %v5930_v62, 16  ;;  %v6593_v47 = vld [vmem:[#allocation2 + $0x50] sm:$0xff]  ;;  %v3034_v24 = vrot.slane %v6432_v27, 2 }
 0x14b   : > { %v3651_v49 = vrot.slane %v6593_v47, 3  ;;  %v3339_v25 = vshrl.u32 %v6593_v47, 16 }
 0x14c   : > { %v727_v16 = vmax.f32 %v658_v60, 0.0  ;;  %v1474_v18 = vpop.f32.mrf.mxu1  ;;  %v1724_v30 = vsel %vm1703_vm4, %v1721_v17, %v1723_v58  ;;  %v1337_v32 = vrot.slane %v1335_v61, 1  ;;  %v3342_v60 = vshll.u32 %v6593_v47, 16 }
 0x14d   : > { %v1613_v33 = vadd.f32 %v1612_v38, %v1474_v18  ;;  %v1617_v11 = vpop.f32.mrf.mxu2  ;;  %5603 = vmatmul.msk.bf16.gmra.mxu3 %vm523_vm3, %v1724_v30  ;;  %v6609_v0 = vsel %vm3635_vm6, %v3649_v28, %v3651_v49  ;;  %v3035_v27 = vsel %vm2669_vm9, %v3032_v9, %v3034_v24  ;;  %v3341_v61 = vrot.slane %v3339_v25, 2 }
 0x14e   : > { %v1014_v52 = vmul.f32 %v6294_v23, %v727_v16  ;;  %v1338_v39 = vsel %vm1254_vm5, %v1333_v2, %v1337_v32  ;;  %8066 = vst [vmem:[#allocation12_spill] sm:$0xff] %v6609_v0  ;;  %v3344_v16 = vrot.slane %v3342_v60, 3 }
 0x14f   : > { %5566 = vmatmul.msk.bf16.gmra.mxu1 %vm523_vm3, %v1338_v39 }
 0x150   : > { %v1055_v13 = vpack.c.bf16 %v1014_v52, %v1014_v52  ;;  %v1812_v59 = vpop.f32.mrf.mxu3  ;;  %v3345_v2 = vor.u32 %v3344_v16, %v3341_v61 }
 0x151   : > { %v660_v17 = vpop.f32.mrf.mxu0  ;;  %v6606_v38 = vadd.f32 %v1812_v59, %v1613_v33 }
 0x152   : > { %1097 = vst.msk [vmem:[#allocation2 + $0x5c] sm:$0xf] %vm1073_vm0, %v1055_v13  ;;  %v661_v23 = vadd.f32 %v6273_v6, %v660_v17  ;;  %v6615_v17 = vsel %vm3266_vm7, %v3336_v36, %v3345_v2 }
 0x153   : > { %5807 = vmatmul.msk.bf16.gmra.mxu0 %vm523_vm3, %v3035_v27  ;;  %8067 = vst [vmem:[#allocation13_spill] sm:$0xff] %v6615_v17 }
 0x154   : > { %v728_v18 = vmax.f32 %v661_v23, 0.0  ;;  %v1476_v30 = vpop.f32.mrf.mxu1  ;;  %v1339_v23 = vshrl.u32 %v5930_v62, 16 }
 0x155   : > { %v1615_v39 = vadd.f32 %v1614_v46, %v1476_v30  ;;  %v1619_v13 = vpop.f32.mrf.mxu2 }
 0x156   : > { %v1015_v52 = vmul.f32 %v6345_v26, %v728_v18  ;;  %v1341_v16 = vor.u32 %v1339_v23, %v1337_v32 }
 0x158   : > { %v1056_v33 = vpack.c.bf16 %v1015_v52, %v1015_v52  ;;  %v1814_v28 = vpop.f32.mrf.mxu3 }
 0x159   : > { %v662_v59 = vpop.f32.mrf.mxu0  ;;  %v5931_v57 = vld [vmem:[#allocation2 + $0x58] sm:$0xff]  ;;  %v6619_v25 = vadd.f32 %v1814_v28, %v1615_v39 }
 0x15a   : > { %1098 = vst.msk [vmem:[#allocation2 + $0x60] sm:$0xf] %vm1073_vm0, %v1056_v33  ;;  %v663_v9 = vadd.f32 %v6273_v6, %v662_v59  ;;  %5586 = vmatmul.msk.bf16.gmra.mxu2 %vm523_vm3, %v5931_v57  ;;  %v1725_v60 = vrot.slane %v5931_v57, 1  ;;  %v1343_v26 = vshll.u32 %v5931_v57, 16  ;;  %v6622_v27 = vld [vmem:[#allocation2 + $0x58] sm:$0xff]  ;;  %v3036_v59 = vrot.slane %v6459_v19, 2 }
 0x15b   : > { %v3653_v28 = vrot.slane %v6622_v27, 3  ;;  %v3351_v23 = vshll.u32 %v6622_v27, 16 }
 0x15c   : > { %v729_v46 = vmax.f32 %v663_v9, 0.0  ;;  %v1479_v36 = vpop.f32.mrf.mxu1  ;;  %v1726_v61 = vsel %vm1703_vm4, %v1723_v58, %v1725_v60  ;;  %v1345_v18 = vrot.slane %v1343_v26, 1  ;;  %v3348_v9 = vshrl.u32 %v6622_v27, 16 }
 0x15d   : > { %v1618_v52 = vadd.f32 %v1617_v11, %v1479_v36  ;;  %v1622_v33 = vpop.f32.mrf.mxu2  ;;  %5604 = vmatmul.msk.bf16.gmra.mxu3 %vm523_vm3, %v1726_v61  ;;  %v6638_v26 = vsel %vm3635_vm6, %v3651_v49, %v3653_v28  ;;  %v3037_v19 = vsel %vm2669_vm9, %v3034_v24, %v3036_v59  ;;  %v3353_v36 = vrot.slane %v3351_v23, 3  ;;  %v6650_v24 = vld [vmem:[%s8041_s3] ss:$0 sm:$0xff] }
 0x15e   : > { %v1016_v30 = vmul.f32 %v6343_v22, %v729_v46  ;;  %v1346_v39 = vsel %vm1254_vm5, %v1341_v16, %v1345_v18  ;;  %8068 = vst [vmem:[#allocation14_spill] sm:$0xff] %v6638_v26  ;;  %v3350_v46 = vrot.slane %v3348_v9, 2 }
 0x15f   : > { %5567 = vmatmul.msk.bf16.gmra.mxu1 %vm523_vm3, %v1346_v39 }
 0x160   : > { %v1057_v62 = vpack.c.bf16 %v1016_v30, %v1016_v30  ;;  %v1817_v32 = vpop.f32.mrf.mxu3  ;;  %v3354_v30 = vor.u32 %v3353_v36, %v3350_v46 }
 0x161   : > { %v665_v58 = vpop.f32.mrf.mxu0  ;;  %v6635_v11 = vadd.f32 %v1817_v32, %v1618_v52 }
 0x162   : > { %1099 = vst.msk [vmem:[#allocation2 + $0x64] sm:$0xf] %vm1073_vm0, %v1057_v62  ;;  %v666_v22 = vadd.f32 %v6273_v6, %v665_v58  ;;  %v6644_v6 = vsel %vm3266_vm7, %v3345_v2, %v3354_v30  ;;  %v1347_v2 = vshrl.u32 %v5931_v57, 16 }
 0x163   : > { %5808 = vmatmul.msk.bf16.gmra.mxu0 %vm523_vm3, %v3037_v19  ;;  %8069 = vst [vmem:[#allocation15_spill] sm:$0xff] %v6644_v6 }
 0x164   : > { %v730_v61 = vmax.f32 %v666_v22, 0.0  ;;  %v1481_v16 = vpop.f32.mrf.mxu1 }
 0x165   : > { %v1620_v17 = vadd.f32 %v1619_v13, %v1481_v16  ;;  %v1624_v62 = vpop.f32.mrf.mxu2 }
 0x166   : > { %v1017_v39 = vmul.f32 %v6308_v34, %v730_v61  ;;  %v1349_v61 = vor.u32 %v1347_v2, %v1345_v18 }
 0x168   : > { %v1058_v52 = vpack.c.bf16 %v1017_v39, %v1017_v39  ;;  %v1819_v49 = vpop.f32.mrf.mxu3 }
 0x169   : > { %v667_v58 = vpop.f32.mrf.mxu0  ;;  %v5932_v32 = vld [vmem:[#allocation2 + $0x60] sm:$0xff]  ;;  %v6653_v23 = vadd.f32 %v1819_v49, %v1620_v17 }
 0x16a   : > { %1100 = vst.msk [vmem:[#allocation2 + $0x68] sm:$0xf] %vm1073_vm0, %v1058_v52  ;;  %v668_v9 = vadd.f32 %v6650_v24, %v667_v58  ;;  %5587 = vmatmul.msk.bf16.gmra.mxu2 %vm523_vm3, %v5932_v32  ;;  %v1727_v34 = vrot.slane %v5932_v32, 1  ;;  %v1351_v13 = vshll.u32 %v5932_v32, 16  ;;  %v6656_v19 = vld [vmem:[#allocation2 + $0x60] sm:$0xff]  ;;  %v3038_v58 = vrot.slane %v6483_v10, 2 }
 0x16b   : > { %v3655_v49 = vrot.slane %v6656_v19, 3  ;;  %v3360_v2 = vshll.u32 %v6656_v19, 16  ;;  %v3050_v15 = vrot.slane %v6656_v19, 2 }
 0x16c   : > { %v731_v22 = vmax.f32 %v668_v9, 0.0  ;;  %v1484_v46 = vpop.f32.mrf.mxu1  ;;  %v1728_v36 = vsel %vm1703_vm4, %v1725_v60, %v1727_v34  ;;  %v1353_v16 = vrot.slane %v1351_v13, 1  ;;  %v3357_v9 = vshrl.u32 %v6656_v19, 16 }
 0x16d   : > { %v1623_v52 = vadd.f32 %v1622_v33, %v1484_v46  ;;  %v1627_v6 = vpop.f32.mrf.mxu2  ;;  %5605 = vmatmul.msk.bf16.gmra.mxu3 %vm523_vm3, %v1728_v36  ;;  %v6672_v13 = vsel %vm3635_vm6, %v3653_v28, %v3655_v49  ;;  %v3039_v10 = vsel %vm2669_vm9, %v3036_v59, %v3038_v58  ;;  %v3362_v46 = vrot.slane %v3360_v2, 3 }
 0x16e   : > { %v1018_v39 = vmul.f32 %v6361_v44, %v731_v22  ;;  %v1354_v17 = vsel %vm1254_vm5, %v1349_v61, %v1353_v16  ;;  %8070 = vst [vmem:[#allocation16_spill] sm:$0xff] %v6672_v13  ;;  %v3359_v22 = vrot.slane %v3357_v9, 2 }
 0x16f   : > { %5568 = vmatmul.msk.bf16.gmra.mxu1 %vm523_vm3, %v1354_v17 }
 0x170   : > { %v1059_v57 = vpack.c.bf16 %v1018_v39, %v1018_v39  ;;  %v1822_v18 = vpop.f32.mrf.mxu3  ;;  %v3363_v39 = vor.u32 %v3362_v46, %v3359_v22 }
 0x171   : > { %v670_v60 = vpop.f32.mrf.mxu0  ;;  %v6669_v33 = vadd.f32 %v1822_v18, %v1623_v52 }
 0x172   : > { %1101 = vst.msk [vmem:[#allocation2 + $0x6c] sm:$0xf] %vm1073_vm0, %v1059_v57  ;;  %v671_v44 = vadd.f32 %v6650_v24, %v670_v60  ;;  %v6678_v60 = vsel %vm3266_vm7, %v3354_v30, %v3363_v39 }
 0x173   : > { %5809 = vmatmul.msk.bf16.gmra.mxu0 %vm523_vm3, %v3039_v10  ;;  %8071 = vst [vmem:[#allocation17_spill] sm:$0xff] %v6678_v60 }
 0x174   : > { %v732_v36 = vmax.f32 %v671_v44, 0.0  ;;  %v1486_v61 = vpop.f32.mrf.mxu1  ;;  %v1355_v44 = vshrl.u32 %v5932_v32, 16 }
 0x175   : > { %v1625_v26 = vadd.f32 %v1624_v62, %v1486_v61  ;;  %v1629_v57 = vpop.f32.mrf.mxu2 }
 0x176   : > { %v1019_v17 = vmul.f32 %v6359_v43, %v732_v36  ;;  %v1357_v46 = vor.u32 %v1355_v44, %v1353_v16 }
 0x178   : > { %v1060_v52 = vpack.c.bf16 %v1019_v17, %v1019_v17  ;;  %v1824_v28 = vpop.f32.mrf.mxu3 }
 0x179   : > { %v672_v18 = vpop.f32.mrf.mxu0  ;;  %v5933_v13 = vld [vmem:[#allocation2 + $0x68] sm:$0xff]  ;;  %v6682_v9 = vadd.f32 %v1824_v28, %v1625_v26 }
 0x17a   : > { %1102 = vst.msk [vmem:[#allocation2 + $0x70] sm:$0xf] %vm1073_vm0, %v1060_v52  ;;  %v673_v59 = vadd.f32 %v6650_v24, %v672_v18  ;;  %5588 = vmatmul.msk.bf16.gmra.mxu2 %vm523_vm3, %v5933_v13  ;;  %v1729_v2 = vrot.slane %v5933_v13, 1  ;;  %v1359_v43 = vshll.u32 %v5933_v13, 16  ;;  %v6685_v10 = vld [vmem:[#allocation2 + $0x68] sm:$0xff]  ;;  %v3040_v18 = vrot.slane %v6507_v21, 2 }
 0x17b   : > { %v3657_v28 = vrot.slane %v6685_v10, 3  ;;  %v3369_v44 = vshll.u32 %v6685_v10, 16 }
 0x17c   : > { %v733_v62 = vmax.f32 %v673_v59, 0.0  ;;  %v1489_v30 = vpop.f32.mrf.mxu1  ;;  %v1730_v22 = vsel %vm1703_vm4, %v1727_v34, %v1729_v2  ;;  %v1361_v36 = vrot.slane %v1359_v43, 1  ;;  %v3366_v59 = vshrl.u32 %v6685_v10, 16 }
 0x17d   : > { %v1628_v17 = vadd.f32 %v1627_v6, %v1489_v30  ;;  %v1632_v52 = vpop.f32.mrf.mxu2  ;;  %5606 = vmatmul.msk.bf16.gmra.mxu3 %vm523_vm3, %v1730_v22  ;;  %v6701_v43 = vsel %vm3635_vm6, %v3655_v49, %v3657_v28  ;;  %v3041_v21 = vsel %vm2669_vm9, %v3038_v58, %v3040_v18  ;;  %v3371_v30 = vrot.slane %v3369_v44, 3 }
 0x17e   : > { %v1020_v61 = vmul.f32 %v6321_v45, %v733_v62  ;;  %v1362_v26 = vsel %vm1254_vm5, %v1357_v46, %v1361_v36  ;;  %8072 = vst [vmem:[#allocation18_spill] sm:$0xff] %v6701_v43  ;;  %v3368_v62 = vrot.slane %v3366_v59, 2 }
 0x17f   : > { %5569 = vmatmul.msk.bf16.gmra.mxu1 %vm523_vm3, %v1362_v26 }
 0x180   : > { %v1061_v32 = vpack.c.bf16 %v1020_v61, %v1020_v61  ;;  %v1827_v16 = vpop.f32.mrf.mxu3  ;;  %v3372_v61 = vor.u32 %v3371_v30, %v3368_v62 }
 0x181   : > { %v675_v34 = vpop.f32.mrf.mxu0  ;;  %v6698_v6 = vadd.f32 %v1827_v16, %v1628_v17 }
 0x182   : > { %1103 = vst.msk [vmem:[#allocation2 + $0x74] sm:$0xf] %vm1073_vm0, %v1061_v32  ;;  %v676_v45 = vadd.f32 %v6650_v24, %v675_v34  ;;  %v6707_v34 = vsel %vm3266_vm7, %v3363_v39, %v3372_v61 }
 0x183   : > { %5810 = vmatmul.msk.bf16.gmra.mxu0 %vm523_vm3, %v3041_v21  ;;  %8073 = vst [vmem:[#allocation19_spill] sm:$0xff] %v6707_v34 }
 0x184   : > { %v734_v22 = vmax.f32 %v676_v45, 0.0  ;;  %v1491_v46 = vpop.f32.mrf.mxu1  ;;  %v1363_v45 = vshrl.u32 %v5933_v13, 16 }
 0x185   : > { %v1630_v60 = vadd.f32 %v1629_v57, %v1491_v46  ;;  %v1634_v32 = vpop.f32.mrf.mxu2 }
 0x186   : > { %v1021_v26 = vmul.f32 %v6370_v5, %v734_v22  ;;  %v1365_v30 = vor.u32 %v1363_v45, %v1361_v36 }
 0x188   : > { %v1062_v17 = vpack.c.bf16 %v1021_v26, %v1021_v26  ;;  %v1829_v49 = vpop.f32.mrf.mxu3 }
 0x189   : > { %v677_v16 = vpop.f32.mrf.mxu0  ;;  %v5934_v43 = vld [vmem:[#allocation2 + $0x70] sm:$0xff]  ;;  %v6711_v59 = vadd.f32 %v1829_v49, %v1630_v60 }
 0x18a   : > { %1104 = vst.msk [vmem:[#allocation2 + $0x78] sm:$0xf] %vm1073_vm0, %v1062_v17  ;;  %v678_v58 = vadd.f32 %v6650_v24, %v677_v16  ;;  %5589 = vmatmul.msk.bf16.gmra.mxu2 %vm523_vm3, %v5934_v43  ;;  %v1731_v44 = vrot.slane %v5934_v43, 1  ;;  %v1367_v5 = vshll.u32 %v5934_v43, 16  ;;  %v6714_v21 = vld [vmem:[#allocation2 + $0x70] sm:$0xff]  ;;  %v3042_v16 = vrot.slane %v6535_v42, 2 }
 0x18b   : > { %v3659_v49 = vrot.slane %v6714_v21, 3  ;;  %v3378_v45 = vshll.u32 %v6714_v21, 16 }
 0x18c   : > { %v735_v57 = vmax.f32 %v678_v58, 0.0  ;;  %v1494_v39 = vpop.f32.mrf.mxu1  ;;  %v1732_v62 = vsel %vm1703_vm4, %v1729_v2, %v1731_v44  ;;  %v1369_v22 = vrot.slane %v1367_v5, 1  ;;  %v3375_v58 = vshrl.u32 %v6714_v21, 16 }
 0x18d   : > { %v1633_v26 = vadd.f32 %v1632_v52, %v1494_v39  ;;  %v1637_v17 = vpop.f32.mrf.mxu2  ;;  %5607 = vmatmul.msk.bf16.gmra.mxu3 %vm523_vm3, %v1732_v62  ;;  %v6730_v5 = vsel %vm3635_vm6, %v3657_v28, %v3659_v49  ;;  %v3043_v42 = vsel %vm2669_vm9, %v3040_v18, %v3042_v16  ;;  %v3380_v39 = vrot.slane %v3378_v45, 3 }
 0x18e   : > { %v1022_v46 = vmul.f32 %v6368_v7, %v735_v57  ;;  %v1370_v60 = vsel %vm1254_vm5, %v1365_v30, %v1369_v22  ;;  %8074 = vst [vmem:[#allocation20_spill] sm:$0xff] %v6730_v5  ;;  %v3377_v57 = vrot.slane %v3375_v58, 2 }
 0x18f   : > { %5570 = vmatmul.msk.bf16.gmra.mxu1 %vm523_vm3, %v1370_v60 }
 0x190   : > { %v1063_v13 = vpack.c.bf16 %v1022_v46, %v1022_v46  ;;  %v1832_v36 = vpop.f32.mrf.mxu3  ;;  %v3381_v46 = vor.u32 %v3380_v39, %v3377_v57 }
 0x191   : > { %v680_v2 = vpop.f32.mrf.mxu0  ;;  %v6727_v52 = vadd.f32 %v1832_v36, %v1633_v26 }
 0x192   : > { %1105 = vst.msk [vmem:[#allocation2 + $0x7c] sm:$0xf] %vm1073_vm0, %v1063_v13  ;;  %v681_v7 = vadd.f32 %v6650_v24, %v680_v2  ;;  %v6736_v2 = vsel %vm3266_vm7, %v3372_v61, %v3381_v46 }
 0x193   : > { %5811 = vmatmul.msk.bf16.gmra.mxu0 %vm523_vm3, %v3043_v42  ;;  %8075 = vst [vmem:[#allocation21_spill] sm:$0xff] %v6736_v2 }
 0x194   : > { %v736_v62 = vmax.f32 %v681_v7, 0.0  ;;  %v1496_v30 = vpop.f32.mrf.mxu1  ;;  %v1371_v7 = vshrl.u32 %v5934_v43, 16 }
 0x195   : > { %v1635_v34 = vadd.f32 %v1634_v32, %v1496_v30  ;;  %v1639_v13 = vpop.f32.mrf.mxu2 }
 0x196   : > { %v1023_v60 = vmul.f32 %v6331_v56, %v736_v62  ;;  %v1373_v39 = vor.u32 %v1371_v7, %v1369_v22 }
 0x198   : > { %v1064_v26 = vpack.c.bf16 %v1023_v60, %v1023_v60  ;;  %v1834_v28 = vpop.f32.mrf.mxu3 }
 0x199   : > { %v682_v36 = vpop.f32.mrf.mxu0  ;;  %v5935_v5 = vld [vmem:[#allocation2 + $0x78] sm:$0xff]  ;;  %v6740_v58 = vadd.f32 %v1834_v28, %v1635_v34 }
 0x19a   : > { %1106 = vst.msk [vmem:[#allocation2 + $0x80] sm:$0xf] %vm1073_vm0, %v1064_v26  ;;  %v683_v18 = vadd.f32 %v6650_v24, %v682_v36  ;;  %5590 = vmatmul.msk.bf16.gmra.mxu2 %vm523_vm3, %v5935_v5  ;;  %v1733_v45 = vrot.slane %v5935_v5, 1  ;;  %v1375_v56 = vshll.u32 %v5935_v5, 16  ;;  %v6743_v42 = vld [vmem:[#allocation2 + $0x78] sm:$0xff]  ;;  %v3044_v36 = vrot.slane %v6563_v37, 2 }
 0x19b   : > { %v3661_v28 = vrot.slane %v6743_v42, 3  ;;  %v3387_v7 = vshll.u32 %v6743_v42, 16 }
 0x19c   : > { %v737_v32 = vmax.f32 %v683_v18, 0.0  ;;  %v1499_v61 = vpop.f32.mrf.mxu1  ;;  %v1734_v57 = vsel %vm1703_vm4, %v1731_v44, %v1733_v45  ;;  %v1377_v62 = vrot.slane %v1375_v56, 1  ;;  %v3384_v18 = vshrl.u32 %v6743_v42, 16 }
 0x19d   : > { %v1638_v60 = vadd.f32 %v1637_v17, %v1499_v61  ;;  %v1642_v26 = vpop.f32.mrf.mxu2  ;;  %5608 = vmatmul.msk.bf16.gmra.mxu3 %vm523_vm3, %v1734_v57  ;;  %v6759_v56 = vsel %vm3635_vm6, %v3659_v49, %v3661_v28  ;;  %v3045_v37 = vsel %vm2669_vm9, %v3042_v16, %v3044_v36  ;;  %v3389_v61 = vrot.slane %v3387_v7, 3 }
 0x19e   : > { %v1024_v30 = vmul.f32 %v6383_v29, %v737_v32  ;;  %v1378_v34 = vsel %vm1254_vm5, %v1373_v39, %v1377_v62  ;;  %8076 = vst [vmem:[#allocation22_spill] sm:$0xff] %v6759_v56  ;;  %v3386_v32 = vrot.slane %v3384_v18, 2 }
 0x19f   : > { %5571 = vmatmul.msk.bf16.gmra.mxu1 %vm523_vm3, %v1378_v34 }
 0x1a0   : > { %v1065_v43 = vpack.c.bf16 %v1024_v30, %v1024_v30  ;;  %v1837_v22 = vpop.f32.mrf.mxu3  ;;  %v3390_v30 = vor.u32 %v3389_v61, %v3386_v32 }
 0x1a1   : > { %v685_v44 = vpop.f32.mrf.mxu0  ;;  %v6756_v17 = vadd.f32 %v1837_v22, %v1638_v60 }
 0x1a2   : > { %1107 = vst.msk [vmem:[#allocation2 + $0x84] sm:$0xf] %vm1073_vm0, %v1065_v43  ;;  %v686_v29 = vadd.f32 %v6650_v24, %v685_v44  ;;  %v6765_v44 = vsel %vm3266_vm7, %v3381_v46, %v3390_v30 }
 0x1a3   : > { %5812 = vmatmul.msk.bf16.gmra.mxu0 %vm523_vm3, %v3045_v37  ;;  %8077 = vst [vmem:[#allocation23_spill] sm:$0xff] %v6765_v44 }
 0x1a4   : > { %v738_v57 = vmax.f32 %v686_v29, 0.0  ;;  %v1501_v39 = vpop.f32.mrf.mxu1 }
 0x1a5   : > { %v1640_v2 = vadd.f32 %v1639_v13, %v1501_v39  ;;  %v1644_v43 = vpop.f32.mrf.mxu2  ;;  %v1379_v13 = vshrl.u32 %v5935_v5, 16  ;;  %v8050_v5 = vrot.slane %v6593_v47, 2 }
 0x1a6   : > { %v1025_v34 = vmul.f32 %v6381_v4, %v738_v57 }
 0x1a7   : > { %v1381_v61 = vor.u32 %v1379_v13, %v1377_v62 }
 0x1a8   : > { %v1066_v60 = vpack.c.bf16 %v1025_v34, %v1025_v34  ;;  %v1839_v49 = vpop.f32.mrf.mxu3 }
 0x1a9   : > { %v687_v22 = vpop.f32.mrf.mxu0  ;;  %v6767_v56 = vld [vmem:[#allocation2 + $0x80] sm:$0xff]  ;;  %v6771_v18 = vadd.f32 %v1839_v49, %v1640_v2 }
 0x1aa   : > { %1108 = vst.msk [vmem:[#allocation2 + $0x88] sm:$0xf] %vm1073_vm0, %v1066_v60  ;;  %v688_v16 = vadd.f32 %v6650_v24, %v687_v22  ;;  %5591 = vmatmul.msk.bf16.gmra.mxu2 %vm523_vm3, %v6767_v56  ;;  %v1735_v4 = vrot.slane %v6767_v56, 1  ;;  %v1383_v46 = vshll.u32 %v6767_v56, 16  ;;  %v6777_v29 = vld [vmem:[#allocation2 + $0x80] sm:$0xff] }
 0x1ab   : > { %v8049_v49 = vrot.slane %v6777_v29, 3  ;;  %v3396_v13 = vshll.u32 %v6777_v29, 16  ;;  %v8081_v35 = vrot.slane %v6777_v29, 3 }
 0x1ac   : > { %v739_v7 = vmax.f32 %v688_v16, 0.0  ;;  %v1504_v37 = vpop.f32.mrf.mxu1  ;;  %v1736_v32 = vsel %vm1703_vm4, %v1733_v45, %v1735_v4  ;;  %v1385_v57 = vrot.slane %v1383_v46, 1  ;;  %v3393_v16 = vshrl.u32 %v6777_v29, 16 }
 0x1ad   : > { %v1643_v2 = vadd.f32 %v1642_v26, %v1504_v37  ;;  %v1647_v34 = vpop.f32.mrf.mxu2  ;;  %5609 = vmatmul.msk.bf16.gmra.mxu3 %vm523_vm3, %v1736_v32  ;;  %v6795_v46 = vsel %vm3635_vm6, %v3661_v28, %v8049_v49  ;;  %v3398_v32 = vrot.slane %v3396_v13, 3  ;;  %v1933_v28 = vld [vmem:[#allocation2 + $0x8] sm:$0xe] }
 0x1ae   : > { %v1026_v39 = vmul.f32 %v6341_v20, %v739_v7  ;;  %v1386_v60 = vsel %vm1254_vm5, %v1381_v61, %v1385_v57  ;;  %8078 = vst [vmem:[#allocation24_spill] sm:$0xff] %v6795_v46  ;;  %v3047_v7 = vsel %vm2669_vm9, %v3044_v36, %v8050_v5  ;;  %v3395_v37 = vrot.slane %v3393_v16, 2  ;;  %v6813_v5 = vld [vmem:[#allocation2 + $0x10] sm:$0xff] }
 0x1af   : > { %5572 = vmatmul.msk.bf16.gmra.mxu1 %vm523_vm3, %v1386_v60  ;;  %v8053_v46 = vrot.slane %v6622_v27, 2 }
 0x1b0   : > { %v1067_v22 = vpack.c.bf16 %v1026_v39, %v1026_v39  ;;  %v1842_v62 = vpop.f32.mrf.mxu3  ;;  %v6801_v39 = vld [vmem:[#allocation2 + $0xc] sm:$0xf] }
 0x1b1   : > { %v690_v45 = vpop.f32.mrf.mxu0  ;;  %v6790_v26 = vadd.f32 %v1842_v62, %v1643_v2  ;;  %v8051_v49 = vunpack.c.l.b16 %v6801_v39 }
 0x1b2   : > { %1109 = vst.msk [vmem:[#allocation2 + $0x8c] sm:$0xf] %vm1073_vm0, %v1067_v22  ;;  %v691_v20 = vadd.f32 %v6650_v24, %v690_v45  ;;  %v6803_v22 = vor.u32 %v3398_v32, %v3395_v37  ;;  %v2009_v37 = vunpack.c.l.b16 %v1933_v28  ;;  %v1387_v32 = vshrl.u32 %v6767_v56, 16 }
 0x1b3   : > { %5813 = vmatmul.msk.bf16.gmra.mxu0 %vm523_vm3, %v3047_v7 }
 0x1b4   : > { %v740_v61 = vmax.f32 %v691_v20, 0.0  ;;  %v1506_v60 = vpop.f32.mrf.mxu1  ;;  %v6809_v36 = vsel %vm3266_vm7, %v3390_v30, %v6803_v22 }
 0x1b5   : > { %v1645_v45 = vadd.f32 %v1644_v43, %v1506_v60  ;;  %v1649_v62 = vpop.f32.mrf.mxu2  ;;  %8079 = vst [vmem:[#allocation25_spill] sm:$0xff] %v6809_v36  ;;  %v6826_v60 = vpack.c.b16 %v8051_v49, %v2009_v37  ;;  %v2310_v36 = vshrl.u32 %v6813_v5, 16 }
 0x1b6   : > { %v1027_v2 = vmul.f32 %v6402_v54, %v740_v61 }
 0x1b7   : > { %v2302_v0 = vshrl.u32 %v6826_v60, 16 }
 0x1b8   : > { %v1068_v16 = vpack.c.bf16 %v1027_v2, %v1027_v2  ;;  %v1844_v20 = vpop.f32.mrf.mxu3  ;;  %v5843_v2 = vld [vmem:[%s8042_s4 + $0x10] sm:$0x3] }
 0x1b9   : > { %v692_v13 = vpop.f32.mrf.mxu0  ;;  %v6811_v7 = vld [vmem:[#allocation2 + $0x88] sm:$0xff]  ;;  %v6817_v43 = vadd.f32 %v1844_v20, %v1645_v45  ;;  %v3728_v45 = vsel %vm587_vm2, %v5843_v2, 0 }
 0x1ba   : > { %1110 = vst.msk [vmem:[#allocation2 + $0x90] sm:$0xf] %vm1073_vm0, %v1068_v16  ;;  %v693_v54 = vadd.f32 %v6650_v24, %v692_v13  ;;  %5592 = vmatmul.msk.bf16.gmra.mxu2 %vm523_vm3, %v6811_v7  ;;  %v8052_v30 = vrot.slane %v6811_v7, 1  ;;  %v1391_v61 = vshll.u32 %v6811_v7, 16  ;;  %v6832_v28 = vld [vmem:[#allocation2 + $0x88] sm:$0xff]  ;;  %v1389_v13 = vor.u32 %v1387_v32, %v1385_v57 }
 0x1bb   : > { %3737 = vmatpush.bf16.msrb.mxu2 %v3728_v45  ;;  %v2305_v57 = vshll.u32 %v6826_v60, 16  ;;  %v3665_v32 = vrot.slane %v6832_v28, 3  ;;  %v5824_v45 = vld [vmem:[%s8042_s4 + $0xe] sm:$0x3] }
 0x1bc   : > { %v741_v24 = vmax.f32 %v693_v54, 0.0  ;;  %v1509_v16 = vpop.f32.mrf.mxu1  ;;  %v1738_v56 = vsel %vm1703_vm4, %v1735_v4, %v8052_v30  ;;  %v1393_v20 = vrot.slane %v1391_v61, 1  ;;  %v2313_v54 = vshll.u32 %v6813_v5, 16 }
 0x1bd   : > { %v1648_v49 = vadd.f32 %v1647_v34, %v1509_v16  ;;  %v1652_v44 = vpop.f32.mrf.mxu2  ;;  %5610 = vmatmul.msk.bf16.gmra.mxu3 %vm523_vm3, %v1738_v56  ;;  %v2312_v61 = vrot.slane %v2310_v36, 1  ;;  %v3405_v16 = vshll.u32 %v6832_v28, 16  ;;  %v8080_v30 = vrot.slane %v6593_v47, 2 }
 0x1be   : > { %v1028_v37 = vmul.f32 %v6400_v1, %v741_v24  ;;  %v1394_v2 = vsel %vm1254_vm5, %v1389_v13, %v1393_v20  ;;  %v3402_v1 = vshrl.u32 %v6832_v28, 16  ;;  %v2315_v13 = vrot.slane %v2313_v54, 2 }
 0x1bf   : > { %5573 = vmatmul.msk.bf16.gmra.mxu1 %vm523_vm3, %v1394_v2  ;;  %v3492_v2 = vsel %vm587_vm2, %v5824_v45, 0  ;;  %v3049_v36 = vsel %vm2669_vm9, %v8080_v30, %v8053_v46  ;;  %v6864_v51 = vsel %vm3635_vm6, %v8081_v35, %v3665_v32  ;;  %v2307_v54 = vrot.slane %v2305_v57, 2 }
 0x1c0   : > { %v1069_v4 = vpack.c.bf16 %v1028_v37, %v1028_v37  ;;  %v1847_v34 = vpop.f32.mrf.mxu3  ;;  %3501 = vmatpush.bf16.msrb.mxu1 %v3492_v2  ;;  %8082 = vst [vmem:[#allocation26_spill] sm:$0xff] %v6864_v51  ;;  %v3404_v48 = vrot.slane %v3402_v1, 2  ;;  %v2316_v47 = vor.u32 %v2315_v13, %v2312_v61  ;;  %v3423_v61 = vshll.u32 %v6867_v3, 16 }
 0x1c1   : > { %v1158_v24 = vld [vmem:[#allocation2 + $0x90] sm:$0x1]  ;;  %v6853_v56 = vadd.f32 %v1847_v34, %v1648_v49  ;;  %v2304_v49 = vrot.slane %v2302_v0, 1 }
 0x1c2   : > { %1111 = vst.msk [vmem:[#allocation2 + $0x94] sm:$0xf] %vm1073_vm0, %v1069_v4  ;;  %v1234_v37 = vunpack.c.l.b16 %v1158_v24  ;;  %v3407_v4 = vrot.slane %v3405_v16, 3  ;;  %v3425_v51 = vrot.slane %v3423_v61, 3 }
 0x1c3   : > { %5814 = vmatmul.msk.bf16.gmra.mxu0 %vm523_vm3, %v3049_v36  ;;  %v2308_v1 = vor.u32 %v2307_v54, %v2304_v49  ;;  %v6873_v36 = vld [vmem:[#allocation2 + $0x18] sm:$0xff] }
 0x1c4   : > { %v1253_v34 = vpack.c.b16 %v1234_v37, %v1234_v37  ;;  %v1511_v24 = vpop.f32.mrf.mxu1  ;;  %v3408_v45 = vor.u32 %v3407_v4, %v3404_v48 }
 0x1c5   : > { %v1650_v31 = vadd.f32 %v1649_v62, %v1511_v24  ;;  %v1654_v41 = vpop.f32.mrf.mxu2  ;;  %v2317_v48 = vsel %vm2300_vm10, %v2308_v1, %v2316_v47  ;;  %v3420_v62 = vshrl.u32 %v6867_v3, 16  ;;  %v2319_v1 = vshrl.u32 %v6873_v36, 16 }
 0x1c6   : > { %v1399_v30 = vshll.u32 %v1253_v34, 16  ;;  %v6871_v35 = vsel %vm3266_vm7, %v6803_v22, %v3408_v45  ;;  %v1739_v2 = vrot.slane %v1253_v34, 1  ;;  %v1395_v22 = vshrl.u32 %v6811_v7, 16 }
 0x1c7   : > { %8084 = vst [vmem:[#allocation28_spill] sm:$0xff] %v6871_v35  ;;  %v3422_v35 = vrot.slane %v3420_v62, 2 }
 0x1c8   : > { %v1849_v16 = vpop.f32.mrf.mxu3  ;;  %v1401_v13 = vrot.slane %v1399_v30, 1  ;;  %v1397_v24 = vor.u32 %v1395_v22, %v1393_v20  ;;  %v2322_v30 = vshll.u32 %v6873_v36, 16 }
 0x1c9   : > { %v6875_v0 = vld [vmem:[#allocation2 + $0x90] sm:$0xff]  ;;  %v6877_v57 = vadd.f32 %v1849_v16, %v1650_v31  ;;  %v8085_v31 = vrot.slane %v6811_v7, 1  ;;  %v8054_v16 = vrot.slane %v6867_v3, 3  ;;  %v6907_v19 = vor.u32 %v3425_v51, %v3422_v35 }
 0x1ca   : > { %5700 = vmatmul.msk.bf16.vlgmr.msra.gmra.mxu2 %vm523_vm3, %v2317_v48  ;;  %v3667_v37 = vrot.slane %v6875_v0, 3  ;;  %v3411_v4 = vshrl.u32 %v6875_v0, 16  ;;  %v3414_v49 = vshll.u32 %v6875_v0, 16  ;;  %v1402_v53 = vsel %vm1254_vm5, %v1397_v24, %v1401_v13  ;;  %v2663_v13 = vld [vmem:[#allocation2 + $0x8] sm:$0xc] }
 0x1cb   : > { %v1740_v34 = vsel %vm1703_vm4, %v8085_v31, %v1739_v2  ;;  %v2324_v61 = vrot.slane %v2322_v30, 2  ;;  %8088 = vst [vmem:[#allocation31_spill] sm:$0xff] %v6907_v19  ;;  %v8092_v51 = vunpack.c.l.b16 %v6801_v39  ;;  %v2671_v30 = vrot.slane %v6813_v5, 2 }
 0x1cc   : > { %v1514_v54 = vpop.f32.mrf.mxu1  ;;  %v6897_v7 = vsel %vm3635_vm6, %v3665_v32, %v3667_v37  ;;  %v6902_v20 = vsel %vm3635_vm6, %v3667_v37, %v8054_v16  ;;  %v3416_v2 = vrot.slane %v3414_v49, 3  ;;  %v8089_v32 = vrot.slane %v6622_v27, 2 }
 0x1cd   : > { %v1653_v48 = vadd.f32 %v1652_v44, %v1514_v54  ;;  %v1657_v46 = vpop.f32.mrf.mxu2  ;;  %5611 = vmatmul.msk.bf16.gmra.mxu3 %vm523_vm3, %v1740_v34  ;;  %8086 = vst [vmem:[#allocation29_spill] sm:$0xff] %v6897_v7  ;;  %v3413_v44 = vrot.slane %v3411_v4, 2  ;;  %v2321_v54 = vrot.slane %v2319_v1, 1  ;;  %v2667_v49 = vunpack.c.l.b16 %v2663_v13 }
 0x1ce   : > { %8087 = vst [vmem:[#allocation30_spill] sm:$0xff] %v6902_v20  ;;  %v3051_v34 = vsel %vm2669_vm9, %v8089_v32, %v3050_v15  ;;  %v2066_v13 = vrot.slane %v6813_v5, 1  ;;  %v2065_v39 = vrot.slane %v6826_v60, 1 }
 0x1cf   : > { %5574 = vmatmul.msk.bf16.gmra.mxu1 %vm523_vm3, %v1402_v53  ;;  %v3417_v31 = vor.u32 %v3416_v2, %v3413_v44  ;;  %v2668_v35 = vpack.c.b16 %v8092_v51, %v2667_v49  ;;  %v6926_v2 = vld [vmem:[#allocation2 + $0x20] sm:$0xff] }
 0x1d0   : > { %v1852_v22 = vpop.f32.mrf.mxu3  ;;  %v2328_v32 = vshrl.u32 %v6926_v2, 16 }
 0x1d1   : > { %v6905_v62 = vadd.f32 %v1852_v22, %v1653_v48  ;;  %v6914_v37 = vsel %vm3266_vm7, %v3408_v45, %v3417_v31  ;;  %v6918_v53 = vsel %vm3266_vm7, %v3417_v31, %v6907_v19  ;;  %v2325_v48 = vor.u32 %v2324_v61, %v2321_v54 }
 0x1d2   : > { %8090 = vst [vmem:[#allocation32_spill] sm:$0xff] %v6914_v37  ;;  %v2670_v22 = vrot.slane %v2668_v35, 2  ;;  %v6942_v35 = vpop.f32.mrf.mxu0 }
 0x1d3   : > { %5815 = vmatmul.msk.bf16.gmra.mxu0 %vm523_vm3, %v3051_v34  ;;  %8091 = vst [vmem:[#allocation33_spill] sm:$0xff] %v6918_v53  ;;  %v2326_v45 = vsel %vm2300_vm10, %v2316_v47, %v2325_v48  ;;  %v2331_v47 = vshll.u32 %v6926_v2, 16  ;;  %v2067_v34 = vsel %vm1703_vm4, %v2065_v39, %v2066_v13 }
 0x1d4   : > { %v1516_v4 = vpop.f32.mrf.mxu1  ;;  %v2672_v54 = vsel %vm2669_vm9, %v2670_v22, %v2671_v30  ;;  %8093 = vst [vmem:[#allocation34_spill] sm:$0xff] %v6942_v35 }
 0x1d5   : > { %v1655_v24 = vadd.f32 %v1654_v41, %v1516_v4  ;;  %v1659_v1 = vpop.f32.mrf.mxu2  ;;  %v3052_v4 = vrot.slane %v6685_v10, 2  ;;  %v2333_v51 = vrot.slane %v2331_v47, 2  ;;  %v2673_v10 = vrot.slane %v6873_v36, 2 }
 0x1d7   : > { %v2674_v47 = vsel %vm2669_vm9, %v2671_v30, %v2673_v10 }
 0x1d8   : > { %v1854_v27 = vpop.f32.mrf.mxu3 }
 0x1d9   : > { %v6923_v44 = vadd.f32 %v1854_v27, %v1655_v24  ;;  %v2330_v24 = vrot.slane %v2328_v32, 1 }
 0x1da   : > { %5701 = vmatmul.msk.bf16.gmra.mxu2 %vm523_vm3, %v2326_v45 }
 0x1db   : > { %v2334_v22 = vor.u32 %v2333_v51, %v2330_v24 }
 0x1dc   : > { %v1519_v41 = vpop.f32.mrf.mxu1 }
 0x1dd   : > { %v1658_v61 = vadd.f32 %v1657_v46, %v1519_v41  ;;  %v1662_v31 = vpop.f32.mrf.mxu2  ;;  %5719 = vmatmul.msk.bf16.vlgmr.msrb.gmra.mxu3 %vm523_vm3, %v2672_v54  ;;  %v3053_v46 = vsel %vm2669_vm9, %v3050_v15, %v3052_v4  ;;  %v2335_v39 = vsel %vm2300_vm10, %v2325_v48, %v2334_v22  ;;  %v2068_v15 = vrot.slane %v6873_v36, 1 }
 0x1de   : > { %v3054_v48 = vrot.slane %v6714_v21, 2  ;;  %v2675_v21 = vrot.slane %v6926_v2, 2 }
 0x1df   : > { %5681 = vmatmul.msk.bf16.vlgmr.msra.gmra.mxu1 %vm523_vm3, %v2067_v34  ;;  %v2069_v51 = vsel %vm1703_vm4, %v2066_v13, %v2068_v15 }
 0x1e0   : > { %v1857_v5 = vpop.f32.mrf.mxu3 }
 0x1e1   : > { %v6938_v49 = vadd.f32 %v1857_v5, %v1658_v61  ;;  %v6948_v61 = vld [vmem:[#allocation2 + $0x28] sm:$0xff] }
 0x1e2   : > { %v2337_v5 = vshrl.u32 %v6948_v61, 16  ;;  %v2340_v24 = vshll.u32 %v6948_v61, 16 }
 0x1e3   : > { %5816 = vmatmul.msk.bf16.gmra.mxu0 %vm523_vm3, %v3053_v46  ;;  %v6958_v46 = vpop.f32.mrf.mxu0 }
 0x1e4   : > { %v1521_v60 = vpop.f32.mrf.mxu1  ;;  %8094 = vst [vmem:[#allocation35_spill] sm:$0xff] %v6958_v46  ;;  %v2339_v30 = vrot.slane %v2337_v5, 1 }
 0x1e5   : > { %v1660_v27 = vadd.f32 %v1659_v1, %v1521_v60  ;;  %v1664_v45 = vpop.f32.mrf.mxu2 }
 0x1e8   : > { %v1859_v41 = vpop.f32.mrf.mxu3 }
 0x1e9   : > { %v6945_v54 = vadd.f32 %v1859_v41, %v1660_v27  ;;  %v3055_v27 = vsel %vm2669_vm9, %v3052_v4, %v3054_v48  ;;  %v2070_v4 = vrot.slane %v6926_v2, 1 }
 0x1ea   : > { %5702 = vmatmul.msk.bf16.gmra.mxu2 %vm523_vm3, %v2335_v39 }
 0x1eb   : > { %v6966_v16 = vpop.f32.mrf.mxu0 }
 0x1ec   : > { %v1524_v32 = vpop.f32.mrf.mxu1  ;;  %8095 = vst [vmem:[#allocation36_spill] sm:$0xff] %v6966_v16 }
 0x1ed   : > { %v1663_v34 = vadd.f32 %v1662_v31, %v1524_v32  ;;  %v1667_v1 = vpop.f32.mrf.mxu2  ;;  %5720 = vmatmul.msk.bf16.gmra.mxu3 %vm523_vm3, %v2674_v47  ;;  %v2342_v31 = vrot.slane %v2340_v24, 2 }
 0x1ef   : > { %5682 = vmatmul.msk.bf16.gmra.mxu1 %vm523_vm3, %v2069_v51  ;;  %v2343_v47 = vor.u32 %v2342_v31, %v2339_v30  ;;  %v6971_v51 = vld [vmem:[#allocation2 + $0x30] sm:$0xff] }
 0x1f0   : > { %v1862_v36 = vpop.f32.mrf.mxu3  ;;  %v2346_v30 = vshrl.u32 %v6971_v51, 16  ;;  %v2349_v31 = vshll.u32 %v6971_v51, 16 }
 0x1f1   : > { %v6961_v60 = vadd.f32 %v1862_v36, %v1663_v34  ;;  %v2344_v34 = vsel %vm2300_vm10, %v2334_v22, %v2343_v47  ;;  %v3056_v22 = vrot.slane %v6743_v42, 2  ;;  %v2677_v42 = vrot.slane %v6948_v61, 2 }
 0x1f2   : > { %v2348_v2 = vrot.slane %v2346_v30, 1 }
 0x1f3   : > { %5817 = vmatmul.msk.bf16.gmra.mxu0 %vm523_vm3, %v3055_v27  ;;  %v2071_v27 = vsel %vm1703_vm4, %v2068_v15, %v2070_v4 }
 0x1f4   : > { %v1526_v41 = vpop.f32.mrf.mxu1 }
 0x1f5   : > { %v1665_v39 = vadd.f32 %v1664_v45, %v1526_v41  ;;  %v1669_v32 = vpop.f32.mrf.mxu2  ;;  %v2676_v45 = vsel %vm2669_vm9, %v2673_v10, %v2675_v21  ;;  %v3057_v10 = vsel %vm2669_vm9, %v3054_v48, %v3056_v22  ;;  %v2072_v48 = vrot.slane %v6948_v61, 1 }
 0x1f8   : > { %v1864_v13 = vpop.f32.mrf.mxu3 }
 0x1f9   : > { %v6968_v19 = vadd.f32 %v1864_v13, %v1665_v39  ;;  %v2351_v13 = vrot.slane %v2349_v31, 2  ;;  %v2678_v31 = vsel %vm2669_vm9, %v2675_v21, %v2677_v42 }
 0x1fa   : > { %5703 = vmatmul.msk.bf16.gmra.mxu2 %vm523_vm3, %v2344_v34 }
 0x1fb   : > { %v2352_v53 = vor.u32 %v2351_v13, %v2348_v2 }
 0x1fc   : > { %v1529_v5 = vpop.f32.mrf.mxu1 }
 0x1fd   : > { %v1668_v24 = vadd.f32 %v1667_v1, %v1529_v5  ;;  %v1672_v36 = vpop.f32.mrf.mxu2  ;;  %5721 = vmatmul.msk.bf16.gmra.mxu3 %vm523_vm3, %v2676_v45  ;;  %v6985_v1 = vpop.f32.mrf.mxu0 }
 0x1fe   : > { %8096 = vst [vmem:[#allocation37_spill] sm:$0xff] %v6985_v1 }
 0x1ff   : > { %5683 = vmatmul.msk.bf16.gmra.mxu1 %vm523_vm3, %v2071_v27  ;;  %v6992_v27 = vld [vmem:[#allocation2 + $0x38] sm:$0xff] }
 0x200   : > { %v1867_v41 = vpop.f32.mrf.mxu3  ;;  %v2355_v13 = vshrl.u32 %v6992_v27, 16 }
 0x201   : > { %v6982_v39 = vadd.f32 %v1867_v41, %v1668_v24  ;;  %v2353_v24 = vsel %vm2300_vm10, %v2343_v47, %v2352_v53  ;;  %v2073_v47 = vsel %vm1703_vm4, %v2070_v4, %v2072_v48 }
 0x202   : > { %v2357_v21 = vrot.slane %v2355_v13, 1 }
 0x203   : > { %5818 = vmatmul.msk.bf16.gmra.mxu0 %vm523_vm3, %v3057_v10  ;;  %v2358_v10 = vshll.u32 %v6992_v27, 16 }
 0x204   : > { %v1531_v34 = vpop.f32.mrf.mxu1 }
 0x205   : > { %v1670_v5 = vadd.f32 %v1669_v32, %v1531_v34  ;;  %v1674_v45 = vpop.f32.mrf.mxu2  ;;  %v6997_v41 = vpop.f32.mrf.mxu0  ;;  %v3058_v34 = vrot.slane %v6777_v29, 2  ;;  %v2679_v29 = vrot.slane %v6971_v51, 2 }
 0x206   : > { %8097 = vst [vmem:[#allocation38_spill] sm:$0xff] %v6997_v41 }
 0x208   : > { %v1869_v15 = vpop.f32.mrf.mxu3 }
 0x209   : > { %v6989_v37 = vadd.f32 %v1869_v15, %v1670_v5  ;;  %v2360_v15 = vrot.slane %v2358_v10, 2 }
 0x20a   : > { %5704 = vmatmul.msk.bf16.gmra.mxu2 %vm523_vm3, %v2353_v24 }
 0x20b   : > { %v2361_v20 = vor.u32 %v2360_v15, %v2357_v21 }
 0x20c   : > { %v1534_v30 = vpop.f32.mrf.mxu1 }
 0x20d   : > { %v1673_v32 = vadd.f32 %v1672_v36, %v1534_v30  ;;  %v1677_v2 = vpop.f32.mrf.mxu2  ;;  %5722 = vmatmul.msk.bf16.gmra.mxu3 %vm523_vm3, %v2678_v31  ;;  %v3059_v36 = vsel %vm2669_vm9, %v3056_v22, %v3058_v34  ;;  %v7009_v7 = vpop.f32.mrf.mxu0  ;;  %v2074_v22 = vrot.slane %v6971_v51, 1 }
 0x20e   : > { %8098 = vst [vmem:[#allocation39_spill] sm:$0xff] %v7009_v7 }
 0x20f   : > { %5684 = vmatmul.msk.bf16.gmra.mxu1 %vm523_vm3, %v2073_v47  ;;  %v7015_v47 = vld [vmem:[#allocation2 + $0x40] sm:$0xff] }
 0x210   : > { %v1872_v61 = vpop.f32.mrf.mxu3  ;;  %v2364_v21 = vshrl.u32 %v7015_v47, 16  ;;  %v2367_v15 = vshll.u32 %v7015_v47, 16 }
 0x211   : > { %v7005_v5 = vadd.f32 %v1872_v61, %v1673_v32  ;;  %v2362_v32 = vsel %vm2300_vm10, %v2352_v53, %v2361_v20  ;;  %v3060_v53 = vrot.slane %v6832_v28, 2  ;;  %v2681_v28 = vrot.slane %v6992_v27, 2 }
 0x213   : > { %5819 = vmatmul.msk.bf16.gmra.mxu0 %vm523_vm3, %v3059_v36  ;;  %v2075_v36 = vsel %vm1703_vm4, %v2072_v48, %v2074_v22 }
 0x214   : > { %v1536_v24 = vpop.f32.mrf.mxu1 }
 0x215   : > { %v1675_v30 = vadd.f32 %v1674_v45, %v1536_v24  ;;  %v1679_v31 = vpop.f32.mrf.mxu2  ;;  %v2680_v45 = vsel %vm2669_vm9, %v2677_v42, %v2679_v29  ;;  %v2366_v42 = vrot.slane %v2364_v21, 1 }
 0x218   : > { %v1874_v4 = vpop.f32.mrf.mxu3 }
 0x219   : > { %v7012_v41 = vadd.f32 %v1874_v4, %v1675_v30  ;;  %v7026_v30 = vpop.f32.mrf.mxu0  ;;  %v3061_v4 = vsel %vm2669_vm9, %v3058_v34, %v3060_v53 }
 0x21a   : > { %5705 = vmatmul.msk.bf16.gmra.mxu2 %vm523_vm3, %v2362_v32  ;;  %8099 = vst [vmem:[#allocation40_spill] sm:$0xff] %v7026_v30  ;;  %v7036_v30 = vld [vmem:[#allocation2 + $0x48] sm:$0xff] }
 0x21c   : > { %v1539_v13 = vpop.f32.mrf.mxu1 }
 0x21d   : > { %v1678_v10 = vadd.f32 %v1677_v2, %v1539_v13  ;;  %v1682_v61 = vpop.f32.mrf.mxu2  ;;  %5723 = vmatmul.msk.bf16.gmra.mxu3 %vm523_vm3, %v2680_v45  ;;  %v2369_v2 = vrot.slane %v2367_v15, 2 }
 0x21f   : > { %5685 = vmatmul.msk.bf16.gmra.mxu1 %vm523_vm3, %v2075_v36  ;;  %v2370_v7 = vor.u32 %v2369_v2, %v2366_v42  ;;  %v2373_v42 = vshrl.u32 %v7036_v30, 16  ;;  %v2376_v2 = vshll.u32 %v7036_v30, 16 }
 0x220   : > { %v1877_v24 = vpop.f32.mrf.mxu3 }
 0x221   : > { %v7028_v51 = vadd.f32 %v1877_v24, %v1678_v10  ;;  %v2371_v36 = vsel %vm2300_vm10, %v2361_v20, %v2370_v7  ;;  %v2076_v10 = vrot.slane %v6992_v27, 1  ;;  %v7040_v34 = vpop.f32.mrf.mxu0 }
 0x222   : > { %8100 = vst [vmem:[#allocation41_spill] sm:$0xff] %v7040_v34 }
 0x223   : > { %5820 = vmatmul.msk.bf16.gmra.mxu0 %vm523_vm3, %v3061_v4  ;;  %v2077_v20 = vsel %vm1703_vm4, %v2074_v22, %v2076_v10  ;;  %v3062_v4 = vrot.slane %v6875_v0, 2  ;;  %v2683_v0 = vrot.slane %v7015_v47, 2 }
 0x224   : > { %v1541_v32 = vpop.f32.mrf.mxu1 }
 0x225   : > { %v1680_v13 = vadd.f32 %v1679_v31, %v1541_v32  ;;  %v1684_v45 = vpop.f32.mrf.mxu2  ;;  %v2682_v31 = vsel %vm2669_vm9, %v2679_v29, %v2681_v28  ;;  %v3063_v29 = vsel %vm2669_vm9, %v3060_v53, %v3062_v4  ;;  %v2078_v53 = vrot.slane %v7015_v47, 1 }
 0x226   : > { %v3064_v47 = vrot.slane %v6867_v3, 2 }
 0x228   : > { %v1879_v48 = vpop.f32.mrf.mxu3 }
 0x229   : > { %v7033_v1 = vadd.f32 %v1879_v48, %v1680_v13  ;;  %v2375_v13 = vrot.slane %v2373_v42, 1  ;;  %v2378_v48 = vrot.slane %v2376_v2, 2  ;;  %v2684_v2 = vsel %vm2669_vm9, %v2681_v28, %v2683_v0 }
 0x22a   : > { %5706 = vmatmul.msk.bf16.gmra.mxu2 %vm523_vm3, %v2371_v36  ;;  %v7053_v36 = vpop.f32.mrf.mxu0 }
 0x22b   : > { %8101 = vst [vmem:[#allocation42_spill] sm:$0xff] %v7053_v36  ;;  %v2379_v34 = vor.u32 %v2378_v48, %v2375_v13 }
 0x22c   : > { %v1544_v21 = vpop.f32.mrf.mxu1 }
 0x22d   : > { %v1683_v15 = vadd.f32 %v1682_v61, %v1544_v21  ;;  %v1687_v24 = vpop.f32.mrf.mxu2  ;;  %5724 = vmatmul.msk.bf16.gmra.mxu3 %vm523_vm3, %v2682_v31 }
 0x22f   : > { %5686 = vmatmul.msk.bf16.gmra.mxu1 %vm523_vm3, %v2077_v20  ;;  %v7059_v20 = vld [vmem:[#allocation2 + $0x50] sm:$0xff] }
 0x230   : > { %v1882_v27 = vpop.f32.mrf.mxu3  ;;  %v2382_v13 = vshrl.u32 %v7059_v20, 16  ;;  %v2385_v48 = vshll.u32 %v7059_v20, 16 }
 0x231   : > { %v7049_v32 = vadd.f32 %v1882_v27, %v1683_v15  ;;  %v2380_v15 = vsel %vm2300_vm10, %v2370_v7, %v2379_v34 }
 0x232   : > { %v7068_v7 = vpop.f32.mrf.mxu0  ;;  %v2384_v28 = vrot.slane %v2382_v13, 1  ;;  %v7082_v13 = vld [vmem:[#allocation2 + $0x58] sm:$0xff] }
 0x233   : > { %5821 = vmatmul.msk.bf16.gmra.mxu0 %vm523_vm3, %v3063_v29  ;;  %v2079_v29 = vsel %vm1703_vm4, %v2076_v10, %v2078_v53  ;;  %8102 = vst [vmem:[#allocation43_spill] sm:$0xff] %v7068_v7 }
 0x234   : > { %v1546_v61 = vpop.f32.mrf.mxu1 }
 0x235   : > { %v1685_v21 = vadd.f32 %v1684_v45, %v1546_v61  ;;  %v1689_v31 = vpop.f32.mrf.mxu2 }
 0x238   : > { %v1884_v22 = vpop.f32.mrf.mxu3 }
 0x239   : > { %v7056_v16 = vadd.f32 %v1884_v22, %v1685_v21  ;;  %v3065_v22 = vsel %vm2669_vm9, %v3062_v4, %v3064_v47  ;;  %v3960_v4 = vld [vmem:[%s8045_s7] sm:$0x3] }
 0x23a   : > { %5707 = vmatmul.msk.bf16.gmra.mxu2 %vm523_vm3, %v2380_v15  ;;  %v2935_v15 = vld [vmem:[#allocation2 + $0xa0] sm:$0x3]  ;;  %v7077_v35 = vpop.f32.mrf.mxu0 }
 0x23b   : > { %v3011_v46 = vunpack.c.l.b16 %v2935_v15  ;;  %8103 = vst [vmem:[#allocation44_spill] sm:$0xff] %v7077_v35  ;;  %v2394_v15 = vshll.u32 %v7082_v13, 16 }
 0x23c   : > { %v1549_v42 = vpop.f32.mrf.mxu1 }
 0x23d   : > { %v1688_v27 = vadd.f32 %v1687_v24, %v1549_v42  ;;  %v1692_v45 = vpop.f32.mrf.mxu2  ;;  %5725 = vmatmul.msk.bf16.gmra.mxu3 %vm523_vm3, %v2684_v2  ;;  %v2387_v24 = vrot.slane %v2385_v48, 2  ;;  %v3030_v48 = vpack.c.b16 %v3011_v46, %v3011_v46 }
 0x23f   : > { %5687 = vmatmul.msk.bf16.gmra.mxu1 %vm523_vm3, %v2079_v29  ;;  %v2388_v10 = vor.u32 %v2387_v24, %v2384_v28  ;;  %v2685_v29 = vrot.slane %v7036_v30, 2 }
 0x240   : > { %v1887_v61 = vpop.f32.mrf.mxu3 }
 0x241   : > { %v7072_v21 = vadd.f32 %v1887_v61, %v1688_v27  ;;  %v2389_v27 = vsel %vm2300_vm10, %v2379_v34, %v2388_v10  ;;  %v4169_v61 = vsel %vm587_vm2, %v3960_v4, 0  ;;  %v2391_v34 = vshrl.u32 %v7082_v13, 16 }
 0x242   : > { %4178 = vmatpush.bf16.msra.mxu3 %v4169_v61 }
 0x243   : > { %5822 = vmatmul.msk.bf16.gmra.mxu0 %vm523_vm3, %v3065_v22 }
 0x244   : > { %v1551_v42 = vpop.f32.mrf.mxu1 }
 0x245   : > { %v1690_v2 = vadd.f32 %v1689_v31, %v1551_v42  ;;  %v1694_v36 = vpop.f32.mrf.mxu2  ;;  %v2080_v31 = vrot.slane %v7036_v30, 1  ;;  %v3959_v30 = vld [vmem:[%s8044_s6] sm:$0x3] }
 0x246   : > { %v4325_v4 = vsel %vm587_vm2, %v3959_v30, 0 }
 0x247   : > { %v2081_v42 = vsel %vm1703_vm4, %v2078_v53, %v2080_v31  ;;  %4334 = vmatpush.bf16.msra.mxu0 %v4325_v4 }
 0x248   : > { %v1889_v7 = vpop.f32.mrf.mxu3 }
 0x249   : > { %v7079_v3 = vadd.f32 %v1889_v7, %v1690_v2  ;;  %v2686_v7 = vsel %vm2669_vm9, %v2683_v0, %v2685_v29  ;;  %v3066_v2 = vrot.slane %v3030_v48, 2  ;;  %v2393_v0 = vrot.slane %v2391_v34, 1 }
 0x24a   : > { %5708 = vmatmul.msk.bf16.gmra.mxu2 %vm523_vm3, %v2389_v27 }
 0x24b   : > { %8104 = vst [vmem:[#allocation45_spill] sm:$0xff] %v7079_v3  ;;  %v3067_v61 = vsel %vm2669_vm9, %v3064_v47, %v3066_v2  ;;  %v2687_v3 = vrot.slane %v7059_v20, 2  ;;  %v2082_v47 = vrot.slane %v7059_v20, 1 }
 0x24c   : > { %v1554_v28 = vpop.f32.mrf.mxu1 }
 0x24d   : > { %v1693_v24 = vadd.f32 %v1692_v45, %v1554_v28  ;;  %v2537_v22 = vpop.f32.mrf.mxu2  ;;  %5726 = vmatmul.msk.bf16.gmra.mxu3 %vm523_vm3, %v2686_v7  ;;  %v2396_v45 = vrot.slane %v2394_v15, 2  ;;  %v7103_v28 = vpop.f32.mrf.mxu0  ;;  %v7110_v15 = vld [vmem:[#allocation2 + $0x60] sm:$0xff] }
 0x24e   : > { %8105 = vst [vmem:[#allocation46_spill] sm:$0xff] %v7103_v28  ;;  %v2689_v28 = vrot.slane %v7082_v13, 2 }
 0x24f   : > { %5688 = vmatmul.msk.bf16.gmra.mxu1 %vm523_vm3, %v2081_v42  ;;  %v2397_v42 = vor.u32 %v2396_v45, %v2393_v0  ;;  %v2400_v0 = vshrl.u32 %v7110_v15, 16 }
 0x250   : > { %v1892_v46 = vpop.f32.mrf.mxu3 }
 0x251   : > { %v7099_v27 = vadd.f32 %v1892_v46, %v1693_v24  ;;  %v2398_v34 = vsel %vm2300_vm10, %v2388_v10, %v2397_v42  ;;  %v2688_v46 = vsel %vm2669_vm9, %v2685_v29, %v2687_v3  ;;  %v2083_v10 = vsel %vm1703_vm4, %v2080_v31, %v2082_v47 }
 0x252   : > { %v2402_v20 = vrot.slane %v2400_v0, 1  ;;  %v2690_v0 = vsel %vm2669_vm9, %v2687_v3, %v2689_v28 }
 0x253   : > { %5823 = vmatmul.msk.bf16.gmra.mxu0 %vm523_vm3, %v3067_v61 }
 0x254   : > { %v1556_v53 = vpop.f32.mrf.mxu1 }
 0x255   : > { %v1695_v48 = vadd.f32 %v1694_v36, %v1556_v53  ;;  %v2539_v7 = vpop.f32.mrf.mxu2 }
 0x258   : > { %v1894_v35 = vpop.f32.mrf.mxu3 }
 0x259   : > { %v7107_v24 = vadd.f32 %v1894_v35, %v1695_v48  ;;  %v2403_v35 = vshll.u32 %v7110_v15, 16 }
 0x25a   : > { %5709 = vmatmul.msk.bf16.gmra.mxu2 %vm523_vm3, %v2398_v34 }
 0x25b   : > { %8106 = vst [vmem:[#allocation47_spill] sm:$0xff] %v7107_v24  ;;  %v2405_v53 = vrot.slane %v2403_v35, 2 }
 0x25c   : > { %v2168_v2 = vpop.f32.mrf.mxu1 }
 0x25d   : > { %v2258_v36 = vadd.f32 %v2168_v2, %v6577_v14  ;;  %v2542_v30 = vpop.f32.mrf.mxu2  ;;  %5727 = vmatmul.msk.bf16.gmra.mxu3 %vm523_vm3, %v2688_v46  ;;  %v2406_v34 = vor.u32 %v2405_v53, %v2402_v20 }
 0x25f   : > { %5689 = vmatmul.msk.bf16.gmra.mxu1 %vm523_vm3, %v2083_v10  ;;  %v2627_v45 = vadd.f32 %v2537_v22, %v2258_v36  ;;  %v2407_v31 = vsel %vm2300_vm10, %v2397_v42, %v2406_v34  ;;  %v7128_v10 = vld [vmem:[#allocation2 + $0x68] sm:$0xff]  ;;  %v2084_v22 = vrot.slane %v7082_v13, 1 }
 0x260   : > { %v2773_v4 = vpop.f32.mrf.mxu3 }
 0x261   : > { %v7121_v61 = vadd.f32 %v2773_v4, %v2627_v45  ;;  %v2412_v45 = vshll.u32 %v7128_v10, 16  ;;  %v2085_v42 = vsel %vm1703_vm4, %v2082_v47, %v2084_v22 }
 0x264   : > { %v2170_v29 = vpop.f32.mrf.mxu1 }
 0x265   : > { %v2259_v14 = vadd.f32 %v2170_v29, %v6590_v8  ;;  %v2544_v48 = vpop.f32.mrf.mxu2  ;;  %v2414_v29 = vrot.slane %v2412_v45, 2 }
 0x267   : > { %v2628_v2 = vadd.f32 %v2539_v7, %v2259_v14  ;;  %v2409_v7 = vshrl.u32 %v7128_v10, 16 }
 0x268   : > { %v2775_v46 = vpop.f32.mrf.mxu3 }
 0x269   : > { %v7125_v24 = vadd.f32 %v2775_v46, %v2628_v2  ;;  %v2411_v13 = vrot.slane %v2409_v7, 1 }
 0x26a   : > { %5710 = vmatmul.msk.bf16.gmra.mxu2 %vm523_vm3, %v2407_v31 }
 0x26b   : > { %v2415_v2 = vor.u32 %v2414_v29, %v2411_v13 }
 0x26c   : > { %v2173_v36 = vpop.f32.mrf.mxu1 }
 0x26d   : > { %v2260_v8 = vadd.f32 %v2173_v36, %v6606_v38  ;;  %v2547_v35 = vpop.f32.mrf.mxu2  ;;  %5728 = vmatmul.msk.bf16.gmra.mxu3 %vm523_vm3, %v2690_v0  ;;  %v2691_v36 = vrot.slane %v7110_v15, 2  ;;  %v2416_v47 = vsel %vm2300_vm10, %v2406_v34, %v2415_v2 }
 0x26f   : > { %5690 = vmatmul.msk.bf16.gmra.mxu1 %vm523_vm3, %v2085_v42  ;;  %v2629_v4 = vadd.f32 %v2542_v30, %v2260_v8  ;;  %v7146_v42 = vld [vmem:[#allocation2 + $0x70] sm:$0xff]  ;;  %v2086_v30 = vrot.slane %v7110_v15, 1  ;;  %v2692_v7 = vsel %vm2669_vm9, %v2689_v28, %v2691_v36 }
 0x270   : > { %v2778_v20 = vpop.f32.mrf.mxu3 }
 0x271   : > { %v7139_v53 = vadd.f32 %v2778_v20, %v2629_v4  ;;  %v2421_v4 = vshll.u32 %v7146_v42, 16  ;;  %v2087_v34 = vsel %vm1703_vm4, %v2084_v22, %v2086_v30 }
 0x274   : > { %v2175_v3 = vpop.f32.mrf.mxu1 }
 0x275   : > { %v2261_v38 = vadd.f32 %v2175_v3, %v6619_v25  ;;  %v2549_v14 = vpop.f32.mrf.mxu2  ;;  %v2423_v3 = vrot.slane %v2421_v4, 2 }
 0x277   : > { %v2630_v46 = vadd.f32 %v2544_v48, %v2261_v38  ;;  %v2418_v48 = vshrl.u32 %v7146_v42, 16 }
 0x278   : > { %v2780_v31 = vpop.f32.mrf.mxu3 }
 0x279   : > { %v7143_v0 = vadd.f32 %v2780_v31, %v2630_v46  ;;  %v2420_v15 = vrot.slane %v2418_v48, 1 }
 0x27a   : > { %5711 = vmatmul.msk.bf16.gmra.mxu2 %vm523_vm3, %v2416_v47 }
 0x27b   : > { %v2424_v46 = vor.u32 %v2423_v3, %v2420_v15 }
 0x27c   : > { %v2178_v8 = vpop.f32.mrf.mxu1 }
 0x27d   : > { %v2262_v25 = vadd.f32 %v2178_v8, %v6635_v11  ;;  %v2552_v45 = vpop.f32.mrf.mxu2  ;;  %5729 = vmatmul.msk.bf16.gmra.mxu3 %vm523_vm3, %v2692_v7  ;;  %v2693_v8 = vrot.slane %v7128_v10, 2  ;;  %v2425_v22 = vsel %vm2300_vm10, %v2415_v2, %v2424_v46 }
 0x27f   : > { %5691 = vmatmul.msk.bf16.gmra.mxu1 %vm523_vm3, %v2087_v34  ;;  %v2631_v20 = vadd.f32 %v2547_v35, %v2262_v25  ;;  %v7164_v34 = vld [vmem:[#allocation2 + $0x78] sm:$0xff]  ;;  %v2088_v35 = vrot.slane %v7128_v10, 1  ;;  %v2694_v48 = vsel %vm2669_vm9, %v2691_v36, %v2693_v8 }
 0x280   : > { %v2783_v13 = vpop.f32.mrf.mxu3 }
 0x281   : > { %v7157_v29 = vadd.f32 %v2783_v13, %v2631_v20  ;;  %v2430_v20 = vshll.u32 %v7164_v34, 16  ;;  %v2089_v2 = vsel %vm1703_vm4, %v2086_v30, %v2088_v35 }
 0x284   : > { %v2180_v28 = vpop.f32.mrf.mxu1 }
 0x285   : > { %v2263_v11 = vadd.f32 %v2180_v28, %v6653_v23  ;;  %v2554_v38 = vpop.f32.mrf.mxu2  ;;  %v2432_v28 = vrot.slane %v2430_v20, 2 }
 0x287   : > { %v2632_v31 = vadd.f32 %v2549_v14, %v2263_v11  ;;  %v2427_v14 = vshrl.u32 %v7164_v34, 16 }
 0x288   : > { %v2785_v47 = vpop.f32.mrf.mxu3 }
 0x289   : > { %v7161_v7 = vadd.f32 %v2785_v47, %v2632_v31  ;;  %v2429_v10 = vrot.slane %v2427_v14, 1 }
 0x28a   : > { %5712 = vmatmul.msk.bf16.gmra.mxu2 %vm523_vm3, %v2425_v22 }
 0x28b   : > { %v2433_v31 = vor.u32 %v2432_v28, %v2429_v10 }
 0x28c   : > { %v2183_v25 = vpop.f32.mrf.mxu1 }
 0x28d   : > { %v2264_v23 = vadd.f32 %v2183_v25, %v6669_v33  ;;  %v2557_v4 = vpop.f32.mrf.mxu2  ;;  %5730 = vmatmul.msk.bf16.gmra.mxu3 %vm523_vm3, %v2694_v48  ;;  %v2695_v25 = vrot.slane %v7146_v42, 2  ;;  %v2434_v30 = vsel %vm2300_vm10, %v2424_v46, %v2433_v31 }
 0x28f   : > { %5692 = vmatmul.msk.bf16.gmra.mxu1 %vm523_vm3, %v2089_v2  ;;  %v2633_v13 = vadd.f32 %v2552_v45, %v2264_v23  ;;  %v7182_v2 = vld [vmem:[#allocation2 + $0x80] sm:$0xff]  ;;  %v2090_v45 = vrot.slane %v7146_v42, 1  ;;  %v2696_v14 = vsel %vm2669_vm9, %v2693_v8, %v2695_v25 }
 0x290   : > { %v2788_v15 = vpop.f32.mrf.mxu3 }
 0x291   : > { %v7175_v3 = vadd.f32 %v2788_v15, %v2633_v13  ;;  %v2439_v13 = vshll.u32 %v7182_v2, 16  ;;  %v2091_v46 = vsel %vm1703_vm4, %v2088_v35, %v2090_v45 }
 0x294   : > { %v2185_v36 = vpop.f32.mrf.mxu1 }
 0x295   : > { %v2265_v33 = vadd.f32 %v2185_v36, %v6682_v9  ;;  %v2559_v11 = vpop.f32.mrf.mxu2  ;;  %v2441_v36 = vrot.slane %v2439_v13, 2 }
 0x297   : > { %v2634_v47 = vadd.f32 %v2554_v38, %v2265_v33  ;;  %v2436_v38 = vshrl.u32 %v7182_v2, 16 }
 0x298   : > { %v2790_v22 = vpop.f32.mrf.mxu3 }
 0x299   : > { %v7179_v48 = vadd.f32 %v2790_v22, %v2634_v47  ;;  %v2438_v42 = vrot.slane %v2436_v38, 1 }
 0x29a   : > { %5713 = vmatmul.msk.bf16.gmra.mxu2 %vm523_vm3, %v2434_v30 }
 0x29b   : > { %v2442_v47 = vor.u32 %v2441_v36, %v2438_v42 }
 0x29c   : > { %v2188_v23 = vpop.f32.mrf.mxu1 }
 0x29d   : > { %v2266_v9 = vadd.f32 %v2188_v23, %v6698_v6  ;;  %v2562_v20 = vpop.f32.mrf.mxu2  ;;  %5731 = vmatmul.msk.bf16.gmra.mxu3 %vm523_vm3, %v2696_v14  ;;  %v2697_v23 = vrot.slane %v7164_v34, 2  ;;  %v2443_v35 = vsel %vm2300_vm10, %v2433_v31, %v2442_v47 }
 0x29f   : > { %5693 = vmatmul.msk.bf16.gmra.mxu1 %vm523_vm3, %v2091_v46  ;;  %v2635_v15 = vadd.f32 %v2557_v4, %v2266_v9  ;;  %v7200_v46 = vld [vmem:[#allocation2 + $0x88] sm:$0xff]  ;;  %v2092_v4 = vrot.slane %v7164_v34, 1  ;;  %v2698_v38 = vsel %vm2669_vm9, %v2695_v25, %v2697_v23 }
 0x2a0   : > { %v2793_v10 = vpop.f32.mrf.mxu3 }
 0x2a1   : > { %v7193_v28 = vadd.f32 %v2793_v10, %v2635_v15  ;;  %v2448_v15 = vshll.u32 %v7200_v46, 16  ;;  %v2093_v31 = vsel %vm1703_vm4, %v2090_v45, %v2092_v4 }
 0x2a4   : > { %v2190_v8 = vpop.f32.mrf.mxu1 }
 0x2a5   : > { %v2267_v6 = vadd.f32 %v2190_v8, %v6711_v59  ;;  %v2564_v33 = vpop.f32.mrf.mxu2  ;;  %v2450_v8 = vrot.slane %v2448_v15, 2 }
 0x2a7   : > { %v2636_v22 = vadd.f32 %v2559_v11, %v2267_v6  ;;  %v2445_v11 = vshrl.u32 %v7200_v46, 16 }
 0x2a8   : > { %v2795_v30 = vpop.f32.mrf.mxu3 }
 0x2a9   : > { %v7197_v14 = vadd.f32 %v2795_v30, %v2636_v22  ;;  %v2447_v34 = vrot.slane %v2445_v11, 1 }
 0x2aa   : > { %5714 = vmatmul.msk.bf16.gmra.mxu2 %vm523_vm3, %v2443_v35 }
 0x2ab   : > { %v2451_v22 = vor.u32 %v2450_v8, %v2447_v34 }
 0x2ac   : > { %v2193_v9 = vpop.f32.mrf.mxu1 }
 0x2ad   : > { %v2268_v59 = vadd.f32 %v2193_v9, %v6727_v52  ;;  %v2567_v13 = vpop.f32.mrf.mxu2  ;;  %5732 = vmatmul.msk.bf16.gmra.mxu3 %vm523_vm3, %v2698_v38  ;;  %v2699_v9 = vrot.slane %v7182_v2, 2  ;;  %v2452_v45 = vsel %vm2300_vm10, %v2442_v47, %v2451_v22 }
 0x2af   : > { %5694 = vmatmul.msk.bf16.gmra.mxu1 %vm523_vm3, %v2093_v31  ;;  %v2637_v10 = vadd.f32 %v2562_v20, %v2268_v59  ;;  %v7218_v31 = vld [vmem:[#allocation2 + $0x90] sm:$0xff]  ;;  %v2094_v20 = vrot.slane %v7182_v2, 1  ;;  %v2700_v11 = vsel %vm2669_vm9, %v2697_v23, %v2699_v9 }
 0x2b0   : > { %v2798_v42 = vpop.f32.mrf.mxu3 }
 0x2b1   : > { %v7211_v36 = vadd.f32 %v2798_v42, %v2637_v10  ;;  %v2457_v10 = vshll.u32 %v7218_v31, 16  ;;  %v2095_v47 = vsel %vm1703_vm4, %v2092_v4, %v2094_v20  ;;  %v2701_v4 = vrot.slane %v7200_v46, 2 }
 0x2b4   : > { %v2195_v25 = vpop.f32.mrf.mxu1 }
 0x2b5   : > { %v2269_v52 = vadd.f32 %v2195_v25, %v6740_v58  ;;  %v2569_v6 = vpop.f32.mrf.mxu2  ;;  %v2459_v25 = vrot.slane %v2457_v10, 2 }
 0x2b7   : > { %v2638_v30 = vadd.f32 %v2564_v33, %v2269_v52  ;;  %v2454_v33 = vshrl.u32 %v7218_v31, 16  ;;  %v2294_v52 = vld [vmem:[#allocation2 + $0x98] sm:$0x3] }
 0x2b8   : > { %v2800_v35 = vpop.f32.mrf.mxu3 }
 0x2b9   : > { %v7215_v38 = vadd.f32 %v2800_v35, %v2638_v30  ;;  %v2456_v2 = vrot.slane %v2454_v33, 1 }
 0x2ba   : > { %5715 = vmatmul.msk.bf16.gmra.mxu2 %vm523_vm3, %v2452_v45 }
 0x2bb   : > { %v2460_v35 = vor.u32 %v2459_v25, %v2456_v2 }
 0x2bc   : > { %v2198_v59 = vpop.f32.mrf.mxu1 }
 0x2bd   : > { %v2270_v58 = vadd.f32 %v2198_v59, %v6756_v17  ;;  %v2572_v15 = vpop.f32.mrf.mxu2  ;;  %5733 = vmatmul.msk.bf16.gmra.mxu3 %vm523_vm3, %v2700_v11  ;;  %v2298_v59 = vunpack.c.l.b16 %v2294_v52 }
 0x2bf   : > { %5695 = vmatmul.msk.bf16.gmra.mxu1 %vm523_vm3, %v2095_v47  ;;  %v2639_v42 = vadd.f32 %v2567_v13, %v2270_v58  ;;  %v2461_v13 = vsel %vm2300_vm10, %v2451_v22, %v2460_v35  ;;  %v2096_v58 = vrot.slane %v7200_v46, 1  ;;  %v2299_v33 = vpack.c.b16 %v2298_v59, %v2298_v59 }
 0x2c0   : > { %v2803_v34 = vpop.f32.mrf.mxu3  ;;  %v2702_v47 = vsel %vm2669_vm9, %v2699_v9, %v2701_v4 }
 0x2c1   : > { %v7229_v8 = vadd.f32 %v2803_v34, %v2639_v42  ;;  %v2463_v2 = vshrl.u32 %v2299_v33, 16  ;;  %v2466_v22 = vshll.u32 %v2299_v33, 16 }
 0x2c3   : > { %v2465_v46 = vrot.slane %v2463_v2, 1  ;;  %v2468_v52 = vrot.slane %v2466_v22, 2 }
 0x2c4   : > { %v2200_v23 = vpop.f32.mrf.mxu1 }
 0x2c5   : > { %v2271_v17 = vadd.f32 %v2200_v23, %v6771_v18  ;;  %v2574_v30 = vpop.f32.mrf.mxu2 }
 0x2c7   : > { %v7232_v45 = vadd.f32 %v2569_v6, %v2271_v17  ;;  %v2097_v6 = vsel %vm1703_vm4, %v2094_v20, %v2096_v58  ;;  %v2703_v20 = vrot.slane %v7218_v31, 2 }
 0x2c8   : > { %v7234_v11 = vpop.f32.mrf.mxu3 }
 0x2ca   : > { %5716 = vmatmul.msk.bf16.gmra.mxu2 %vm523_vm3, %v2461_v13  ;;  %v2469_v13 = vor.u32 %v2468_v52, %v2465_v46 }
 0x2cc   : > { %v2203_v10 = vpop.f32.mrf.mxu1 }
 0x2cd   : > { %v2272_v18 = vadd.f32 %v2203_v10, %v6790_v26  ;;  %v2577_v42 = vpop.f32.mrf.mxu2  ;;  %5734 = vmatmul.msk.bf16.gmra.mxu3 %vm523_vm3, %v2702_v47  ;;  %v2098_v47 = vrot.slane %v7218_v31, 1 }
 0x2cf   : > { %5696 = vmatmul.msk.bf16.gmra.mxu1 %vm523_vm3, %v2097_v6  ;;  %v2641_v34 = vadd.f32 %v2572_v15, %v2272_v18  ;;  %v2470_v15 = vsel %vm2300_vm10, %v2460_v35, %v2469_v13  ;;  %v2704_v6 = vsel %vm2669_vm9, %v2701_v4, %v2703_v20  ;;  %v1969_v35 = vld [vmem:[#allocation2 + $0x98] sm:$0x1] }
 0x2d0   : > { %v2808_v25 = vpop.f32.mrf.mxu3  ;;  %v2045_v52 = vunpack.c.l.b16 %v1969_v35 }
 0x2d1   : > { %v7245_v23 = vadd.f32 %v2808_v25, %v2641_v34 }
 0x2d4   : > { %v2205_v17 = vpop.f32.mrf.mxu1 }
 0x2d5   : > { %v2273_v9 = vadd.f32 %v2205_v17, %v6817_v43  ;;  %v2579_v59 = vpop.f32.mrf.mxu2 }
 0x2d7   : > { %v7248_v26 = vadd.f32 %v2574_v30, %v2273_v9  ;;  %v2099_v30 = vsel %vm1703_vm4, %v2096_v58, %v2098_v47  ;;  %v2064_v9 = vpack.c.b16 %v2045_v52, %v2045_v52  ;;  %v2705_v58 = vrot.slane %v2299_v33, 2 }
 0x2d8   : > { %v7250_v10 = vpop.f32.mrf.mxu3 }
 0x2da   : > { %5717 = vmatmul.msk.bf16.gmra.mxu2 %vm523_vm3, %v2470_v15  ;;  %v2100_v15 = vrot.slane %v2064_v9, 1 }
 0x2dc   : > { %v2208_v18 = vpop.f32.mrf.mxu1 }
 0x2dd   : > { %v2274_v34 = vadd.f32 %v2208_v18, %v6853_v56  ;;  %v2582_v43 = vpop.f32.mrf.mxu2  ;;  %5735 = vmatmul.msk.bf16.gmra.mxu3 %vm523_vm3, %v2704_v6 }
 0x2df   : > { %5697 = vmatmul.msk.bf16.gmra.mxu1 %vm523_vm3, %v2099_v30  ;;  %v2643_v2 = vadd.f32 %v2577_v42, %v2274_v34  ;;  %v2706_v42 = vsel %vm2669_vm9, %v2703_v20, %v2705_v58 }
 0x2e0   : > { %v2813_v22 = vpop.f32.mrf.mxu3 }
 0x2e1   : > { %v7261_v25 = vadd.f32 %v2813_v22, %v2643_v2 }
 0x2e4   : > { %v2210_v46 = vpop.f32.mrf.mxu1 }
 0x2e5   : > { %v2275_v31 = vadd.f32 %v2210_v46, %v6877_v57  ;;  %v2584_v17 = vpop.f32.mrf.mxu2  ;;  %v2101_v57 = vsel %vm1703_vm4, %v2098_v47, %v2100_v15 }
 0x2e7   : > { %v7264_v4 = vadd.f32 %v2579_v59, %v2275_v31 }
 0x2e8   : > { %v7266_v56 = vpop.f32.mrf.mxu3 }
 0x2ea   : > { %5844 = vmatmul.msk.bf16.vlgmr.msrb.gmra.mxu2 %vm523_vm3, %v6419_v40 }
 0x2ec   : > { %v2213_v13 = vpop.f32.mrf.mxu1 }
 0x2ed   : > { %v2276_v18 = vadd.f32 %v2213_v13, %v6905_v62  ;;  %v2587_v6 = vpop.f32.mrf.mxu2  ;;  %5736 = vmatmul.msk.bf16.gmra.mxu3 %vm523_vm3, %v2706_v42 }
 0x2ef   : > { %5698 = vmatmul.msk.bf16.gmra.mxu1 %vm523_vm3, %v2101_v57  ;;  %v2645_v59 = vadd.f32 %v2582_v43, %v2276_v18 }
 0x2f0   : > { %v2818_v34 = vpop.f32.mrf.mxu3 }
 0x2f1   : > { %v7275_v30 = vadd.f32 %v2818_v34, %v2645_v59 }
 0x2f4   : > { %v2215_v2 = vpop.f32.mrf.mxu1 }
 0x2f5   : > { %v2277_v40 = vadd.f32 %v2215_v2, %v6923_v44  ;;  %v2589_v33 = vpop.f32.mrf.mxu2 }
 0x2f7   : > { %v7278_v22 = vadd.f32 %v2584_v17, %v2277_v40  ;;  %v8108_v40 = vld [vmem:[#allocation3_spill] sm:$0xff] }
 0x2f8   : > { %v7280_v20 = vpop.f32.mrf.mxu3 }
 0x2fa   : > { %5845 = vmatmul.msk.bf16.gmra.mxu2 %vm523_vm3, %v6447_v50 }
 0x2fc   : > { %v2218_v62 = vpop.f32.mrf.mxu1 }
 0x2fd   : > { %v2278_v47 = vadd.f32 %v2218_v62, %v6938_v49  ;;  %v2592_v35 = vpop.f32.mrf.mxu2 }
 0x2ff   : > { %5825 = vmatmul.msk.bf16.vlgmr.msrb.gmra.mxu1 %vm523_vm3, %v6426_v63  ;;  %v2647_v43 = vadd.f32 %v2587_v6, %v2278_v47 }
 0x300   : > { %v2823_v46 = vpop.f32.mrf.mxu3 }
 0x301   : > { %v7287_v52 = vadd.f32 %v2823_v46, %v2647_v43 }
 0x304   : > { %v2220_v44 = vpop.f32.mrf.mxu1 }
 0x305   : > { %v2279_v31 = vadd.f32 %v2220_v44, %v6945_v54  ;;  %v2594_v17 = vpop.f32.mrf.mxu2 }
 0x307   : > { %v7290_v9 = vadd.f32 %v2589_v33, %v2279_v31 }
 0x308   : > { %v7292_v58 = vpop.f32.mrf.mxu3 }
 0x30a   : > { %5846 = vmatmul.msk.bf16.gmra.mxu2 %vm523_vm3, %v6471_v12  ;;  %v8107_v12 = vld [vmem:[#allocation4_spill] sm:$0xff] }
 0x30c   : > { %v2223_v50 = vpop.f32.mrf.mxu1 }
 0x30d   : > { %v2280_v49 = vadd.f32 %v2223_v50, %v6961_v60  ;;  %v2597_v13 = vpop.f32.mrf.mxu2 }
 0x30f   : > { %5826 = vmatmul.msk.bf16.gmra.mxu1 %vm523_vm3, %v6454_v55  ;;  %v2649_v63 = vadd.f32 %v2592_v35, %v2280_v49  ;;  %v7309_v55 = vpop.f32.mrf.mxu0 }
 0x310   : > { %v2828_v42 = vpop.f32.mrf.mxu3 }
 0x311   : > { %v7299_v15 = vadd.f32 %v2828_v42, %v2649_v63 }
 0x314   : > { %v2225_v54 = vpop.f32.mrf.mxu1 }
 0x315   : > { %v2281_v18 = vadd.f32 %v2225_v54, %v6968_v19  ;;  %v2599_v6 = vpop.f32.mrf.mxu2 }
 0x317   : > { %v7302_v57 = vadd.f32 %v2594_v17, %v2281_v18  ;;  %v7318_v44 = vpop.f32.mrf.mxu0 }
 0x318   : > { %v7304_v59 = vpop.f32.mrf.mxu3 }
 0x31a   : > { %5847 = vmatmul.msk.bf16.gmra.mxu2 %vm523_vm3, %v8107_v12 }
 0x31c   : > { %v2228_v60 = vpop.f32.mrf.mxu1 }
 0x31d   : > { %v2282_v34 = vadd.f32 %v2228_v60, %v6982_v39  ;;  %v2602_v2 = vpop.f32.mrf.mxu2  ;;  %v8109_v39 = vld [vmem:[#allocation6_spill] sm:$0xff] }
 0x31f   : > { %5827 = vmatmul.msk.bf16.gmra.mxu1 %vm523_vm3, %v8108_v40  ;;  %v2651_v33 = vadd.f32 %v2597_v13, %v2282_v34  ;;  %v8110_v13 = vld [vmem:[#allocation5_spill] sm:$0xff]  ;;  %v7329_v54 = vpop.f32.mrf.mxu0  ;;  %v8114_v40 = vld [vmem:[#allocation8_spill] sm:$0xff] }
 0x320   : > { %v2833_v62 = vpop.f32.mrf.mxu3 }
 0x321   : > { %v7313_v19 = vadd.f32 %v2833_v62, %v2651_v33 }
 0x324   : > { %v2230_v47 = vpop.f32.mrf.mxu1 }
 0x325   : > { %v2283_v35 = vadd.f32 %v2230_v47, %v6989_v37  ;;  %v2604_v43 = vpop.f32.mrf.mxu2  ;;  %v8115_v47 = vld [vmem:[#allocation7_spill] sm:$0xff] }
 0x327   : > { %v7316_v46 = vadd.f32 %v2599_v6, %v2283_v35 }
 0x328   : > { %v7320_v31 = vpop.f32.mrf.mxu3 }
 0x32a   : > { %5848 = vmatmul.msk.bf16.gmra.mxu2 %vm523_vm3, %v8109_v39 }
 0x32c   : > { %v2233_v17 = vpop.f32.mrf.mxu1 }
 0x32d   : > { %v2284_v50 = vadd.f32 %v2233_v17, %v7005_v5  ;;  %v2607_v49 = vpop.f32.mrf.mxu2  ;;  %v7338_v5 = vpop.f32.mrf.mxu0 }
 0x32f   : > { %5828 = vmatmul.msk.bf16.gmra.mxu1 %vm523_vm3, %v8110_v13  ;;  %v2653_v63 = vadd.f32 %v2602_v2, %v2284_v50 }
 0x330   : > { %v2838_v42 = vpop.f32.mrf.mxu3 }
 0x331   : > { %v7327_v37 = vadd.f32 %v2838_v42, %v2653_v63 }
 0x333   : > { %8111 = vst [vmem:[#allocation4_spill] sm:$0xff] %v7327_v37  ;;  %v8127_v37 = vld [vmem:[#allocation45_spill] sm:$0xff] }
 0x334   : > { %v2235_v18 = vpop.f32.mrf.mxu1 }
 0x335   : > { %v2285_v6 = vadd.f32 %v2235_v18, %v7012_v41  ;;  %v2609_v12 = vpop.f32.mrf.mxu2  ;;  %v7346_v13 = vpop.f32.mrf.mxu0 }
 0x337   : > { %v7332_v60 = vadd.f32 %v2604_v43, %v2285_v6 }
 0x338   : > { %v7334_v34 = vpop.f32.mrf.mxu3 }
 0x339   : > { %8112 = vst [vmem:[#allocation3_spill] sm:$0xff] %v7332_v60 }
 0x33a   : > { %8113 = vst [vmem:[#allocation6_spill] sm:$0xff] %v7334_v34  ;;  %5849 = vmatmul.msk.bf16.gmra.mxu2 %vm523_vm3, %v8114_v40  ;;  %v8120_v40 = vld [vmem:[#allocation9_spill] sm:$0xff] }
 0x33c   : > { %v2238_v33 = vpop.f32.mrf.mxu1 }
 0x33d   : > { %v2286_v2 = vadd.f32 %v2238_v33, %v7028_v51  ;;  %v2612_v62 = vpop.f32.mrf.mxu2  ;;  %v8119_v51 = vld [vmem:[#allocation10_spill] sm:$0xff]  ;;  %v7357_v33 = vpop.f32.mrf.mxu0 }
 0x33f   : > { %5829 = vmatmul.msk.bf16.gmra.mxu1 %vm523_vm3, %v8115_v47  ;;  %v2655_v35 = vadd.f32 %v2607_v49, %v2286_v2 }
 0x340   : > { %v2843_v39 = vpop.f32.mrf.mxu3 }
 0x341   : > { %v7343_v41 = vadd.f32 %v2843_v39, %v2655_v35 }
 0x343   : > { %8116 = vst [vmem:[#allocation5_spill] sm:$0xff] %v7343_v41 }
 0x344   : > { %v2240_v43 = vpop.f32.mrf.mxu1 }
 0x345   : > { %v2287_v17 = vadd.f32 %v2240_v43, %v7033_v1  ;;  %v2614_v50 = vpop.f32.mrf.mxu2 }
 0x347   : > { %v7348_v63 = vadd.f32 %v2609_v12, %v2287_v17 }
 0x348   : > { %v7350_v42 = vpop.f32.mrf.mxu3 }
 0x349   : > { %8117 = vst [vmem:[#allocation8_spill] sm:$0xff] %v7348_v63 }
 0x34a   : > { %8118 = vst [vmem:[#allocation7_spill] sm:$0xff] %v7350_v42  ;;  %5850 = vmatmul.msk.bf16.gmra.mxu2 %vm523_vm3, %v8119_v51  ;;  %v6003_v51 = vld [vmem:[%s6123_s12 + $0x8] sm:$0xff]  ;;  %v6004_v42 = vld [vmem:[%s6123_s12 + $0x10] sm:$0xff] }
 0x34b   : > { %v3969_v63 = vshrl.u32 %v6004_v42, 16 }
 0x34c   : > { %v2243_v18 = vpop.f32.mrf.mxu1 }
 0x34d   : > { %v2288_v49 = vadd.f32 %v2243_v18, %v7049_v32  ;;  %v2617_v6 = vpop.f32.mrf.mxu2  ;;  %v3962_v32 = vshrl.u32 %v6003_v51, 16  ;;  %v3965_v18 = vshll.u32 %v6003_v51, 16 }
 0x34f   : > { %5830 = vmatmul.msk.bf16.gmra.mxu1 %vm523_vm3, %v8120_v40  ;;  %v2657_v1 = vadd.f32 %v2612_v62, %v2288_v49  ;;  %v3972_v40 = vshll.u32 %v6004_v42, 16  ;;  %v7368_v62 = vpop.f32.mrf.mxu0  ;;  %v8124_v49 = vld [vmem:[#allocation12_spill] sm:$0xff] }
 0x350   : > { %v2848_v2 = vpop.f32.mrf.mxu3 }
 0x351   : > { %v7359_v12 = vadd.f32 %v2848_v2, %v2657_v1 }
 0x353   : > { %8121 = vst [vmem:[#allocation10_spill] sm:$0xff] %v7359_v12 }
 0x354   : > { %v2245_v47 = vpop.f32.mrf.mxu1 }
 0x355   : > { %v2289_v35 = vadd.f32 %v2245_v47, %v7056_v16  ;;  %v2619_v39 = vpop.f32.mrf.mxu2  ;;  %v3964_v47 = vrot.slane %v3962_v32, 1 }
 0x357   : > { %v7362_v43 = vadd.f32 %v2614_v50, %v2289_v35  ;;  %v3967_v50 = vrot.slane %v3965_v18, 2  ;;  %v3971_v35 = vrot.slane %v3969_v63, 1  ;;  %v7377_v60 = vpop.f32.mrf.mxu0 }
 0x358   : > { %v7364_v17 = vpop.f32.mrf.mxu3 }
 0x359   : > { %8122 = vst [vmem:[#allocation9_spill] sm:$0xff] %v7362_v43  ;;  %v3974_v43 = vrot.slane %v3972_v40, 2  ;;  %v3968_v41 = vor.u32 %v3967_v50, %v3964_v47  ;;  %v8131_v50 = vld [vmem:[#allocation13_spill] sm:$0xff] }
 0x35a   : > { %8123 = vst [vmem:[#allocation48_spill] sm:$0xff] %v7364_v17  ;;  %5851 = vmatmul.msk.bf16.gmra.mxu2 %vm523_vm3, %v8124_v49  ;;  %v8125_v17 = vld [vmem:[#allocation11_spill] sm:$0xff] }
 0x35b   : > { %v3975_v34 = vor.u32 %v3974_v43, %v3971_v35 }
 0x35c   : > { %v2248_v1 = vpop.f32.mrf.mxu1 }
 0x35d   : > { %v2290_v2 = vadd.f32 %v2248_v1, %v7072_v21  ;;  %v2622_v16 = vpop.f32.mrf.mxu2  ;;  %v3976_v32 = vsel %vm2300_vm10, %v3968_v41, %v3975_v34 }
 0x35e   : > { %5862 = vmatmul.msk.bf16.vlgmr.msra.gmra.mxu3 %vm523_vm3, %v3976_v32 }
 0x35f   : > { %5831 = vmatmul.msk.bf16.gmra.mxu1 %vm523_vm3, %v8125_v17  ;;  %v2659_v51 = vadd.f32 %v2617_v6, %v2290_v2  ;;  %v8130_v6 = vld [vmem:[#allocation14_spill] sm:$0xff] }
 0x360   : > { %v2853_v12 = vpop.f32.mrf.mxu3 }
 0x361   : > { %v7375_v42 = vadd.f32 %v2853_v12, %v2659_v51  ;;  %v6005_v12 = vld [vmem:[%s6123_s12 + $0x18] sm:$0xff] }
 0x362   : > { %v3977_v17 = vshrl.u32 %v6005_v12, 16  ;;  %v3980_v43 = vshll.u32 %v6005_v12, 16 }
 0x363   : > { %8126 = vst [vmem:[#allocation12_spill] sm:$0xff] %v7375_v42 }
 0x364   : > { %v2250_v49 = vpop.f32.mrf.mxu1  ;;  %v3982_v35 = vrot.slane %v3980_v43, 2  ;;  %v6006_v43 = vld [vmem:[%s6123_s12 + $0x20] sm:$0xff] }
 0x365   : > { %v2291_v21 = vadd.f32 %v2250_v49, %v8127_v37  ;;  %v2624_v1 = vpop.f32.mrf.mxu2  ;;  %v7390_v37 = vpop.f32.mrf.mxu0 }
 0x367   : > { %v7381_v63 = vadd.f32 %v2619_v39, %v2291_v21  ;;  %v3979_v39 = vrot.slane %v3977_v17, 1 }
 0x368   : > { %v7384_v18 = vpop.f32.mrf.mxu3 }
 0x369   : > { %8128 = vst [vmem:[#allocation11_spill] sm:$0xff] %v7381_v63  ;;  %v3983_v32 = vor.u32 %v3982_v35, %v3979_v39 }
 0x36a   : > { %8129 = vst [vmem:[#allocation45_spill] sm:$0xff] %v7384_v18  ;;  %5852 = vmatmul.msk.bf16.gmra.mxu2 %vm523_vm3, %v8130_v6  ;;  %v8133_v6 = vld [vmem:[#allocation47_spill] sm:$0xff] }
 0x36c   : > { %v2253_v40 = vpop.f32.mrf.mxu1 }
 0x36d   : > { %v2292_v2 = vadd.f32 %v2253_v40, %v7099_v27  ;;  %v3739_v47 = vpop.f32.mrf.mxu2  ;;  %v3984_v27 = vsel %vm2300_vm10, %v3975_v34, %v3983_v32  ;;  %v7401_v63 = vpop.f32.mrf.mxu0  ;;  %v7411_v34 = vld [vmem:[%s8043_s5] ss:$0 sm:$0xff] }
 0x36e   : > { %5863 = vmatmul.msk.bf16.gmra.mxu3 %vm523_vm3, %v3984_v27 }
 0x36f   : > { %5832 = vmatmul.msk.bf16.gmra.mxu1 %vm523_vm3, %v8131_v50  ;;  %v2661_v41 = vadd.f32 %v2622_v16, %v2292_v2  ;;  %v8135_v50 = vld [vmem:[#allocation16_spill] sm:$0xff]  ;;  %v8136_v16 = vld [vmem:[#allocation34_spill] sm:$0xff]  ;;  %v3985_v2 = vshrl.u32 %v6006_v43, 16 }
 0x370   : > { %v2858_v51 = vpop.f32.mrf.mxu3  ;;  %v3224_v17 = vadd.f32 %v8136_v16, %v7121_v61  ;;  %v8138_v16 = vld [vmem:[#allocation35_spill] sm:$0xff] }
 0x371   : > { %v7394_v49 = vadd.f32 %v2858_v51, %v2661_v41  ;;  %v3988_v41 = vshll.u32 %v6006_v43, 16 }
 0x373   : > { %8132 = vst [vmem:[#allocation14_spill] sm:$0xff] %v7394_v49 }
 0x374   : > { %v2255_v21 = vpop.f32.mrf.mxu1 }
 0x375   : > { %v2293_v12 = vadd.f32 %v2255_v21, %v8133_v6  ;;  %v3741_v18 = vpop.f32.mrf.mxu2  ;;  %v8137_v21 = vld [vmem:[#allocation15_spill] sm:$0xff]  ;;  %v3987_v6 = vrot.slane %v3985_v2, 1  ;;  %v7416_v61 = vpop.f32.mrf.mxu0 }
 0x377   : > { %v7398_v40 = vadd.f32 %v2624_v1, %v2293_v12  ;;  %v3990_v12 = vrot.slane %v3988_v41, 2 }
 0x379   : > { %8134 = vst [vmem:[#allocation13_spill] sm:$0xff] %v7398_v40 }
 0x37a   : > { %5853 = vmatmul.msk.bf16.gmra.mxu2 %vm523_vm3, %v8135_v50 }
 0x37c   : > { %v3503_v39 = vpop.f32.mrf.mxu1 }
 0x37d   : > { %v3593_v35 = vadd.f32 %v3503_v39, %v3224_v17  ;;  %v3744_v1 = vpop.f32.mrf.mxu2  ;;  %v3225_v17 = vadd.f32 %v8138_v16, %v7125_v24  ;;  %v3991_v39 = vor.u32 %v3990_v12, %v3987_v6 }
 0x37f   : > { %v3829_v51 = vadd.f32 %v3739_v47, %v3593_v35  ;;  %5833 = vmatmul.msk.bf16.gmra.mxu1 %vm523_vm3, %v8137_v21  ;;  %v3992_v2 = vsel %vm2300_vm10, %v3983_v32, %v3991_v39  ;;  %v6007_v21 = vld [vmem:[%s6123_s12 + $0x28] sm:$0xff]  ;;  %v7428_v32 = vpop.f32.mrf.mxu0 }
 0x380   : > { %5864 = vmatmul.msk.bf16.gmra.mxu3 %vm523_vm3, %v3992_v2  ;;  %v3993_v6 = vshrl.u32 %v6007_v21, 16 }
 0x381   : > { %v3869_v27 = vadd.f32 %v7411_v34, %v3829_v51  ;;  %v8139_v51 = vld [vmem:[#allocation18_spill] sm:$0xff] }
 0x383   : > { %v3905_v50 = vmax.f32 %v3869_v27, 0.0  ;;  %v8140_v27 = vld [vmem:[#allocation36_spill] sm:$0xff] }
 0x384   : > { %v3505_v43 = vpop.f32.mrf.mxu1  ;;  %v3226_v16 = vadd.f32 %v8140_v27, %v7139_v53 }
 0x385   : > { %v4538_v40 = vrot.slane %v3905_v50, 2  ;;  %v4539_v49 = vrot.slane %v3905_v50, 4  ;;  %v4540_v42 = vrot.slane %v3905_v50, 6  ;;  %4634 = vst [vmem:[#allocation1] ss:$4 sm:$0xff] %v3905_v50  ;;  %v3594_v47 = vadd.f32 %v3505_v43, %v3225_v17  ;;  %v3746_v35 = vpop.f32.mrf.mxu2 }
 0x386   : > { %v3996_v17 = vshll.u32 %v6007_v21, 16 }
 0x387   : > { %4636 = vst [vmem:[#allocation1 + $0x1] ss:$4 sm:$0xff] %v4538_v40  ;;  %v3830_v41 = vadd.f32 %v3741_v18, %v3594_v47 }
 0x388   : > { %4638 = vst [vmem:[#allocation1 + $0x2] ss:$4 sm:$0xff] %v4539_v49  ;;  %v3998_v53 = vrot.slane %v3996_v17, 2 }
 0x389   : > { %4640 = vst [vmem:[#allocation1 + $0x3] ss:$4 sm:$0xff] %v4540_v42  ;;  %v3870_v24 = vadd.f32 %v7411_v34, %v3830_v41  ;;  %v3995_v41 = vrot.slane %v3993_v6, 1 }
 0x38a   : > { %5854 = vmatmul.msk.bf16.gmra.mxu2 %vm523_vm3, %v8139_v51 }
 0x38b   : > { %v3906_v12 = vmax.f32 %v3870_v24, 0.0  ;;  %v8141_v24 = vld [vmem:[#allocation17_spill] sm:$0xff] }
 0x38c   : > { %v3508_v18 = vpop.f32.mrf.mxu1 }
 0x38d   : > { %v4541_v40 = vrot.slane %v3906_v12, 2  ;;  %v4542_v49 = vrot.slane %v3906_v12, 4  ;;  %4642 = vst [vmem:[#allocation1 + $0x20] ss:$4 sm:$0xff] %v3906_v12  ;;  %v3595_v42 = vadd.f32 %v3508_v18, %v3226_v16  ;;  %v3749_v43 = vpop.f32.mrf.mxu2  ;;  %v3941_v47 = vpack.c.bf16 %v3906_v12, %v3905_v50 }
 0x38e   : > { %v4543_v2 = vrot.slane %v3906_v12, 6  ;;  %v8142_v12 = vld [vmem:[#allocation37_spill] sm:$0xff]  ;;  %v3999_v18 = vor.u32 %v3998_v53, %v3995_v41  ;;  %v8143_v53 = vld [vmem:[#allocation20_spill] sm:$0xff] }
 0x38f   : > { %4644 = vst [vmem:[#allocation1 + $0x21] ss:$4 sm:$0xff] %v4541_v40  ;;  %v3831_v51 = vadd.f32 %v3744_v1, %v3595_v42  ;;  %5834 = vmatmul.msk.bf16.gmra.mxu1 %vm523_vm3, %v8141_v24  ;;  %5880 = vmatmul.msk.bf16.vlgmr.msra.gmra.mxu0 %vm523_vm3, %v3941_v47  ;;  %v3227_v27 = vadd.f32 %v8142_v12, %v7143_v0 }
 0x390   : > { %v4649_v21 = vld.sshfl [vmem:[#allocation1] sm:$0xff pattern:$0x73625140]  ;;  %4646 = vst [vmem:[#allocation1 + $0x22] ss:$4 sm:$0xff] %v4542_v49  ;;  %v7446_v49 = vpop.f32.mrf.mxu0 }
 0x391   : > { %v4833_v50 = vpack.c.bf16 %v4649_v21, %v4649_v21  ;;  %v3871_v6 = vadd.f32 %v7411_v34, %v3831_v51  ;;  %4648 = vst [vmem:[#allocation1 + $0x23] ss:$4 sm:$0xff] %v4543_v2  ;;  %v4000_v51 = vsel %vm2300_vm10, %v3991_v39, %v3999_v18  ;;  %v6008_v39 = vld [vmem:[%s6123_s12 + $0x30] sm:$0xff] }
 0x392   : > { %5865 = vmatmul.msk.bf16.gmra.mxu3 %vm523_vm3, %v4000_v51 }
 0x393   : > { %4865 = vst.msk [vmem:[%s7439_s11] sm:$0xf] %vm1073_vm0, %v4833_v50  ;;  %v3907_v1 = vmax.f32 %v3871_v6, 0.0  ;;  %v8144_v6 = vld [vmem:[#allocation38_spill] sm:$0xff] }
 0x394   : > { %v3510_v16 = vpop.f32.mrf.mxu1  ;;  %v3228_v12 = vadd.f32 %v8144_v6, %v7157_v29 }
 0x395   : > { %v4544_v40 = vrot.slane %v3907_v1, 2  ;;  %v4545_v42 = vrot.slane %v3907_v1, 4  ;;  %v4546_v47 = vrot.slane %v3907_v1, 6  ;;  %v3596_v24 = vadd.f32 %v3510_v16, %v3227_v27  ;;  %v3751_v17 = vpop.f32.mrf.mxu2 }
 0x396   : > { %v4001_v27 = vshrl.u32 %v6008_v39, 16 }
 0x397   : > { %4651 = vst [vmem:[#allocation1] ss:$4 sm:$0xff] %v4544_v40  ;;  %v3832_v2 = vadd.f32 %v3746_v35, %v3596_v24  ;;  %v4004_v35 = vshll.u32 %v6008_v39, 16 }
 0x398   : > { %4652 = vst [vmem:[#allocation1 + $0x1] ss:$4 sm:$0xff] %v4545_v42  ;;  %v4650_v21 = vld.sshfl [vmem:[#allocation1 + $0x20] sm:$0xff pattern:$0x73625140]  ;;  %v7460_v6 = vpop.f32.mrf.mxu0 }
 0x399   : > { %4653 = vst [vmem:[#allocation1 + $0x2] ss:$4 sm:$0xff] %v4546_v47  ;;  %v3872_v0 = vadd.f32 %v7411_v34, %v3832_v2  ;;  %v4834_v41 = vpack.c.bf16 %v4650_v21, %v4650_v21  ;;  %v4006_v29 = vrot.slane %v4004_v35, 2 }
 0x39a   : > { %5855 = vmatmul.msk.bf16.gmra.mxu2 %vm523_vm3, %v8143_v53  ;;  %v8145_v53 = vld [vmem:[#allocation19_spill] sm:$0xff] }
 0x39b   : > { %v3908_v50 = vmax.f32 %v3872_v0, 0.0  ;;  %4866 = vst.msk [vmem:[%s7439_s11 + $0x4] sm:$0xf] %vm1073_vm0, %v4834_v41  ;;  %v4003_v0 = vrot.slane %v4001_v27, 1 }
 0x39c   : > { %v3513_v16 = vpop.f32.mrf.mxu1 }
 0x39d   : > { %v4547_v40 = vrot.slane %v3908_v50, 2  ;;  %v4548_v42 = vrot.slane %v3908_v50, 4  ;;  %v4549_v24 = vrot.slane %v3908_v50, 6  ;;  %4654 = vst [vmem:[#allocation1 + $0x3] ss:$4 sm:$0xff] %v3908_v50  ;;  %v3597_v47 = vadd.f32 %v3513_v16, %v3228_v12  ;;  %v3754_v51 = vpop.f32.mrf.mxu2  ;;  %v8146_v12 = vld [vmem:[#allocation39_spill] sm:$0xff] }
 0x39e   : > { %v3942_v2 = vpack.c.bf16 %v3908_v50, %v3907_v1  ;;  %v3229_v1 = vadd.f32 %v8146_v12, %v7161_v7  ;;  %v4007_v16 = vor.u32 %v4006_v29, %v4003_v0  ;;  %v8148_v29 = vld [vmem:[#allocation40_spill] sm:$0xff] }
 0x39f   : > { %v3833_v21 = vadd.f32 %v3749_v43, %v3597_v47  ;;  %4655 = vst [vmem:[#allocation1 + $0x20] ss:$4 sm:$0xff] %v4547_v40  ;;  %5835 = vmatmul.msk.bf16.gmra.mxu1 %vm523_vm3, %v8145_v53  ;;  %v6009_v12 = vld [vmem:[%s6123_s12 + $0x38] sm:$0xff] }
 0x3a0   : > { %4656 = vst [vmem:[#allocation1 + $0x21] ss:$4 sm:$0xff] %v4548_v42  ;;  %5881 = vmatmul.msk.bf16.gmra.mxu0 %vm523_vm3, %v3942_v2  ;;  %v4008_v53 = vsel %vm2300_vm10, %v3999_v18, %v4007_v16  ;;  %v4009_v18 = vshrl.u32 %v6009_v12, 16 }
 0x3a1   : > { %v3873_v41 = vadd.f32 %v7411_v34, %v3833_v21  ;;  %4657 = vst [vmem:[#allocation1 + $0x22] ss:$4 sm:$0xff] %v4549_v24  ;;  %v7471_v24 = vpop.f32.mrf.mxu0  ;;  %v8147_v21 = vld [vmem:[#allocation22_spill] sm:$0xff] }
 0x3a2   : > { %5866 = vmatmul.msk.bf16.gmra.mxu3 %vm523_vm3, %v4008_v53 }
 0x3a3   : > { %v3909_v39 = vmax.f32 %v3873_v41, 0.0  ;;  %v3230_v41 = vadd.f32 %v8148_v29, %v7175_v3  ;;  %v4011_v3 = vrot.slane %v4009_v18, 1 }
 0x3a4   : > { %v4659_v43 = vld.sshfl [vmem:[#allocation1] sm:$0xff pattern:$0x73625140]  ;;  %v3515_v50 = vpop.f32.mrf.mxu1 }
 0x3a5   : > { %v4835_v40 = vpack.c.bf16 %v4659_v43, %v4659_v43  ;;  %v4550_v47 = vrot.slane %v3909_v39, 4  ;;  %v4551_v27 = vrot.slane %v3909_v39, 6  ;;  %4658 = vst [vmem:[#allocation1 + $0x23] ss:$4 sm:$0xff] %v3909_v39  ;;  %v3598_v35 = vadd.f32 %v3515_v50, %v3229_v1  ;;  %v3756_v42 = vpop.f32.mrf.mxu2 }
 0x3a6   : > { %v4012_v1 = vshll.u32 %v6009_v12, 16 }
 0x3a7   : > { %4867 = vst.msk [vmem:[%s7439_s11 + $0x8] sm:$0xf] %vm1073_vm0, %v4835_v40  ;;  %v3834_v2 = vadd.f32 %v3751_v17, %v3598_v35 }
 0x3a8   : > { %4661 = vst [vmem:[#allocation1] ss:$4 sm:$0xff] %v4550_v47  ;;  %v4014_v29 = vrot.slane %v4012_v1, 2 }
 0x3a9   : > { %4662 = vst [vmem:[#allocation1 + $0x1] ss:$4 sm:$0xff] %v4551_v27  ;;  %v3874_v7 = vadd.f32 %v7411_v34, %v3834_v2 }
 0x3aa   : > { %5856 = vmatmul.msk.bf16.gmra.mxu2 %vm523_vm3, %v8147_v21 }
 0x3ab   : > { %v3910_v0 = vmax.f32 %v3874_v7, 0.0  ;;  %v8149_v7 = vld [vmem:[#allocation21_spill] sm:$0xff] }
 0x3ac   : > { %v3518_v17 = vpop.f32.mrf.mxu1  ;;  %v4660_v43 = vld.sshfl [vmem:[#allocation1 + $0x20] sm:$0xff pattern:$0x73625140] }
 0x3ad   : > { %v4552_v50 = vrot.slane %v3910_v0, 2  ;;  %v4553_v40 = vrot.slane %v3910_v0, 4  ;;  %4663 = vst [vmem:[#allocation1 + $0x2] ss:$4 sm:$0xff] %v3910_v0  ;;  %v3599_v47 = vadd.f32 %v3518_v17, %v3230_v41  ;;  %v3759_v27 = vpop.f32.mrf.mxu2  ;;  %v4554_v35 = vrot.slane %v3910_v0, 6  ;;  %v8150_v17 = vld [vmem:[#allocation41_spill] sm:$0xff] }
 0x3ae   : > { %v4836_v53 = vpack.c.bf16 %v4660_v43, %v4660_v43  ;;  %v3943_v2 = vpack.c.bf16 %v3910_v0, %v3909_v39  ;;  %v3231_v43 = vadd.f32 %v8150_v17, %v7179_v48  ;;  %v7486_v39 = vpop.f32.mrf.mxu0  ;;  %v4015_v0 = vor.u32 %v4014_v29, %v4011_v3  ;;  %v8152_v3 = vld [vmem:[#allocation42_spill] sm:$0xff] }
 0x3af   : > { %4664 = vst [vmem:[#allocation1 + $0x3] ss:$4 sm:$0xff] %v4552_v50  ;;  %v3835_v21 = vadd.f32 %v3754_v51, %v3599_v47  ;;  %5836 = vmatmul.msk.bf16.gmra.mxu1 %vm523_vm3, %v8149_v7  ;;  %v3232_v29 = vadd.f32 %v8152_v3, %v7193_v28 }
 0x3b0   : > { %4868 = vst.msk [vmem:[%s7439_s11 + $0xc] sm:$0xf] %vm1073_vm0, %v4836_v53  ;;  %5882 = vmatmul.msk.bf16.gmra.mxu0 %vm523_vm3, %v3943_v2  ;;  %v4016_v2 = vsel %vm2300_vm10, %v4007_v16, %v4015_v0 }
 0x3b1   : > { %v3875_v12 = vadd.f32 %v7411_v34, %v3835_v21  ;;  %4665 = vst [vmem:[#allocation1 + $0x20] ss:$4 sm:$0xff] %v4553_v40  ;;  %v8151_v21 = vld [vmem:[#allocation24_spill] sm:$0xff] }
 0x3b2   : > { %4666 = vst [vmem:[#allocation1 + $0x21] ss:$4 sm:$0xff] %v4554_v35  ;;  %5867 = vmatmul.msk.bf16.gmra.mxu3 %vm523_vm3, %v4016_v2 }
 0x3b3   : > { %v3911_v41 = vmax.f32 %v3875_v12, 0.0  ;;  %v6010_v12 = vld [vmem:[%s6123_s12 + $0x40] sm:$0xff] }
 0x3b4   : > { %v3520_v51 = vpop.f32.mrf.mxu1  ;;  %v4017_v17 = vshrl.u32 %v6010_v12, 16  ;;  %v4020_v16 = vshll.u32 %v6010_v12, 16 }
 0x3b5   : > { %v4555_v50 = vrot.slane %v3911_v41, 2  ;;  %v4556_v18 = vrot.slane %v3911_v41, 6  ;;  %4667 = vst [vmem:[#allocation1 + $0x22] ss:$4 sm:$0xff] %v3911_v41  ;;  %v3600_v1 = vadd.f32 %v3520_v51, %v3231_v43  ;;  %v3761_v47 = vpop.f32.mrf.mxu2 }
 0x3b6   : > { %v4669_v53 = vld.sshfl [vmem:[#allocation1] sm:$0xff pattern:$0x73625140]  ;;  %v4019_v28 = vrot.slane %v4017_v17, 1  ;;  %v4022_v3 = vrot.slane %v4020_v16, 2 }
 0x3b7   : > { %v4837_v40 = vpack.c.bf16 %v4669_v53, %v4669_v53  ;;  %4668 = vst [vmem:[#allocation1 + $0x23] ss:$4 sm:$0xff] %v4555_v50  ;;  %v3836_v35 = vadd.f32 %v3756_v42, %v3600_v1  ;;  %v7498_v1 = vpop.f32.mrf.mxu0 }
 0x3b8   : > { %4671 = vst [vmem:[#allocation1] ss:$4 sm:$0xff] %v4556_v18 }
 0x3b9   : > { %4869 = vst.msk [vmem:[%s7439_s11 + $0x10] sm:$0xf] %vm1073_vm0, %v4837_v40  ;;  %v3876_v48 = vadd.f32 %v7411_v34, %v3836_v35 }
 0x3ba   : > { %5857 = vmatmul.msk.bf16.gmra.mxu2 %vm523_vm3, %v8151_v21  ;;  %v8153_v21 = vld [vmem:[#allocation23_spill] sm:$0xff] }
 0x3bb   : > { %v3912_v7 = vmax.f32 %v3876_v48, 0.0 }
 0x3bc   : > { %v3523_v43 = vpop.f32.mrf.mxu1 }
 0x3bd   : > { %v4557_v51 = vrot.slane %v3912_v7, 2  ;;  %v4558_v42 = vrot.slane %v3912_v7, 4  ;;  %4672 = vst [vmem:[#allocation1 + $0x1] ss:$4 sm:$0xff] %v3912_v7  ;;  %v3601_v50 = vadd.f32 %v3523_v43, %v3232_v29  ;;  %v3764_v18 = vpop.f32.mrf.mxu2  ;;  %v4559_v53 = vrot.slane %v3912_v7, 6  ;;  %v8154_v43 = vld [vmem:[#allocation43_spill] sm:$0xff] }
 0x3be   : > { %v4670_v2 = vld.sshfl [vmem:[#allocation1 + $0x20] sm:$0xff pattern:$0x73625140]  ;;  %v3944_v40 = vpack.c.bf16 %v3912_v7, %v3911_v41  ;;  %v3233_v41 = vadd.f32 %v8154_v43, %v7197_v14 }
 0x3bf   : > { %4673 = vst [vmem:[#allocation1 + $0x2] ss:$4 sm:$0xff] %v4557_v51  ;;  %v3837_v35 = vadd.f32 %v3759_v27, %v3601_v50  ;;  %v4838_v48 = vpack.c.bf16 %v4670_v2, %v4670_v2  ;;  %5837 = vmatmul.msk.bf16.gmra.mxu1 %vm523_vm3, %v8153_v21  ;;  %v4023_v27 = vor.u32 %v4022_v3, %v4019_v28  ;;  %v8156_v28 = vld [vmem:[#allocation44_spill] sm:$0xff]  ;;  %v6011_v3 = vld [vmem:[%s6123_s12 + $0x48] sm:$0xff] }
 0x3c0   : > { %4674 = vst [vmem:[#allocation1 + $0x3] ss:$4 sm:$0xff] %v4558_v42  ;;  %5883 = vmatmul.msk.bf16.gmra.mxu0 %vm523_vm3, %v3944_v40 }
 0x3c1   : > { %v3877_v12 = vadd.f32 %v7411_v34, %v3837_v35  ;;  %4870 = vst.msk [vmem:[%s7439_s11 + $0x14] sm:$0xf] %vm1073_vm0, %v4838_v48  ;;  %v4024_v42 = vsel %vm2300_vm10, %v4015_v0, %v4023_v27  ;;  %v8155_v48 = vld [vmem:[#allocation26_spill] sm:$0xff]  ;;  %v3234_v0 = vadd.f32 %v8156_v28, %v7211_v36 }
 0x3c2   : > { %4675 = vst [vmem:[#allocation1 + $0x20] ss:$4 sm:$0xff] %v4559_v53  ;;  %5868 = vmatmul.msk.bf16.gmra.mxu3 %vm523_vm3, %v4024_v42  ;;  %v7510_v53 = vpop.f32.mrf.mxu0 }
 0x3c3   : > { %v3913_v29 = vmax.f32 %v3877_v12, 0.0  ;;  %v4025_v12 = vshrl.u32 %v6011_v3, 16 }
 0x3c4   : > { %v3525_v7 = vpop.f32.mrf.mxu1 }
 0x3c5   : > { %v4560_v51 = vrot.slane %v3913_v29, 2  ;;  %v4561_v50 = vrot.slane %v3913_v29, 4  ;;  %4676 = vst [vmem:[#allocation1 + $0x21] ss:$4 sm:$0xff] %v3913_v29  ;;  %v3602_v17 = vadd.f32 %v3525_v7, %v3233_v41  ;;  %v3766_v16 = vpop.f32.mrf.mxu2 }
 0x3c7   : > { %v4679_v2 = vld.sshfl [vmem:[#allocation1] sm:$0xff pattern:$0x73625140]  ;;  %4677 = vst [vmem:[#allocation1 + $0x22] ss:$4 sm:$0xff] %v4560_v51  ;;  %v3838_v40 = vadd.f32 %v3761_v47, %v3602_v17  ;;  %v4028_v47 = vshll.u32 %v6011_v3, 16 }
 0x3c8   : > { %v4839_v35 = vpack.c.bf16 %v4679_v2, %v4679_v2  ;;  %4678 = vst [vmem:[#allocation1 + $0x23] ss:$4 sm:$0xff] %v4561_v50 }
 0x3c9   : > { %v3878_v14 = vadd.f32 %v7411_v34, %v3838_v40  ;;  %v4030_v36 = vrot.slane %v4028_v47, 2 }
 0x3ca   : > { %4871 = vst.msk [vmem:[%s7439_s11 + $0x18] sm:$0xf] %vm1073_vm0, %v4839_v35  ;;  %5858 = vmatmul.msk.bf16.gmra.mxu2 %vm523_vm3, %v8155_v48  ;;  %v8157_v35 = vld [vmem:[#allocation25_spill] sm:$0xff]  ;;  %v7524_v3 = vpop.f32.mrf.mxu0 }
 0x3cb   : > { %v3914_v21 = vmax.f32 %v3878_v14, 0.0  ;;  %v4027_v14 = vrot.slane %v4025_v12, 1 }
 0x3cc   : > { %v3528_v43 = vpop.f32.mrf.mxu1 }
 0x3cd   : > { %v4562_v41 = vrot.slane %v3914_v21, 2  ;;  %v4563_v7 = vrot.slane %v3914_v21, 4  ;;  %v4564_v51 = vrot.slane %v3914_v21, 6  ;;  %4681 = vst [vmem:[#allocation1] ss:$4 sm:$0xff] %v3914_v21  ;;  %v3603_v50 = vadd.f32 %v3528_v43, %v3234_v0  ;;  %v3769_v17 = vpop.f32.mrf.mxu2 }
 0x3ce   : > { %v3945_v42 = vpack.c.bf16 %v3914_v21, %v3913_v29  ;;  %v4031_v43 = vor.u32 %v4030_v36, %v4027_v14  ;;  %v6012_v14 = vld [vmem:[%s6123_s12 + $0x50] sm:$0xff] }
 0x3cf   : > { %4682 = vst [vmem:[#allocation1 + $0x1] ss:$4 sm:$0xff] %v4562_v41  ;;  %v3839_v2 = vadd.f32 %v3764_v18, %v3603_v50  ;;  %v4680_v40 = vld.sshfl [vmem:[#allocation1 + $0x20] sm:$0xff pattern:$0x73625140]  ;;  %5838 = vmatmul.msk.bf16.gmra.mxu1 %vm523_vm3, %v8157_v35  ;;  %v8158_v18 = vld [vmem:[#allocation46_spill] sm:$0xff] }
 0x3d0   : > { %4683 = vst [vmem:[#allocation1 + $0x2] ss:$4 sm:$0xff] %v4563_v7  ;;  %v4840_v48 = vpack.c.bf16 %v4680_v40, %v4680_v40  ;;  %5884 = vmatmul.msk.bf16.gmra.mxu0 %vm523_vm3, %v3945_v42  ;;  %v3235_v21 = vadd.f32 %v8158_v18, %v7215_v38  ;;  %v4032_v50 = vsel %vm2300_vm10, %v4023_v27, %v4031_v43  ;;  %v8159_v35 = vld [vmem:[#allocation29_spill] sm:$0xff]  ;;  %v4033_v36 = vshrl.u32 %v6012_v14, 16 }
 0x3d1   : > { %4684 = vst [vmem:[#allocation1 + $0x3] ss:$4 sm:$0xff] %v4564_v51  ;;  %v3879_v28 = vadd.f32 %v7411_v34, %v3839_v2  ;;  %v3236_v27 = vadd.f32 %v7309_v55, %v7229_v8 }
 0x3d2   : > { %4872 = vst.msk [vmem:[%s7439_s11 + $0x1c] sm:$0xf] %vm1073_vm0, %v4840_v48  ;;  %5869 = vmatmul.msk.bf16.gmra.mxu3 %vm523_vm3, %v4032_v50  ;;  %v4035_v50 = vrot.slane %v4033_v36, 1 }
 0x3d3   : > { %v3915_v29 = vmax.f32 %v3879_v28, 0.0  ;;  %v7540_v28 = vpop.f32.mrf.mxu0 }
 0x3d4   : > { %v3530_v0 = vpop.f32.mrf.mxu1 }
 0x3d5   : > { %v4565_v41 = vrot.slane %v3915_v29, 2  ;;  %v4566_v12 = vrot.slane %v3915_v29, 4  ;;  %v4567_v47 = vrot.slane %v3915_v29, 6  ;;  %4685 = vst [vmem:[#allocation1 + $0x20] ss:$4 sm:$0xff] %v3915_v29  ;;  %v3604_v7 = vadd.f32 %v3530_v0, %v3235_v21  ;;  %v3771_v51 = vpop.f32.mrf.mxu2 }
 0x3d7   : > { %4686 = vst [vmem:[#allocation1 + $0x21] ss:$4 sm:$0xff] %v4565_v41  ;;  %v3840_v42 = vadd.f32 %v3766_v16, %v3604_v7  ;;  %v4036_v16 = vshll.u32 %v6012_v14, 16  ;;  %v7548_v14 = vpop.f32.mrf.mxu3 }
 0x3d8   : > { %v4689_v2 = vld.sshfl [vmem:[#allocation1] sm:$0xff pattern:$0x73625140]  ;;  %4687 = vst [vmem:[#allocation1 + $0x22] ss:$4 sm:$0xff] %v4566_v12 }
 0x3d9   : > { %v4841_v40 = vpack.c.bf16 %v4689_v2, %v4689_v2  ;;  %4688 = vst [vmem:[#allocation1 + $0x23] ss:$4 sm:$0xff] %v4567_v47  ;;  %v3880_v38 = vadd.f32 %v7411_v34, %v3840_v42  ;;  %v2876_v42 = vadd.f32 %v7234_v11, %v7232_v45  ;;  %v4038_v8 = vrot.slane %v4036_v16, 2 }
 0x3da   : > { %5859 = vmatmul.msk.bf16.gmra.mxu2 %vm523_vm3, %v8159_v35 }
 0x3db   : > { %4873 = vst.msk [vmem:[%s7439_s11 + $0x20] sm:$0xf] %vm1073_vm0, %v4841_v40  ;;  %v3916_v48 = vmax.f32 %v3880_v38, 0.0  ;;  %v8160_v40 = vld [vmem:[#allocation28_spill] sm:$0xff]  ;;  %v3237_v45 = vadd.f32 %v7318_v44, %v2876_v42 }
 0x3dc   : > { %v3533_v18 = vpop.f32.mrf.mxu1 }
 0x3dd   : > { %v4568_v21 = vrot.slane %v3916_v48, 2  ;;  %v4569_v0 = vrot.slane %v3916_v48, 4  ;;  %v4570_v41 = vrot.slane %v3916_v48, 6  ;;  %v3605_v12 = vadd.f32 %v3533_v18, %v3236_v27  ;;  %v3774_v47 = vpop.f32.mrf.mxu2 }
 0x3de   : > { %v3946_v7 = vpack.c.bf16 %v3916_v48, %v3915_v29 }
 0x3df   : > { %4691 = vst [vmem:[#allocation1] ss:$4 sm:$0xff] %v4568_v21  ;;  %v3841_v2 = vadd.f32 %v3769_v17, %v3605_v12  ;;  %5839 = vmatmul.msk.bf16.gmra.mxu1 %vm523_vm3, %v8160_v40  ;;  %v7553_v17 = vor.u32 %v4038_v8, %v4035_v50  ;;  %v7555_v21 = vpop.f32.mrf.mxu0  ;;  %v3260_v12 = vld [vmem:[#allocation2 + $0xa0] sm:$0x7] }
 0x3e0   : > { %v4690_v55 = vld.sshfl [vmem:[#allocation1 + $0x20] sm:$0xff pattern:$0x73625140]  ;;  %4692 = vst [vmem:[#allocation1 + $0x1] ss:$4 sm:$0xff] %v4569_v0  ;;  %5885 = vmatmul.msk.bf16.gmra.mxu0 %vm523_vm3, %v3946_v7  ;;  %v8161_v7 = vld [vmem:[#allocation30_spill] sm:$0xff]  ;;  %v3264_v40 = vunpack.c.l.b16 %v3260_v12 }
 0x3e1   : > { %v4842_v38 = vpack.c.bf16 %v4690_v55, %v4690_v55  ;;  %4693 = vst [vmem:[#allocation1 + $0x2] ss:$4 sm:$0xff] %v4570_v41  ;;  %v3881_v35 = vadd.f32 %v7411_v34, %v3841_v2  ;;  %v4040_v0 = vsel %vm2300_vm10, %v4031_v43, %v7553_v17  ;;  %v7563_v50 = vpop.f32.mrf.mxu3  ;;  %v3238_v43 = vadd.f32 %v7329_v54, %v7245_v23 }
 0x3e2   : > { %5870 = vmatmul.msk.bf16.gmra.mxu3 %vm523_vm3, %v4040_v0  ;;  %v8162_v0 = vld [vmem:[#allocation32_spill] sm:$0xff]  ;;  %v2878_v54 = vadd.f32 %v7250_v10, %v7248_v26 }
 0x3e3   : > { %4874 = vst.msk [vmem:[%s7439_s11 + $0x24] sm:$0xf] %vm1073_vm0, %v4842_v38  ;;  %v3917_v29 = vmax.f32 %v3881_v35, 0.0 }
 0x3e4   : > { %v3535_v11 = vpop.f32.mrf.mxu1 }
 0x3e5   : > { %v4571_v36 = vrot.slane %v3917_v29, 2  ;;  %v4572_v48 = vrot.slane %v3917_v29, 4  ;;  %v4573_v27 = vrot.slane %v3917_v29, 6  ;;  %4694 = vst [vmem:[#allocation1 + $0x3] ss:$4 sm:$0xff] %v3917_v29  ;;  %v3606_v16 = vadd.f32 %v3535_v11, %v3237_v45  ;;  %v3776_v18 = vpop.f32.mrf.mxu2  ;;  %v6013_v11 = vld [vmem:[%s6123_s12 + $0x58] sm:$0xff] }
 0x3e7   : > { %4695 = vst [vmem:[#allocation1 + $0x20] ss:$4 sm:$0xff] %v4571_v36  ;;  %v3842_v41 = vadd.f32 %v3771_v51, %v3606_v16  ;;  %v4041_v36 = vshrl.u32 %v6013_v11, 16  ;;  %v7572_v23 = vpop.f32.mrf.mxu0 }
 0x3e8   : > { %4696 = vst [vmem:[#allocation1 + $0x21] ss:$4 sm:$0xff] %v4572_v48  ;;  %v4044_v48 = vshll.u32 %v6013_v11, 16 }
 0x3e9   : > { %4697 = vst [vmem:[#allocation1 + $0x22] ss:$4 sm:$0xff] %v4573_v27  ;;  %v3882_v44 = vadd.f32 %v7411_v34, %v3842_v41 }
 0x3ea   : > { %5860 = vmatmul.msk.bf16.gmra.mxu2 %vm523_vm3, %v8161_v7  ;;  %v4046_v12 = vrot.slane %v4044_v48, 2 }
 0x3eb   : > { %v3918_v42 = vmax.f32 %v3882_v44, 0.0  ;;  %v7578_v44 = vpack.c.b16 %v3264_v40, %v3264_v40 }
 0x3ec   : > { %v4699_v2 = vld.sshfl [vmem:[#allocation1] sm:$0xff pattern:$0x73625140]  ;;  %v3538_v51 = vpop.f32.mrf.mxu1 }
 0x3ed   : > { %v4843_v8 = vpack.c.bf16 %v4699_v2, %v4699_v2  ;;  %v4574_v55 = vrot.slane %v3918_v42, 4  ;;  %v4575_v38 = vrot.slane %v3918_v42, 6  ;;  %4698 = vst [vmem:[#allocation1 + $0x23] ss:$4 sm:$0xff] %v3918_v42  ;;  %v3607_v35 = vadd.f32 %v3538_v51, %v3238_v43  ;;  %v3779_v45 = vpop.f32.mrf.mxu2  ;;  %v7581_v2 = vpop.f32.mrf.mxu3 }
 0x3ee   : > { %v3947_v27 = vpack.c.bf16 %v3918_v42, %v3917_v29  ;;  %v4043_v29 = vrot.slane %v4041_v36, 1  ;;  %v3239_v42 = vadd.f32 %v7338_v5, %v2878_v54  ;;  %v8163_v36 = vld [vmem:[#allocation27_spill] sm:$0xff] }
 0x3ef   : > { %4875 = vst.msk [vmem:[%s7439_s11 + $0x28] sm:$0xf] %vm1073_vm0, %v4843_v8  ;;  %v3843_v16 = vadd.f32 %v3774_v47, %v3607_v35  ;;  %5840 = vmatmul.msk.bf16.gmra.mxu1 %vm523_vm3, %v8162_v0  ;;  %v8164_v48 = vrot.slane %v8163_v36, 3 }
 0x3f0   : > { %4701 = vst [vmem:[#allocation1] ss:$4 sm:$0xff] %v4574_v55  ;;  %5886 = vmatmul.msk.bf16.gmra.mxu0 %vm523_vm3, %v3947_v27  ;;  %v3671_v55 = vrot.slane %v7578_v44, 3  ;;  %v4047_v35 = vor.u32 %v4046_v12, %v4043_v29 }
 0x3f1   : > { %4702 = vst [vmem:[#allocation1 + $0x1] ss:$4 sm:$0xff] %v4575_v38  ;;  %v3883_v41 = vadd.f32 %v7411_v34, %v3843_v16  ;;  %v7592_v16 = vpop.f32.mrf.mxu0 }
 0x3f2   : > { %v4048_v5 = vsel %vm2300_vm10, %v7553_v17, %v4047_v35  ;;  %v3672_v27 = vsel %vm3635_vm6, %v8164_v48, %v3671_v55  ;;  %v8165_v55 = vld [vmem:[#allocation33_spill] sm:$0xff] }
 0x3f3   : > { %v3919_v47 = vmax.f32 %v3883_v41, 0.0  ;;  %5871 = vmatmul.msk.bf16.gmra.mxu3 %vm523_vm3, %v4048_v5 }
 0x3f4   : > { %v4700_v7 = vld.sshfl [vmem:[#allocation1 + $0x20] sm:$0xff pattern:$0x73625140]  ;;  %v3540_v43 = vpop.f32.mrf.mxu1 }
 0x3f5   : > { %v4844_v51 = vpack.c.bf16 %v4700_v7, %v4700_v7  ;;  %v4576_v26 = vrot.slane %v3919_v47, 2  ;;  %v4577_v10 = vrot.slane %v3919_v47, 4  ;;  %4703 = vst [vmem:[#allocation1 + $0x2] ss:$4 sm:$0xff] %v3919_v47  ;;  %v3781_v8 = vpop.f32.mrf.mxu2  ;;  %v4578_v38 = vrot.slane %v3919_v47, 6 }
 0x3f6   : > { %v3608_v40 = vadd.f32 %v3540_v43, %v3239_v42  ;;  %v7600_v43 = vpop.f32.mrf.mxu3 }
 0x3f7   : > { %4876 = vst.msk [vmem:[%s7439_s11 + $0x2c] sm:$0xf] %vm1073_vm0, %v4844_v51  ;;  %v2880_v51 = vadd.f32 %v7266_v56, %v7264_v4  ;;  %v3432_v4 = vshll.u32 %v7578_v44, 16 }
 0x3f8   : > { %4704 = vst [vmem:[#allocation1 + $0x3] ss:$4 sm:$0xff] %v4576_v26  ;;  %v3844_v11 = vadd.f32 %v3776_v18, %v3608_v40  ;;  %v3240_v18 = vadd.f32 %v7346_v13, %v7261_v25 }
 0x3f9   : > { %4705 = vst [vmem:[#allocation1 + $0x20] ss:$4 sm:$0xff] %v4577_v10  ;;  %v7614_v48 = vpop.f32.mrf.mxu0 }
 0x3fa   : > { %4706 = vst [vmem:[#allocation1 + $0x21] ss:$4 sm:$0xff] %v4578_v38  ;;  %v3884_v0 = vadd.f32 %v7411_v34, %v3844_v11  ;;  %5861 = vmatmul.msk.bf16.gmra.mxu2 %vm523_vm3, %v3672_v27  ;;  %v6014_v38 = vld [vmem:[%s6123_s12 + $0x60] sm:$0xff]  ;;  %v3429_v11 = vshrl.u32 %v7578_v44, 16 }
 0x3fb   : > { %v4049_v40 = vshrl.u32 %v6014_v38, 16 }
 0x3fc   : > { %v3920_v54 = vmax.f32 %v3884_v0, 0.0  ;;  %v3543_v41 = vpop.f32.mrf.mxu1 }
 0x3fd   : > { %v3609_v17 = vadd.f32 %v3543_v41, %v3240_v18  ;;  %v7598_v29 = vpop.f32.mrf.mxu2  ;;  %v4051_v5 = vrot.slane %v4049_v40, 1 }
 0x3fe   : > { %v4579_v12 = vrot.slane %v3920_v54, 2  ;;  %v4580_v7 = vrot.slane %v3920_v54, 6  ;;  %4707 = vst [vmem:[#allocation1 + $0x22] ss:$4 sm:$0xff] %v3920_v54  ;;  %v3948_v42 = vpack.c.bf16 %v3920_v54, %v3919_v47  ;;  %v4052_v47 = vshll.u32 %v6014_v38, 16 }
 0x3ff   : > { %v4709_v26 = vld.sshfl [vmem:[#allocation1] sm:$0xff pattern:$0x73625140]  ;;  %v3845_v10 = vadd.f32 %v3779_v45, %v3609_v17  ;;  %5841 = vmatmul.msk.bf16.gmra.mxu1 %vm523_vm3, %v8165_v55  ;;  %v3241_v45 = vadd.f32 %v7357_v33, %v2880_v51  ;;  %v7616_v33 = vpop.f32.mrf.mxu3  ;;  %v3242_v38 = vadd.f32 %v7368_v62, %v7275_v30 }
 0x400   : > { %v4845_v25 = vpack.c.bf16 %v4709_v26, %v4709_v26  ;;  %4708 = vst [vmem:[#allocation1 + $0x23] ss:$4 sm:$0xff] %v4579_v12  ;;  %5887 = vmatmul.msk.bf16.gmra.mxu0 %vm523_vm3, %v3948_v42  ;;  %v4054_v36 = vrot.slane %v4052_v47, 2  ;;  %v3431_v12 = vrot.slane %v3429_v11, 2 }
 0x401   : > { %4711 = vst [vmem:[#allocation1] ss:$4 sm:$0xff] %v4580_v7  ;;  %v3885_v13 = vadd.f32 %v7411_v34, %v3845_v10  ;;  %v3434_v7 = vrot.slane %v3432_v4, 3 }
 0x402   : > { %4877 = vst.msk [vmem:[%s7439_s11 + $0x30] sm:$0xf] %vm1073_vm0, %v4845_v25  ;;  %v4055_v42 = vor.u32 %v4054_v36, %v4051_v5  ;;  %v8166_v5 = vld [vmem:[#allocation31_spill] sm:$0xff] }
 0x403   : > { %v3921_v56 = vmax.f32 %v3885_v13, 0.0  ;;  %v3435_v25 = vor.u32 %v3434_v7, %v3431_v12 }
 0x404   : > { %v3545_v27 = vpop.f32.mrf.mxu1  ;;  %v4056_v51 = vsel %vm2300_vm10, %v4047_v35, %v4055_v42 }
 0x405   : > { %v4581_v0 = vrot.slane %v3921_v56, 2  ;;  %v4582_v18 = vrot.slane %v3921_v56, 4  ;;  %v4583_v54 = vrot.slane %v3921_v56, 6  ;;  %4712 = vst [vmem:[#allocation1 + $0x1] ss:$4 sm:$0xff] %v3921_v56  ;;  %v3610_v41 = vadd.f32 %v3545_v27, %v3241_v45  ;;  %v3786_v17 = vpop.f32.mrf.mxu2  ;;  %5872 = vmatmul.msk.bf16.gmra.mxu3 %vm523_vm3, %v4056_v51 }
 0x406   : > { %v3436_v36 = vsel %vm3266_vm7, %v8166_v5, %v3435_v25 }
 0x407   : > { %v4710_v26 = vld.sshfl [vmem:[#allocation1 + $0x20] sm:$0xff pattern:$0x73625140]  ;;  %4713 = vst [vmem:[#allocation1 + $0x2] ss:$4 sm:$0xff] %v4581_v0  ;;  %v3846_v44 = vadd.f32 %v3781_v8, %v3610_v41  ;;  %v2882_v0 = vadd.f32 %v7280_v20, %v7278_v22 }
 0x408   : > { %v4846_v10 = vpack.c.bf16 %v4710_v26, %v4710_v26  ;;  %4714 = vst [vmem:[#allocation1 + $0x3] ss:$4 sm:$0xff] %v4582_v18 }
 0x409   : > { %4715 = vst [vmem:[#allocation1 + $0x20] ss:$4 sm:$0xff] %v4583_v54  ;;  %v3886_v55 = vadd.f32 %v7411_v34, %v3846_v44  ;;  %v6015_v54 = vld [vmem:[%s6123_s12 + $0x68] sm:$0xff]  ;;  %v3243_v20 = vadd.f32 %v7377_v60, %v2882_v0 }
 0x40a   : > { %4878 = vst.msk [vmem:[%s7439_s11 + $0x34] sm:$0xf] %vm1073_vm0, %v4846_v10  ;;  %v4057_v41 = vshrl.u32 %v6015_v54, 16  ;;  %v4060_v12 = vshll.u32 %v6015_v54, 16 }
 0x40b   : > { %v3922_v13 = vmax.f32 %v3886_v55, 0.0 }
 0x40c   : > { %v3548_v40 = vpop.f32.mrf.mxu1  ;;  %v4336_v8 = vpop.f32.mrf.mxu0  ;;  %v4059_v26 = vrot.slane %v4057_v41, 1  ;;  %v4062_v44 = vrot.slane %v4060_v12, 2  ;;  %v2884_v41 = vadd.f32 %v7292_v58, %v7290_v9 }
 0x40d   : > { %v4584_v47 = vrot.slane %v3922_v13, 2  ;;  %v4585_v11 = vrot.slane %v3922_v13, 4  ;;  %4716 = vst [vmem:[#allocation1 + $0x21] ss:$4 sm:$0xff] %v3922_v13  ;;  %v3611_v4 = vadd.f32 %v3548_v40, %v3242_v38  ;;  %v7626_v35 = vadd.f32 %v4336_v8, %v7563_v50  ;;  %v3789_v45 = vpop.f32.mrf.mxu2 }
 0x40e   : > { %v3949_v27 = vpack.c.bf16 %v3922_v13, %v3921_v56  ;;  %v7639_v56 = vpop.f32.mrf.mxu3  ;;  %v4063_v40 = vor.u32 %v4062_v44, %v4059_v26 }
 0x40f   : > { %v4719_v30 = vld.sshfl [vmem:[#allocation1] sm:$0xff pattern:$0x73625140]  ;;  %4717 = vst [vmem:[#allocation1 + $0x22] ss:$4 sm:$0xff] %v4584_v47  ;;  %v3847_v62 = vadd.f32 %v7598_v29, %v3611_v4  ;;  %5842 = vmatmul.msk.bf16.gmra.mxu1 %vm523_vm3, %v3436_v36 }
 0x410   : > { %v4847_v18 = vpack.c.bf16 %v4719_v30, %v4719_v30  ;;  %4718 = vst [vmem:[#allocation1 + $0x23] ss:$4 sm:$0xff] %v4585_v11  ;;  %5888 = vmatmul.msk.bf16.gmra.mxu0 %vm523_vm3, %v3949_v27  ;;  %v4064_v60 = vsel %vm2300_vm10, %v4055_v42, %v4063_v40 }
 0x411   : > { %v3887_v50 = vadd.f32 %v7411_v34, %v3847_v62 }
 0x412   : > { %4879 = vst.msk [vmem:[%s7439_s11 + $0x38] sm:$0xf] %vm1073_vm0, %v4847_v18 }
 0x413   : > { %v3923_v22 = vmax.f32 %v3887_v50, 0.0 }
 0x414   : > { %v3550_v7 = vpop.f32.mrf.mxu1  ;;  %v4338_v29 = vpop.f32.mrf.mxu0 }
 0x415   : > { %v4586_v10 = vrot.slane %v3923_v22, 2  ;;  %v4587_v51 = vrot.slane %v3923_v22, 4  ;;  %v4588_v55 = vrot.slane %v3923_v22, 6  ;;  %4721 = vst [vmem:[#allocation1] ss:$4 sm:$0xff] %v3923_v22  ;;  %v3612_v25 = vadd.f32 %v3550_v7, %v3243_v20  ;;  %v3791_v13 = vpop.f32.mrf.mxu2  ;;  %5873 = vmatmul.msk.bf16.gmra.mxu3 %vm523_vm3, %v4064_v60  ;;  %v6016_v7 = vld [vmem:[%s6123_s12 + $0x70] sm:$0xff] }
 0x416   : > { %v7643_v38 = vadd.f32 %v4338_v29, %v7581_v2  ;;  %v3244_v2 = vadd.f32 %v7390_v37, %v7287_v52  ;;  %v7652_v27 = vpop.f32.mrf.mxu3  ;;  %v4065_v29 = vshrl.u32 %v6016_v7, 16  ;;  %v4068_v26 = vshll.u32 %v6016_v7, 16 }
 0x417   : > { %v4720_v8 = vld.sshfl [vmem:[#allocation1 + $0x20] sm:$0xff pattern:$0x73625140]  ;;  %4722 = vst [vmem:[#allocation1 + $0x1] ss:$4 sm:$0xff] %v4586_v10  ;;  %v3848_v47 = vadd.f32 %v3786_v17, %v3612_v25 }
 0x418   : > { %v4848_v11 = vpack.c.bf16 %v4720_v8, %v4720_v8  ;;  %4723 = vst [vmem:[#allocation1 + $0x2] ss:$4 sm:$0xff] %v4587_v51  ;;  %v4067_v44 = vrot.slane %v4065_v29, 1  ;;  %v4070_v9 = vrot.slane %v4068_v26, 2 }
 0x419   : > { %4724 = vst [vmem:[#allocation1 + $0x3] ss:$4 sm:$0xff] %v4588_v55  ;;  %v3888_v4 = vadd.f32 %v7411_v34, %v3848_v47 }
 0x41a   : > { %4880 = vst.msk [vmem:[%s7439_s11 + $0x3c] sm:$0xf] %vm1073_vm0, %v4848_v11  ;;  %v4071_v11 = vor.u32 %v4070_v9, %v4067_v44 }
 0x41b   : > { %v3924_v5 = vmax.f32 %v3888_v4, 0.0 }
 0x41c   : > { %v3553_v36 = vpop.f32.mrf.mxu1 }
 0x41d   : > { %v4589_v0 = vrot.slane %v3924_v5, 2  ;;  %v4590_v17 = vrot.slane %v3924_v5, 4  ;;  %v4591_v30 = vrot.slane %v3924_v5, 6  ;;  %4725 = vst [vmem:[#allocation1 + $0x20] ss:$4 sm:$0xff] %v3924_v5  ;;  %v3613_v42 = vadd.f32 %v3553_v36, %v3244_v2  ;;  %v4341_v62 = vpop.f32.mrf.mxu0  ;;  %v3794_v18 = vpop.f32.mrf.mxu2 }
 0x41e   : > { %v7655_v50 = vadd.f32 %v4341_v62, %v7600_v43  ;;  %v3950_v54 = vpack.c.bf16 %v3924_v5, %v3923_v22  ;;  %v3245_v22 = vadd.f32 %v7401_v63, %v2884_v41  ;;  %v7668_v4 = vpop.f32.mrf.mxu3  ;;  %v4072_v63 = vsel %vm2300_vm10, %v4063_v40, %v4071_v11 }
 0x41f   : > { %4726 = vst [vmem:[#allocation1 + $0x21] ss:$4 sm:$0xff] %v4589_v0  ;;  %v3849_v52 = vadd.f32 %v3789_v45, %v3613_v42 }
 0x420   : > { %v4729_v37 = vld.sshfl [vmem:[#allocation1] sm:$0xff pattern:$0x73625140]  ;;  %4727 = vst [vmem:[#allocation1 + $0x22] ss:$4 sm:$0xff] %v4590_v17  ;;  %5889 = vmatmul.msk.bf16.gmra.mxu0 %vm523_vm3, %v3950_v54 }
 0x421   : > { %v4849_v12 = vpack.c.bf16 %v4729_v37, %v4729_v37  ;;  %4728 = vst [vmem:[#allocation1 + $0x23] ss:$4 sm:$0xff] %v4591_v30  ;;  %v3889_v20 = vadd.f32 %v7411_v34, %v3849_v52  ;;  %v2886_v52 = vadd.f32 %v7304_v59, %v7302_v57 }
 0x423   : > { %4881 = vst.msk [vmem:[%s7439_s11 + $0x40] sm:$0xf] %vm1073_vm0, %v4849_v12  ;;  %v3925_v43 = vmax.f32 %v3889_v20, 0.0  ;;  %v3247_v59 = vadd.f32 %v7428_v32, %v2886_v52 }
 0x424   : > { %v3555_v58 = vpop.f32.mrf.mxu1 }
 0x425   : > { %v4592_v45 = vrot.slane %v3925_v43, 2  ;;  %v4593_v10 = vrot.slane %v3925_v43, 4  ;;  %v4594_v51 = vrot.slane %v3925_v43, 6  ;;  %v3614_v55 = vadd.f32 %v3555_v58, %v3245_v22  ;;  %v4343_v25 = vpop.f32.mrf.mxu0  ;;  %v3796_v8 = vpop.f32.mrf.mxu2  ;;  %5874 = vmatmul.msk.bf16.gmra.mxu3 %vm523_vm3, %v4072_v63 }
 0x426   : > { %v7666_v47 = vadd.f32 %v4343_v25, %v7616_v33  ;;  %v3246_v33 = vadd.f32 %v7416_v61, %v7299_v15  ;;  %v7686_v15 = vld [vmem:[%s8043_s5] ss:$0 sm:$0xff]  ;;  %v7689_v12 = vpop.f32.mrf.mxu3 }
 0x427   : > { %4731 = vst [vmem:[#allocation1] ss:$4 sm:$0xff] %v4592_v45  ;;  %v3850_v60 = vadd.f32 %v3791_v13, %v3614_v55 }
 0x428   : > { %v4730_v5 = vld.sshfl [vmem:[#allocation1 + $0x20] sm:$0xff pattern:$0x73625140]  ;;  %4732 = vst [vmem:[#allocation1 + $0x1] ss:$4 sm:$0xff] %v4593_v10 }
 0x429   : > { %v4850_v2 = vpack.c.bf16 %v4730_v5, %v4730_v5  ;;  %4733 = vst [vmem:[#allocation1 + $0x2] ss:$4 sm:$0xff] %v4594_v51  ;;  %v3890_v36 = vadd.f32 %v7411_v34, %v3850_v60 }
 0x42b   : > { %4882 = vst.msk [vmem:[%s7439_s11 + $0x44] sm:$0xf] %vm1073_vm0, %v4850_v2  ;;  %v3926_v0 = vmax.f32 %v3890_v36, 0.0 }
 0x42c   : > { %v3558_v17 = vpop.f32.mrf.mxu1 }
 0x42d   : > { %v4595_v13 = vrot.slane %v3926_v0, 2  ;;  %v4596_v30 = vrot.slane %v3926_v0, 4  ;;  %v4597_v42 = vrot.slane %v3926_v0, 6  ;;  %4734 = vst [vmem:[#allocation1 + $0x3] ss:$4 sm:$0xff] %v3926_v0  ;;  %v3615_v62 = vadd.f32 %v3558_v17, %v3246_v33  ;;  %v4346_v40 = vpop.f32.mrf.mxu0  ;;  %v3799_v54 = vpop.f32.mrf.mxu2 }
 0x42e   : > { %v7678_v41 = vadd.f32 %v4346_v40, %v7639_v56  ;;  %v3951_v34 = vpack.c.bf16 %v3926_v0, %v3925_v43  ;;  %v6018_v56 = vld [vmem:[%s6123_s12 + $0x78] sm:$0xff]  ;;  %v4200_v63 = vpop.f32.mrf.mxu3  ;;  %v2888_v40 = vadd.f32 %v7320_v31, %v7316_v46 }
 0x42f   : > { %4735 = vst [vmem:[#allocation1 + $0x20] ss:$4 sm:$0xff] %v4595_v13  ;;  %v3851_v37 = vadd.f32 %v3794_v18, %v3615_v62  ;;  %v4073_v20 = vshrl.u32 %v6018_v56, 16  ;;  %v4076_v7 = vshll.u32 %v6018_v56, 16 }
 0x430   : > { %4736 = vst [vmem:[#allocation1 + $0x21] ss:$4 sm:$0xff] %v4596_v30  ;;  %5890 = vmatmul.msk.bf16.gmra.mxu0 %vm523_vm3, %v3951_v34 }
 0x431   : > { %4737 = vst [vmem:[#allocation1 + $0x22] ss:$4 sm:$0xff] %v4597_v42  ;;  %v3891_v61 = vadd.f32 %v7686_v15, %v3851_v37  ;;  %v4075_v18 = vrot.slane %v4073_v20, 1  ;;  %v4078_v29 = vrot.slane %v4076_v7, 2 }
 0x433   : > { %v3927_v57 = vmax.f32 %v3891_v61, 0.0  ;;  %v4079_v55 = vor.u32 %v4078_v29, %v4075_v18 }
 0x434   : > { %v4739_v26 = vld.sshfl [vmem:[#allocation1] sm:$0xff pattern:$0x73625140]  ;;  %v3560_v43 = vpop.f32.mrf.mxu1 }
 0x435   : > { %v4851_v22 = vpack.c.bf16 %v4739_v26, %v4739_v26  ;;  %v4598_v44 = vrot.slane %v3927_v57, 4  ;;  %v4599_v9 = vrot.slane %v3927_v57, 6  ;;  %4738 = vst [vmem:[#allocation1 + $0x23] ss:$4 sm:$0xff] %v3927_v57  ;;  %v3616_v58 = vadd.f32 %v3560_v43, %v3247_v59  ;;  %v4348_v45 = vpop.f32.mrf.mxu0  ;;  %v3801_v10 = vpop.f32.mrf.mxu2 }
 0x436   : > { %v7694_v51 = vadd.f32 %v4348_v45, %v7652_v27  ;;  %v4080_v32 = vsel %vm2300_vm10, %v4071_v11, %v4079_v55  ;;  %v3248_v27 = vadd.f32 %v7446_v49, %v7313_v19  ;;  %v6019_v49 = vld [vmem:[%s6123_s12 + $0x80] sm:$0xff] }
 0x437   : > { %4883 = vst.msk [vmem:[%s7439_s11 + $0x48] sm:$0xf] %vm1073_vm0, %v4851_v22  ;;  %v3852_v25 = vadd.f32 %v3796_v8, %v3616_v58  ;;  %5875 = vmatmul.msk.bf16.gmra.mxu3 %vm523_vm3, %v4080_v32  ;;  %v4081_v34 = vshrl.u32 %v6019_v49, 16  ;;  %v4084_v52 = vshll.u32 %v6019_v49, 16  ;;  %v8167_v45 = vld [vmem:[#allocation4_spill] sm:$0xff] }
 0x438   : > { %4741 = vst [vmem:[#allocation1] ss:$4 sm:$0xff] %v4598_v44 }
 0x439   : > { %4742 = vst [vmem:[#allocation1 + $0x1] ss:$4 sm:$0xff] %v4599_v9  ;;  %v3892_v60 = vadd.f32 %v7686_v15, %v3852_v25  ;;  %v4083_v61 = vrot.slane %v4081_v34, 1  ;;  %v4086_v56 = vrot.slane %v4084_v52, 2  ;;  %v3250_v25 = vadd.f32 %v7471_v24, %v8167_v45 }
 0x43b   : > { %v3928_v5 = vmax.f32 %v3892_v60, 0.0 }
 0x43c   : > { %v4740_v2 = vld.sshfl [vmem:[#allocation1 + $0x20] sm:$0xff pattern:$0x73625140]  ;;  %v3563_v36 = vpop.f32.mrf.mxu1 }
 0x43d   : > { %v4852_v0 = vpack.c.bf16 %v4740_v2, %v4740_v2  ;;  %v4600_v33 = vrot.slane %v3928_v5, 2  ;;  %v4601_v8 = vrot.slane %v3928_v5, 4  ;;  %4743 = vst [vmem:[#allocation1 + $0x2] ss:$4 sm:$0xff] %v3928_v5  ;;  %v4351_v17 = vpop.f32.mrf.mxu0  ;;  %v3804_v11 = vpop.f32.mrf.mxu2  ;;  %v4602_v13 = vrot.slane %v3928_v5, 6 }
 0x43e   : > { %v3617_v30 = vadd.f32 %v3563_v36, %v3248_v27  ;;  %v7704_v42 = vadd.f32 %v4351_v17, %v7668_v4  ;;  %v3952_v62 = vpack.c.bf16 %v3928_v5, %v3927_v57  ;;  %v3249_v4 = vadd.f32 %v7460_v6, %v2888_v40  ;;  %v4202_v57 = vpop.f32.mrf.mxu3  ;;  %v8168_v36 = vld [vmem:[#allocation3_spill] sm:$0xff]  ;;  %v6020_v40 = vld [vmem:[%s6123_s12 + $0x88] sm:$0xff] }
 0x43f   : > { %4884 = vst.msk [vmem:[%s7439_s11 + $0x4c] sm:$0xf] %vm1073_vm0, %v4852_v0  ;;  %v8169_v0 = vld [vmem:[#allocation6_spill] sm:$0xff] }
 0x440   : > { %4744 = vst [vmem:[#allocation1 + $0x3] ss:$4 sm:$0xff] %v4600_v33  ;;  %v3853_v19 = vadd.f32 %v3799_v54, %v3617_v30  ;;  %5891 = vmatmul.msk.bf16.gmra.mxu0 %vm523_vm3, %v3952_v62  ;;  %v4087_v54 = vor.u32 %v4086_v56, %v4083_v61  ;;  %v2890_v33 = vadd.f32 %v8169_v0, %v8168_v36 }
 0x441   : > { %4745 = vst [vmem:[#allocation1 + $0x20] ss:$4 sm:$0xff] %v4601_v8 }
 0x442   : > { %4746 = vst [vmem:[#allocation1 + $0x21] ss:$4 sm:$0xff] %v4602_v13  ;;  %v3893_v37 = vadd.f32 %v7686_v15, %v3853_v19  ;;  %v4088_v6 = vsel %vm2300_vm10, %v4079_v55, %v4087_v54  ;;  %v4092_v19 = vshll.u32 %v6020_v40, 16  ;;  %v3251_v34 = vadd.f32 %v7486_v39, %v2890_v33  ;;  %v6021_v33 = vld [vmem:[%s6123_s12 + $0x90] sm:$0xff] }
 0x444   : > { %v3929_v20 = vmax.f32 %v3893_v37, 0.0  ;;  %v3565_v7 = vpop.f32.mrf.mxu1  ;;  %v4094_v37 = vrot.slane %v4092_v19, 2 }
 0x445   : > { %v3618_v46 = vadd.f32 %v3565_v7, %v3249_v4  ;;  %v4353_v31 = vpop.f32.mrf.mxu0  ;;  %v3806_v26 = vpop.f32.mrf.mxu2 }
 0x446   : > { %v4603_v59 = vrot.slane %v3929_v20, 2  ;;  %v4604_v18 = vrot.slane %v3929_v20, 6  ;;  %4747 = vst [vmem:[#allocation1 + $0x22] ss:$4 sm:$0xff] %v3929_v20  ;;  %v7715_v29 = vadd.f32 %v4353_v31, %v7689_v12  ;;  %v4205_v13 = vpop.f32.mrf.mxu3 }
 0x447   : > { %v4749_v43 = vld.sshfl [vmem:[#allocation1] sm:$0xff pattern:$0x73625140]  ;;  %v3854_v22 = vadd.f32 %v3801_v10, %v3618_v46  ;;  %5876 = vmatmul.msk.bf16.gmra.mxu3 %vm523_vm3, %v4088_v6 }
 0x448   : > { %v4853_v44 = vpack.c.bf16 %v4749_v43, %v4749_v43  ;;  %4748 = vst [vmem:[#allocation1 + $0x23] ss:$4 sm:$0xff] %v4603_v59 }
 0x449   : > { %4751 = vst [vmem:[#allocation1] ss:$4 sm:$0xff] %v4604_v18  ;;  %v3894_v9 = vadd.f32 %v7686_v15, %v3854_v22 }
 0x44a   : > { %4885 = vst.msk [vmem:[%s7439_s11 + $0x50] sm:$0xf] %vm1073_vm0, %v4853_v44 }
 0x44b   : > { %v3930_v58 = vmax.f32 %v3894_v9, 0.0  ;;  %v8170_v9 = vld [vmem:[#allocation5_spill] sm:$0xff] }
 0x44c   : > { %v3568_v12 = vpop.f32.mrf.mxu1 }
 0x44d   : > { %v4605_v32 = vrot.slane %v3930_v58, 2  ;;  %v4606_v60 = vrot.slane %v3930_v58, 4  ;;  %v4607_v5 = vrot.slane %v3930_v58, 6  ;;  %4752 = vst [vmem:[#allocation1 + $0x1] ss:$4 sm:$0xff] %v3930_v58  ;;  %v3619_v10 = vadd.f32 %v3568_v12, %v3250_v25  ;;  %v4356_v55 = vpop.f32.mrf.mxu0  ;;  %v3809_v30 = vpop.f32.mrf.mxu2 }
 0x44e   : > { %v7724_v2 = vadd.f32 %v4356_v55, %v4200_v63  ;;  %v3953_v27 = vpack.c.bf16 %v3930_v58, %v3929_v20  ;;  %v4089_v63 = vshrl.u32 %v6020_v40, 16  ;;  %v7738_v22 = vpop.f32.mrf.mxu3 }
 0x44f   : > { %v4750_v8 = vld.sshfl [vmem:[#allocation1 + $0x20] sm:$0xff pattern:$0x73625140]  ;;  %4753 = vst [vmem:[#allocation1 + $0x2] ss:$4 sm:$0xff] %v4605_v32  ;;  %v3855_v17 = vadd.f32 %v3804_v11, %v3619_v10  ;;  %v8172_v10 = vld [vmem:[#allocation7_spill] sm:$0xff] }
 0x450   : > { %v4854_v24 = vpack.c.bf16 %v4750_v8, %v4750_v8  ;;  %4754 = vst [vmem:[#allocation1 + $0x3] ss:$4 sm:$0xff] %v4606_v60  ;;  %5892 = vmatmul.msk.bf16.gmra.mxu0 %vm523_vm3, %v3953_v27  ;;  %v4091_v52 = vrot.slane %v4089_v63, 1  ;;  %v4097_v8 = vshrl.u32 %v6021_v33, 16 }
 0x451   : > { %4755 = vst [vmem:[#allocation1 + $0x20] ss:$4 sm:$0xff] %v4607_v5  ;;  %v3895_v62 = vadd.f32 %v7686_v15, %v3855_v17  ;;  %v8171_v5 = vld [vmem:[#allocation8_spill] sm:$0xff]  ;;  %v4100_v17 = vshll.u32 %v6021_v33, 16 }
 0x452   : > { %4886 = vst.msk [vmem:[%s7439_s11 + $0x54] sm:$0xf] %vm1073_vm0, %v4854_v24  ;;  %v4095_v7 = vor.u32 %v4094_v37, %v4091_v52  ;;  %v2892_v55 = vadd.f32 %v8172_v10, %v8171_v5  ;;  %v4099_v40 = vrot.slane %v4097_v8, 1 }
 0x453   : > { %v3931_v49 = vmax.f32 %v3895_v62, 0.0  ;;  %v4102_v63 = vrot.slane %v4100_v17, 2 }
 0x454   : > { %v3570_v11 = vpop.f32.mrf.mxu1  ;;  %v4096_v18 = vsel %vm2300_vm10, %v4087_v54, %v4095_v7  ;;  %v3253_v24 = vadd.f32 %v7510_v53, %v2892_v55 }
 0x455   : > { %v4608_v4 = vrot.slane %v3931_v49, 2  ;;  %v4609_v61 = vrot.slane %v3931_v49, 4  ;;  %4756 = vst [vmem:[#allocation1 + $0x21] ss:$4 sm:$0xff] %v3931_v49  ;;  %v3620_v56 = vadd.f32 %v3570_v11, %v3251_v34  ;;  %v4358_v20 = vpop.f32.mrf.mxu0  ;;  %v3811_v6 = vpop.f32.mrf.mxu2 }
 0x456   : > { %v7734_v46 = vadd.f32 %v4358_v20, %v4202_v57  ;;  %v3252_v57 = vadd.f32 %v7498_v1, %v8170_v9  ;;  %v7755_v62 = vpop.f32.mrf.mxu3 }
 0x457   : > { %v4759_v31 = vld.sshfl [vmem:[#allocation1] sm:$0xff pattern:$0x73625140]  ;;  %4757 = vst [vmem:[#allocation1 + $0x22] ss:$4 sm:$0xff] %v4608_v4  ;;  %v3856_v59 = vadd.f32 %v3806_v26, %v3620_v56  ;;  %5877 = vmatmul.msk.bf16.gmra.mxu3 %vm523_vm3, %v4096_v18  ;;  %v7759_v4 = vor.u32 %v4102_v63, %v4099_v40  ;;  %v8173_v18 = vld [vmem:[#allocation10_spill] sm:$0xff] }
 0x458   : > { %v4855_v43 = vpack.c.bf16 %v4759_v31, %v4759_v31  ;;  %4758 = vst [vmem:[#allocation1 + $0x23] ss:$4 sm:$0xff] %v4609_v61 }
 0x459   : > { %v3896_v39 = vadd.f32 %v7686_v15, %v3856_v59  ;;  %v4104_v53 = vsel %vm2300_vm10, %v4095_v7, %v7759_v4 }
 0x45a   : > { %4887 = vst.msk [vmem:[%s7439_s11 + $0x58] sm:$0xf] %vm1073_vm0, %v4855_v43  ;;  %v3254_v43 = vadd.f32 %v7524_v3, %v8173_v18 }
 0x45b   : > { %v3932_v44 = vmax.f32 %v3896_v39, 0.0 }
 0x45c   : > { %v3573_v58 = vpop.f32.mrf.mxu1 }
 0x45d   : > { %v4610_v45 = vrot.slane %v3932_v44, 2  ;;  %v4611_v26 = vrot.slane %v3932_v44, 4  ;;  %v4612_v54 = vrot.slane %v3932_v44, 6  ;;  %4761 = vst [vmem:[#allocation1] ss:$4 sm:$0xff] %v3932_v44  ;;  %v3621_v25 = vadd.f32 %v3573_v58, %v3252_v57  ;;  %v4361_v12 = vpop.f32.mrf.mxu0 }
 0x45e   : > { %v7745_v32 = vadd.f32 %v4361_v12, %v4205_v13  ;;  %v3954_v60 = vpack.c.bf16 %v3932_v44, %v3931_v49  ;;  %v7769_v58 = vpop.f32.mrf.mxu3 }
 0x45f   : > { %v4760_v27 = vld.sshfl [vmem:[#allocation1 + $0x20] sm:$0xff pattern:$0x73625140]  ;;  %4762 = vst [vmem:[#allocation1 + $0x1] ss:$4 sm:$0xff] %v4610_v45  ;;  %v3857_v36 = vadd.f32 %v3809_v30, %v3621_v25  ;;  %v3814_v30 = vpop.f32.mrf.mxu2 }
 0x460   : > { %v4856_v0 = vpack.c.bf16 %v4760_v27, %v4760_v27  ;;  %4763 = vst [vmem:[#allocation1 + $0x2] ss:$4 sm:$0xff] %v4611_v26  ;;  %5893 = vmatmul.msk.bf16.gmra.mxu0 %vm523_vm3, %v3954_v60  ;;  %v8175_v25 = vld [vmem:[#allocation48_spill] sm:$0xff] }
 0x461   : > { %4764 = vst [vmem:[#allocation1 + $0x3] ss:$4 sm:$0xff] %v4612_v54  ;;  %v3897_v1 = vadd.f32 %v7686_v15, %v3857_v36  ;;  %v8174_v54 = vld [vmem:[#allocation9_spill] sm:$0xff] }
 0x462   : > { %4888 = vst.msk [vmem:[%s7439_s11 + $0x5c] sm:$0xf] %vm1073_vm0, %v4856_v0  ;;  %v2894_v12 = vadd.f32 %v8175_v25, %v8174_v54 }
 0x463   : > { %v3933_v13 = vmax.f32 %v3897_v1, 0.0 }
 0x464   : > { %v3575_v19 = vpop.f32.mrf.mxu1  ;;  %v3255_v27 = vadd.f32 %v7540_v28, %v2894_v12 }
 0x465   : > { %v4613_v49 = vrot.slane %v3933_v13, 2  ;;  %v4614_v34 = vrot.slane %v3933_v13, 4  ;;  %v4615_v52 = vrot.slane %v3933_v13, 6  ;;  %4765 = vst [vmem:[#allocation1 + $0x20] ss:$4 sm:$0xff] %v3933_v13  ;;  %v3622_v37 = vadd.f32 %v3575_v19, %v3253_v24  ;;  %v7757_v11 = vpop.f32.mrf.mxu0 }
 0x466   : > { %v7783_v63 = vpop.f32.mrf.mxu3 }
 0x467   : > { %4766 = vst [vmem:[#allocation1 + $0x21] ss:$4 sm:$0xff] %v4613_v49  ;;  %v3858_v61 = vadd.f32 %v3811_v6, %v3622_v37  ;;  %5878 = vmatmul.msk.bf16.gmra.mxu3 %vm523_vm3, %v4104_v53  ;;  %v3816_v45 = vpop.f32.mrf.mxu2 }
 0x468   : > { %v4769_v56 = vld.sshfl [vmem:[#allocation1] sm:$0xff pattern:$0x73625140]  ;;  %4767 = vst [vmem:[#allocation1 + $0x22] ss:$4 sm:$0xff] %v4614_v34 }
 0x469   : > { %v4857_v20 = vpack.c.bf16 %v4769_v56, %v4769_v56  ;;  %4768 = vst [vmem:[#allocation1 + $0x23] ss:$4 sm:$0xff] %v4615_v52  ;;  %v3898_v31 = vadd.f32 %v7686_v15, %v3858_v61  ;;  %v8176_v34 = vld [vmem:[#allocation12_spill] sm:$0xff] }
 0x46a   : > { %v3256_v52 = vadd.f32 %v7555_v21, %v8176_v34 }
 0x46b   : > { %4889 = vst.msk [vmem:[%s7439_s11 + $0x60] sm:$0xf] %vm1073_vm0, %v4857_v20  ;;  %v3934_v59 = vmax.f32 %v3898_v31, 0.0 }
 0x46c   : > { %v3578_v39 = vpop.f32.mrf.mxu1 }
 0x46d   : > { %v4616_v44 = vrot.slane %v3934_v59, 2  ;;  %v4617_v6 = vrot.slane %v3934_v59, 4  ;;  %v4618_v9 = vrot.slane %v3934_v59, 6  ;;  %v3623_v57 = vadd.f32 %v3578_v39, %v3254_v43  ;;  %v7771_v7 = vpop.f32.mrf.mxu0 }
 0x46e   : > { %v3955_v26 = vpack.c.bf16 %v3934_v59, %v3933_v13  ;;  %v6022_v13 = vld [vmem:[%s6123_s12 + $0x98] sm:$0xff]  }
 0x46f   : > { %4771 = vst [vmem:[#allocation1] ss:$4 sm:$0xff] %v4616_v44  ;;  %v3859_v60 = vadd.f32 %v3814_v30, %v3623_v57  ;;  %v5974_v24 = vunpack.c.l.b16 %v6022_v13  ;;  %v3819_v30 = vpop.f32.mrf.mxu2 }
 0x470   : > { %v4770_v5 = vld.sshfl [vmem:[#allocation1 + $0x20] sm:$0xff pattern:$0x73625140]  ;;  %4772 = vst [vmem:[#allocation1 + $0x1] ss:$4 sm:$0xff] %v4617_v6  ;;  %5894 = vmatmul.msk.bf16.gmra.mxu0 %vm523_vm3, %v3955_v26  ;;  %v8177_v6 = vld [vmem:[#allocation11_spill] sm:$0xff] }
 0x471   : > { %v4858_v3 = vpack.c.bf16 %v4770_v5, %v4770_v5  ;;  %4773 = vst [vmem:[#allocation1 + $0x2] ss:$4 sm:$0xff] %v4618_v9  ;;  %v3899_v10 = vadd.f32 %v7686_v15, %v3859_v60  ;;  %v3961_v19 = vpack.c.b16 %v5974_v24, %v5974_v24  ;;  %v8178_v9 = vld [vmem:[#allocation45_spill] sm:$0xff] }
 0x472   : > { %v2896_v57 = vadd.f32 %v8178_v9, %v8177_v6 }
 0x473   : > { %4890 = vst.msk [vmem:[%s7439_s11 + $0x64] sm:$0xf] %vm1073_vm0, %v4858_v3  ;;  %v3935_v55 = vmax.f32 %v3899_v10, 0.0  ;;  %v4106_v18 = vshrl.u32 %v3961_v19, 16  ;;  %v4109_v43 = vshll.u32 %v3961_v19, 16 }
 0x474   : > { %v3580_v36 = vpop.f32.mrf.mxu1  ;;  %v3257_v5 = vadd.f32 %v7572_v23, %v2896_v57 }
 0x475   : > { %v4619_v0 = vrot.slane %v3935_v55, 2  ;;  %v4620_v1 = vrot.slane %v3935_v55, 4  ;;  %v4621_v33 = vrot.slane %v3935_v55, 6  ;;  %4774 = vst [vmem:[#allocation1 + $0x3] ss:$4 sm:$0xff] %v3935_v55  ;;  %v3624_v8 = vadd.f32 %v3580_v36, %v3255_v27  ;;  %v7780_v17 = vpop.f32.mrf.mxu0 }
 0x476   : > { %v4108_v26 = vrot.slane %v4106_v18, 1  ;;  %v4111_v54 = vrot.slane %v4109_v43, 2  ;;  %v7822_v43 = vld [vmem:[%s8046_s8] ss:$0 sm:$0xff] }
 0x477   : > { %4775 = vst [vmem:[#allocation1 + $0x20] ss:$4 sm:$0xff] %v4619_v0  ;;  %v3860_v40 = vadd.f32 %v3816_v45, %v3624_v8  ;;  %v7796_v45 = vpop.f32.mrf.mxu3  ;;  %v3821_v25 = vpop.f32.mrf.mxu2 }
 0x478   : > { %4776 = vst [vmem:[#allocation1 + $0x21] ss:$4 sm:$0xff] %v4620_v1  ;;  %v4112_v0 = vor.u32 %v4111_v54, %v4108_v26 }
 0x479   : > { %4777 = vst [vmem:[#allocation1 + $0x22] ss:$4 sm:$0xff] %v4621_v33  ;;  %v3900_v28 = vadd.f32 %v7686_v15, %v3860_v40  ;;  %v8179_v40 = vld [vmem:[#allocation14_spill] sm:$0xff] }
 0x47a   : > { %v4113_v23 = vsel %vm2300_vm10, %v7759_v4, %v4112_v0 }
 0x47b   : > { %v3936_v49 = vmax.f32 %v3900_v28, 0.0  ;;  %5879 = vmatmul.msk.bf16.gmra.mxu3 %vm523_vm3, %v4113_v23 }
 0x47c   : > { %v4779_v37 = vld.sshfl [vmem:[#allocation1] sm:$0xff pattern:$0x73625140]  ;;  %v3583_v61 = vpop.f32.mrf.mxu1 }
 0x47d   : > { %v4859_v56 = vpack.c.bf16 %v4779_v37, %v4779_v37  ;;  %v4622_v53 = vrot.slane %v3936_v49, 4  ;;  %v4623_v20 = vrot.slane %v3936_v49, 6  ;;  %4778 = vst [vmem:[#allocation1 + $0x23] ss:$4 sm:$0xff] %v3936_v49  ;;  %v3625_v31 = vadd.f32 %v3583_v61, %v3256_v52  ;;  %v7788_v59 = vpop.f32.mrf.mxu0 }
 0x47e   : > { %v3956_v39 = vpack.c.bf16 %v3936_v49, %v3935_v55 }
 0x47f   : > { %4891 = vst.msk [vmem:[%s7439_s11 + $0x68] sm:$0xf] %vm1073_vm0, %v4859_v56  ;;  %v3861_v44 = vadd.f32 %v3819_v30, %v3625_v31  ;;  %v7806_v24 = vpop.f32.mrf.mxu3  ;;  %v3258_v30 = vadd.f32 %v7592_v16, %v8179_v40  ;;  %v3824_v28 = vpop.f32.mrf.mxu2 }
 0x480   : > { %4781 = vst [vmem:[#allocation1] ss:$4 sm:$0xff] %v4622_v53  ;;  %5895 = vmatmul.msk.bf16.gmra.mxu0 %vm523_vm3, %v3956_v39  ;;  %v8180_v53 = vld [vmem:[#allocation13_spill] sm:$0xff] }
 0x481   : > { %4782 = vst [vmem:[#allocation1 + $0x1] ss:$4 sm:$0xff] %v4623_v20  ;;  %v3901_v21 = vadd.f32 %v7686_v15, %v3861_v44  ;;  %v2898_v4 = vadd.f32 %v7548_v14, %v8180_v53 }
 0x483   : > { %v3937_v12 = vmax.f32 %v3901_v21, 0.0  ;;  %v3259_v44 = vadd.f32 %v7614_v48, %v2898_v4 }
 0x484   : > { %v4780_v60 = vld.sshfl [vmem:[#allocation1 + $0x20] sm:$0xff pattern:$0x73625140]  ;;  %v3585_v3 = vpop.f32.mrf.mxu1 }
 0x485   : > { %v4860_v10 = vpack.c.bf16 %v4780_v60, %v4780_v60  ;;  %v4624_v55 = vrot.slane %v3937_v12, 2  ;;  %v4625_v27 = vrot.slane %v3937_v12, 4  ;;  %4783 = vst [vmem:[#allocation1 + $0x2] ss:$4 sm:$0xff] %v3937_v12  ;;  %v7799_v36 = vpop.f32.mrf.mxu0  ;;  %v4626_v1 = vrot.slane %v3937_v12, 6 }
 0x486   : > { %v3626_v33 = vadd.f32 %v3585_v3, %v3257_v5 }
 0x487   : > { %4892 = vst.msk [vmem:[%s7439_s11 + $0x6c] sm:$0xf] %vm1073_vm0, %v4860_v10  ;;  %v7825_v21 = vpop.f32.mrf.mxu3  ;;  %v3826_v54 = vpop.f32.mrf.mxu2 }
 0x488   : > { %4784 = vst [vmem:[#allocation1 + $0x3] ss:$4 sm:$0xff] %v4624_v55  ;;  %v3862_v8 = vadd.f32 %v3821_v25, %v3626_v33 }
 0x489   : > { %4785 = vst [vmem:[#allocation1 + $0x20] ss:$4 sm:$0xff] %v4625_v27 }
 0x48a   : > { %4786 = vst [vmem:[#allocation1 + $0x21] ss:$4 sm:$0xff] %v4626_v1  ;;  %v3902_v13 = vadd.f32 %v7686_v15, %v3862_v8 }
 0x48c   : > { %v3938_v19 = vmax.f32 %v3902_v13, 0.0  ;;  %v3588_v49 = vpop.f32.mrf.mxu1 }
 0x48d   : > { %v3627_v34 = vadd.f32 %v3588_v49, %v3258_v30  ;;  %v7811_v52 = vpop.f32.mrf.mxu0  ;;  %v4432_v30 = vadd.f32 %v7822_v43, %v7655_v50  ;;  %v4433_v49 = vadd.f32 %v7822_v43, %v7666_v47  ;;  %v4434_v47 = vadd.f32 %v7822_v43, %v7678_v41 }
 0x48e   : > { %v4627_v37 = vrot.slane %v3938_v19, 2  ;;  %v4628_v61 = vrot.slane %v3938_v19, 6  ;;  %4787 = vst [vmem:[#allocation1 + $0x22] ss:$4 sm:$0xff] %v3938_v19  ;;  %v3957_v56 = vpack.c.bf16 %v3938_v19, %v3937_v12  ;;  %v4430_v12 = vadd.f32 %v7822_v43, %v7626_v35 }
 0x48f   : > { %v4789_v20 = vld.sshfl [vmem:[#allocation1] sm:$0xff pattern:$0x73625140]  ;;  %v3863_v31 = vadd.f32 %v3824_v28, %v3627_v34  ;;  %v7834_v35 = vpop.f32.mrf.mxu3  ;;  %v4468_v28 = vmax.f32 %v4432_v30, 0.0  ;;  %v4431_v19 = vadd.f32 %v7822_v43, %v7643_v38  ;;  %v4469_v38 = vmax.f32 %v4433_v49, 0.0 }
 0x490   : > { %v4861_v18 = vpack.c.bf16 %v4789_v20, %v4789_v20  ;;  %4788 = vst [vmem:[#allocation1 + $0x23] ss:$4 sm:$0xff] %v4627_v37  ;;  %5896 = vmatmul.msk.bf16.gmra.mxu0 %vm523_vm3, %v3957_v56  ;;  %v4466_v10 = vmax.f32 %v4430_v12, 0.0 }
 0x491   : > { %4791 = vst [vmem:[#allocation1] ss:$4 sm:$0xff] %v4628_v61  ;;  %v3903_v16 = vadd.f32 %v7686_v15, %v3863_v31  ;;  %v4939_v34 = vrot.slane %v4468_v28, 2  ;;  %v4467_v50 = vmax.f32 %v4431_v19, 0.0  ;;  %v4940_v56 = vrot.slane %v4468_v28, 4 }
 0x492   : > { %4893 = vst.msk [vmem:[%s7439_s11 + $0x70] sm:$0xf] %vm1073_vm0, %v4861_v18  ;;  %v4933_v0 = vrot.slane %v4466_v10, 2  ;;  %v4934_v13 = vrot.slane %v4466_v10, 4  ;;  %v4935_v40 = vrot.slane %v4466_v10, 6  ;;  %v4941_v4 = vrot.slane %v4468_v28, 6 }
 0x493   : > { %v3939_v39 = vmax.f32 %v3903_v16, 0.0  ;;  %v4435_v16 = vadd.f32 %v7822_v43, %v7694_v51  ;;  %v4439_v28 = vadd.f32 %v7822_v43, %v7734_v46  ;;  %v4364_v46 = vadd.f32 %v7757_v11, %v7738_v22 }
 0x494   : > { %v3590_v14 = vpop.f32.mrf.mxu1 }
 0x495   : > { %v4629_v6 = vrot.slane %v3939_v39, 2  ;;  %v4630_v9 = vrot.slane %v3939_v39, 4  ;;  %v4631_v57 = vrot.slane %v3939_v39, 6  ;;  %4792 = vst [vmem:[#allocation1 + $0x1] ss:$4 sm:$0xff] %v3939_v39  ;;  %v3628_v26 = vadd.f32 %v3590_v14, %v3259_v44  ;;  %v7827_v25 = vpop.f32.mrf.mxu0 }
 0x496   : > { %v4470_v44 = vmax.f32 %v4434_v47, 0.0  ;;  %v4937_v14 = vrot.slane %v4467_v50, 4 }
 0x497   : > { %v4790_v60 = vld.sshfl [vmem:[#allocation1 + $0x20] sm:$0xff pattern:$0x73625140]  ;;  %4793 = vst [vmem:[#allocation1 + $0x2] ss:$4 sm:$0xff] %v4629_v6  ;;  %v3864_v5 = vadd.f32 %v3826_v54, %v3628_v26  ;;  %v7847_v37 = vpop.f32.mrf.mxu3  ;;  %v4938_v6 = vrot.slane %v4467_v50, 6 }
 0x498   : > { %v4862_v3 = vpack.c.bf16 %v4790_v60, %v4790_v60  ;;  %4794 = vst [vmem:[#allocation1 + $0x3] ss:$4 sm:$0xff] %v4630_v9  ;;  %v4471_v9 = vmax.f32 %v4435_v16, 0.0  ;;  %v4945_v26 = vrot.slane %v4470_v44, 4  ;;  %v4946_v51 = vrot.slane %v4470_v44, 6 }
 0x499   : > { %4795 = vst [vmem:[#allocation1 + $0x20] ss:$4 sm:$0xff] %v4631_v57  ;;  %v3904_v48 = vadd.f32 %v7686_v15, %v3864_v5  ;;  %v4436_v5 = vadd.f32 %v7822_v43, %v7704_v42 }
 0x49a   : > { %4894 = vst.msk [vmem:[%s7439_s11 + $0x74] sm:$0xf] %vm1073_vm0, %v4862_v3  ;;  %v4947_v60 = vrot.slane %v4471_v9, 2  ;;  %v4437_v3 = vadd.f32 %v7822_v43, %v7715_v29  ;;  %v4948_v19 = vrot.slane %v4471_v9, 4  ;;  %v4949_v49 = vrot.slane %v4471_v9, 6 }
 0x49b   : > { %v3940_v55 = vmax.f32 %v3904_v48, 0.0  ;;  %v4942_v48 = vrot.slane %v4469_v38, 2 }
 0x49d   : > { %v4632_v27 = vrot.slane %v3940_v55, 2  ;;  %4796 = vst [vmem:[#allocation1 + $0x21] ss:$4 sm:$0xff] %v3940_v55  ;;  %v7836_v8 = vpop.f32.mrf.mxu0  ;;  %v4633_v23 = vrot.slane %v3940_v55, 4  ;;  %v3958_v15 = vpack.c.bf16 %v3940_v55, %v3939_v39  ;;  %v4936_v39 = vrot.slane %v4467_v50, 2 }
 0x49e   : > { %v4472_v55 = vmax.f32 %v4436_v5, 0.0 }
 0x49f   : > { %v4799_v1 = vld.sshfl [vmem:[#allocation1] sm:$0xff pattern:$0x73625140]  ;;  %4797 = vst [vmem:[#allocation1 + $0x22] ss:$4 sm:$0xff] %v4632_v27  ;;  %v7866_v41 = vpop.f32.mrf.mxu3 }
 0x4a0   : > { %v4863_v33 = vpack.c.bf16 %v4799_v1, %v4799_v1  ;;  %5029 = vst [vmem:[#allocation1] ss:$4 sm:$0xff] %v4466_v10  ;;  %5897 = vmatmul.msk.bf16.gmra.mxu0 %vm523_vm3, %v3958_v15  ;;  %v4943_v10 = vrot.slane %v4469_v38, 4  ;;  %v4951_v29 = vrot.slane %v4472_v55, 6 }
 0x4a1   : > { %5031 = vst [vmem:[#allocation1 + $0x1] ss:$4 sm:$0xff] %v4933_v0  ;;  %v4944_v0 = vrot.slane %v4469_v38, 6 }
 0x4a2   : > { %4895 = vst.msk [vmem:[%s7439_s11 + $0x78] sm:$0xf] %vm1073_vm0, %v4863_v33 }
 0x4a3   : > { %5033 = vst [vmem:[#allocation1 + $0x2] ss:$4 sm:$0xff] %v4934_v13  ;;  %v4473_v13 = vmax.f32 %v4437_v3, 0.0 }
 0x4a4   : > { %5035 = vst [vmem:[#allocation1 + $0x3] ss:$4 sm:$0xff] %v4935_v40 }
 0x4a5   : > { %4798 = vst [vmem:[#allocation1 + $0x23] ss:$4 sm:$0xff] %v4633_v23  ;;  %v7849_v61 = vpop.f32.mrf.mxu0  ;;  %v4952_v15 = vrot.slane %v4473_v13, 2  ;;  %v4953_v30 = vrot.slane %v4473_v13, 4  ;;  %v4954_v11 = vrot.slane %v4473_v13, 6 }
 0x4a7   : > { %v7878_v42 = vpop.f32.mrf.mxu3 }
 0x4ab   : > { %v5044_v53 = vld.sshfl [vmem:[#allocation1] sm:$0xff pattern:$0x73625140] }
 0x4ac   : > { %5046 = vst [vmem:[#allocation1] ss:$4 sm:$0xff] %v4939_v34  ;;  %v5228_v20 = vpack.c.bf16 %v5044_v53, %v5044_v53  ;;  %v4800_v31 = vld.sshfl [vmem:[#allocation1 + $0x20] sm:$0xff pattern:$0x73625140] }
 0x4ad   : > { %5047 = vst [vmem:[#allocation1 + $0x1] ss:$4 sm:$0xff] %v4940_v56  ;;  %v4864_v18 = vpack.c.bf16 %v4800_v31, %v4800_v31  ;;  %v7868_v57 = vpop.f32.mrf.mxu0  ;;  %v4475_v56 = vmax.f32 %v4439_v28, 0.0  ;;  %v4438_v31 = vadd.f32 %v7822_v43, %v7724_v2  ;;  %v4367_v2 = vadd.f32 %v7771_v7, %v7755_v62 }
 0x4ae   : > { %5048 = vst [vmem:[#allocation1 + $0x2] ss:$4 sm:$0xff] %v4941_v4  ;;  %v4369_v62 = vadd.f32 %v7780_v17, %v7769_v58  ;;  %v4374_v28 = vadd.f32 %v7799_v36, %v7796_v45 }
 0x4af   : > { %5049 = vst [vmem:[#allocation1 + $0x3] ss:$4 sm:$0xff] %v4469_v38  ;;  %v7888_v4 = vpop.f32.mrf.mxu3  ;;  %v4957_v38 = vrot.slane %v4475_v56, 2  ;;  %v4442_v5 = vadd.f32 %v7822_v43, %v4367_v2 }
 0x4b0   : > { %5261 = vst.msk [vmem:[%s7856_s20] sm:$0xf] %vm5260_vm11, %v5228_v20  ;;  %v4950_v20 = vrot.slane %v4472_v55, 2 }
 0x4b1   : > { %4896 = vst.msk [vmem:[%s7439_s11 + $0x7c] sm:$0xf] %vm1073_vm0, %v4864_v18  ;;  %v4958_v18 = vrot.slane %v4475_v56, 4 }
 0x4b2   : > { %5037 = vst [vmem:[#allocation1 + $0x20] ss:$4 sm:$0xff] %v4467_v50 }
 0x4b3   : > { %5039 = vst [vmem:[#allocation1 + $0x21] ss:$4 sm:$0xff] %v4936_v39  ;;  %v4959_v39 = vrot.slane %v4475_v56, 6 }
 0x4b4   : > { %5041 = vst [vmem:[#allocation1 + $0x22] ss:$4 sm:$0xff] %v4937_v14  ;;  %v4474_v14 = vmax.f32 %v4438_v31, 0.0 }
 0x4b5   : > { %5043 = vst [vmem:[#allocation1 + $0x23] ss:$4 sm:$0xff] %v4938_v6  ;;  %v7876_v33 = vpop.f32.mrf.mxu0 }
 0x4b6   : > { %v5054_v54 = vld.sshfl [vmem:[#allocation1] sm:$0xff pattern:$0x73625140] }
 0x4b7   : > { %5056 = vst [vmem:[#allocation1] ss:$4 sm:$0xff] %v4945_v26  ;;  %v5230_v12 = vpack.c.bf16 %v5054_v54, %v5054_v54  ;;  %v7903_v26 = vpop.f32.mrf.mxu3 }
 0x4b8   : > { %5057 = vst [vmem:[#allocation1 + $0x1] ss:$4 sm:$0xff] %v4946_v51  ;;  %v4955_v51 = vrot.slane %v4474_v14, 2 }
 0x4b9   : > { %5058 = vst [vmem:[#allocation1 + $0x2] ss:$4 sm:$0xff] %v4471_v9 }
 0x4ba   : > { %5059 = vst [vmem:[#allocation1 + $0x3] ss:$4 sm:$0xff] %v4947_v60  ;;  %v4440_v60 = vadd.f32 %v7822_v43, %v7745_v32 }
 0x4bb   : > { %5263 = vst.msk [vmem:[%s7856_s20 + $0x8] sm:$0xf] %vm5260_vm11, %v5230_v12  ;;  %v4956_v12 = vrot.slane %v4474_v14, 4 }
 0x4bc   : > { %v5045_v27 = vld.sshfl [vmem:[#allocation1 + $0x20] sm:$0xff pattern:$0x73625140]  ;;  %v4476_v32 = vmax.f32 %v4440_v60, 0.0 }
 0x4bd   : > { %5050 = vst [vmem:[#allocation1 + $0x20] ss:$4 sm:$0xff] %v4942_v48  ;;  %v5229_v1 = vpack.c.bf16 %v5045_v27, %v5045_v27  ;;  %v7886_v50 = vpop.f32.mrf.mxu0 }
 0x4be   : > { %5051 = vst [vmem:[#allocation1 + $0x21] ss:$4 sm:$0xff] %v4943_v10 }
 0x4bf   : > { %5052 = vst [vmem:[#allocation1 + $0x22] ss:$4 sm:$0xff] %v4944_v0  ;;  %v4478_v0 = vmax.f32 %v4442_v5, 0.0 }
 0x4c0   : > { %5053 = vst [vmem:[#allocation1 + $0x23] ss:$4 sm:$0xff] %v4470_v44  ;;  %v4441_v44 = vadd.f32 %v7822_v43, %v4364_v46  ;;  %v4445_v46 = vadd.f32 %v7822_v43, %v4374_v28 }
 0x4c1   : > { %v5064_v23 = vld.sshfl [vmem:[#allocation1] sm:$0xff pattern:$0x73625140]  ;;  %5262 = vst.msk [vmem:[%s7856_s20 + $0x4] sm:$0xf] %vm5260_vm11, %v5229_v1  ;;  %v4443_v1 = vadd.f32 %v7822_v43, %v4369_v62  ;;  %v4379_v62 = vadd.f32 %v7827_v25, %v7825_v21 }
 0x4c2   : > { %5066 = vst [vmem:[#allocation1] ss:$4 sm:$0xff] %v4951_v29  ;;  %v5232_v40 = vpack.c.bf16 %v5064_v23, %v5064_v23  ;;  %v4477_v6 = vmax.f32 %v4441_v44, 0.0  ;;  %v4960_v29 = vrot.slane %v4476_v32, 2  ;;  %v4961_v23 = vrot.slane %v4476_v32, 4 }
 0x4c3   : > { %5067 = vst [vmem:[#allocation1 + $0x1] ss:$4 sm:$0xff] %v4473_v13  ;;  %v7920_v13 = vpop.f32.mrf.mxu3 }
 0x4c4   : > { %5068 = vst [vmem:[#allocation1 + $0x2] ss:$4 sm:$0xff] %v4952_v15  ;;  %v4963_v7 = vrot.slane %v4477_v6, 2  ;;  %v4964_v3 = vrot.slane %v4477_v6, 4  ;;  %v4965_v10 = vrot.slane %v4477_v6, 6  ;;  %v4382_v6 = vadd.f32 %v7836_v8, %v7834_v35 }
 0x4c5   : > { %5069 = vst [vmem:[#allocation1 + $0x3] ss:$4 sm:$0xff] %v4953_v30  ;;  %v7897_v22 = vpop.f32.mrf.mxu0 }
 0x4c6   : > { %5265 = vst.msk [vmem:[%s7856_s20 + $0x10] sm:$0xf] %vm5260_vm11, %v5232_v40  ;;  %v4962_v40 = vrot.slane %v4476_v32, 6 }
 0x4c7   : > { %v5055_v34 = vld.sshfl [vmem:[#allocation1 + $0x20] sm:$0xff pattern:$0x73625140] }
 0x4c8   : > { %5060 = vst [vmem:[#allocation1 + $0x20] ss:$4 sm:$0xff] %v4948_v19  ;;  %v5231_v53 = vpack.c.bf16 %v5055_v34, %v5055_v34  ;;  %v4377_v34 = vadd.f32 %v7811_v52, %v7806_v24  ;;  %v4967_v24 = vrot.slane %v4478_v0, 4  ;;  %v4481_v52 = vmax.f32 %v4445_v46, 0.0 }
 0x4c9   : > { %5061 = vst [vmem:[#allocation1 + $0x21] ss:$4 sm:$0xff] %v4949_v49 }
 0x4ca   : > { %5062 = vst [vmem:[#allocation1 + $0x22] ss:$4 sm:$0xff] %v4472_v55  ;;  %v4372_v55 = vadd.f32 %v7788_v59, %v7783_v63  ;;  %v4479_v63 = vmax.f32 %v4443_v1, 0.0  ;;  %v4446_v45 = vadd.f32 %v7822_v43, %v4377_v34  ;;  %v4975_v44 = vrot.slane %v4481_v52, 6 }
 0x4cb   : > { %5063 = vst [vmem:[#allocation1 + $0x23] ss:$4 sm:$0xff] %v4950_v20  ;;  %v7932_v36 = vpop.f32.mrf.mxu3  ;;  %v4974_v8 = vrot.slane %v4481_v52, 2 }
 0x4cc   : > { %v5074_v47 = vld.sshfl [vmem:[#allocation1] sm:$0xff pattern:$0x73625140]  ;;  %5264 = vst.msk [vmem:[%s7856_s20 + $0xc] sm:$0xf] %vm5260_vm11, %v5231_v53  ;;  %v4444_v17 = vadd.f32 %v7822_v43, %v4372_v55  ;;  %v4969_v19 = vrot.slane %v4479_v63, 4  ;;  %v4387_v55 = vadd.f32 %v7868_v57, %v7866_v41  ;;  %v4384_v57 = vadd.f32 %v7849_v61, %v7847_v37 }
 0x4cd   : > { %5076 = vst [vmem:[#allocation1] ss:$4 sm:$0xff] %v4475_v56  ;;  %v5234_v16 = vpack.c.bf16 %v5074_v47, %v5074_v47  ;;  %v7915_v58 = vpop.f32.mrf.mxu0  ;;  %v4970_v49 = vrot.slane %v4479_v63, 6 }
 0x4ce   : > { %5077 = vst [vmem:[#allocation1 + $0x1] ss:$4 sm:$0xff] %v4957_v38  ;;  %v4480_v30 = vmax.f32 %v4444_v17, 0.0  ;;  %v4966_v38 = vrot.slane %v4478_v0, 2  ;;  %v4449_v28 = vadd.f32 %v7822_v43, %v4384_v57 }
 0x4cf   : > { %5078 = vst [vmem:[#allocation1 + $0x2] ss:$4 sm:$0xff] %v4958_v18 }
 0x4d0   : > { %5079 = vst [vmem:[#allocation1 + $0x3] ss:$4 sm:$0xff] %v4959_v39  ;;  %v4971_v20 = vrot.slane %v4480_v30, 2  ;;  %v4482_v39 = vmax.f32 %v4446_v45, 0.0  ;;  %v4972_v60 = vrot.slane %v4480_v30, 4  ;;  %v4973_v5 = vrot.slane %v4480_v30, 6 }
 0x4d1   : > { %5267 = vst.msk [vmem:[%s7856_s20 + $0x18] sm:$0xf] %vm5260_vm11, %v5234_v16  ;;  %v4968_v16 = vrot.slane %v4478_v0, 6 }
 0x4d2   : > { %v5065_v9 = vld.sshfl [vmem:[#allocation1 + $0x20] sm:$0xff pattern:$0x73625140]  ;;  %v4978_v41 = vrot.slane %v4482_v39, 6 }
 0x4d3   : > { %5070 = vst [vmem:[#allocation1 + $0x20] ss:$4 sm:$0xff] %v4954_v11  ;;  %v5233_v54 = vpack.c.bf16 %v5065_v9, %v5065_v9  ;;  %v4976_v11 = vrot.slane %v4482_v39, 2 }
 0x4d4   : > { %5071 = vst [vmem:[#allocation1 + $0x21] ss:$4 sm:$0xff] %v4474_v14 }
 0x4d5   : > { %5072 = vst [vmem:[#allocation1 + $0x22] ss:$4 sm:$0xff] %v4955_v51  ;;  %v7929_v31 = vpop.f32.mrf.mxu0  ;;  %v4977_v51 = vrot.slane %v4482_v39, 4 }
 0x4d6   : > { %5073 = vst [vmem:[#allocation1 + $0x23] ss:$4 sm:$0xff] %v4956_v12  ;;  %v4448_v12 = vadd.f32 %v7822_v43, %v4382_v6 }
 0x4d7   : > { %v5084_v48 = vld.sshfl [vmem:[#allocation1] sm:$0xff pattern:$0x73625140]  ;;  %5266 = vst.msk [vmem:[%s7856_s20 + $0x14] sm:$0xf] %vm5260_vm11, %v5233_v54  ;;  %v7942_v54 = vpop.f32.mrf.mxu3 }
 0x4d8   : > { %5086 = vst [vmem:[#allocation1] ss:$4 sm:$0xff] %v4963_v7  ;;  %v5236_v27 = vpack.c.bf16 %v5084_v48, %v5084_v48 }
 0x4d9   : > { %5087 = vst [vmem:[#allocation1 + $0x1] ss:$4 sm:$0xff] %v4964_v3  ;;  %v4484_v3 = vmax.f32 %v4448_v12, 0.0 }
 0x4da   : > { %5088 = vst [vmem:[#allocation1 + $0x2] ss:$4 sm:$0xff] %v4965_v10  ;;  %v4447_v10 = vadd.f32 %v7822_v43, %v4379_v62 }
 0x4db   : > { %5089 = vst [vmem:[#allocation1 + $0x3] ss:$4 sm:$0xff] %v4478_v0  ;;  %v4981_v21 = vrot.slane %v4484_v3, 2  ;;  %v4982_v0 = vrot.slane %v4484_v3, 4  ;;  %v4983_v17 = vrot.slane %v4484_v3, 6 }
 0x4dc   : > { %5269 = vst.msk [vmem:[%s7856_s20 + $0x20] sm:$0xf] %vm5260_vm11, %v5236_v27  ;;  %v4483_v1 = vmax.f32 %v4447_v10, 0.0 }
 0x4dd   : > { %v5075_v59 = vld.sshfl [vmem:[#allocation1 + $0x20] sm:$0xff pattern:$0x73625140]  ;;  %v7940_v9 = vpop.f32.mrf.mxu0 }
 0x4de   : > { %5080 = vst [vmem:[#allocation1 + $0x20] ss:$4 sm:$0xff] %v4476_v32  ;;  %v5235_v15 = vpack.c.bf16 %v5075_v59, %v5075_v59  ;;  %v4979_v59 = vrot.slane %v4483_v1, 2 }
 0x4df   : > { %5081 = vst [vmem:[#allocation1 + $0x21] ss:$4 sm:$0xff] %v4960_v29  ;;  %v7956_v25 = vpop.f32.mrf.mxu3  ;;  %v4450_v29 = vadd.f32 %v7822_v43, %v4387_v55 }
 0x4e0   : > { %5082 = vst [vmem:[#allocation1 + $0x22] ss:$4 sm:$0xff] %v4961_v23 }
 0x4e1   : > { %5083 = vst [vmem:[#allocation1 + $0x23] ss:$4 sm:$0xff] %v4962_v40  ;;  %v4389_v40 = vadd.f32 %v7876_v33, %v7878_v42 }
 0x4e2   : > { %v5094_v56 = vld.sshfl [vmem:[#allocation1] sm:$0xff pattern:$0x73625140]  ;;  %5268 = vst.msk [vmem:[%s7856_s20 + $0x1c] sm:$0xf] %vm5260_vm11, %v5235_v15  ;;  %v4486_v15 = vmax.f32 %v4450_v29, 0.0 }
 0x4e3   : > { %5096 = vst [vmem:[#allocation1] ss:$4 sm:$0xff] %v4969_v19  ;;  %v5238_v53 = vpack.c.bf16 %v5094_v56, %v5094_v56  ;;  %v4451_v61 = vadd.f32 %v7822_v43, %v4389_v40 }
 0x4e4   : > { %5097 = vst [vmem:[#allocation1 + $0x1] ss:$4 sm:$0xff] %v4970_v49  ;;  %v4987_v37 = vrot.slane %v4486_v15, 2  ;;  %v4392_v49 = vadd.f32 %v7886_v50, %v7888_v4  ;;  %v4988_v42 = vrot.slane %v4486_v15, 4 }
 0x4e5   : > { %5098 = vst [vmem:[#allocation1 + $0x2] ss:$4 sm:$0xff] %v4480_v30  ;;  %v7952_v27 = vpop.f32.mrf.mxu0  ;;  %v4980_v30 = vrot.slane %v4483_v1, 4  ;;  %v4487_v46 = vmax.f32 %v4451_v61, 0.0 }
 0x4e6   : > { %5099 = vst [vmem:[#allocation1 + $0x3] ss:$4 sm:$0xff] %v4971_v20  ;;  %v4989_v20 = vrot.slane %v4486_v15, 6  ;;  %v4452_v45 = vadd.f32 %v7822_v43, %v4392_v49  ;;  %v4404_v55 = vadd.f32 %v7952_v27, %v7956_v25  ;;  %v4402_v27 = vadd.f32 %v7940_v9, %v7942_v54 }
 0x4e7   : > { %5271 = vst.msk [vmem:[%s7856_s20 + $0x28] sm:$0xf] %vm5260_vm11, %v5238_v53  ;;  %v7973_v34 = vpop.f32.mrf.mxu3  ;;  %v4485_v53 = vmax.f32 %v4449_v28, 0.0 }
 0x4e8   : > { %v5085_v47 = vld.sshfl [vmem:[#allocation1 + $0x20] sm:$0xff pattern:$0x73625140]  ;;  %v4457_v29 = vadd.f32 %v7822_v43, %v4404_v55  ;;  %v4456_v15 = vadd.f32 %v7822_v43, %v4402_v27 }
 0x4e9   : > { %v5237_v18 = vpack.c.bf16 %v5085_v47, %v5085_v47  ;;  %5090 = vst [vmem:[#allocation1 + $0x20] ss:$4 sm:$0xff] %v4966_v38  ;;  %v4394_v38 = vadd.f32 %v7897_v22, %v7903_v26  ;;  %v4984_v4 = vrot.slane %v4485_v53, 2  ;;  %v4488_v47 = vmax.f32 %v4452_v45, 0.0 }
 0x4ea   : > { %5091 = vst [vmem:[#allocation1 + $0x21] ss:$4 sm:$0xff] %v4967_v24  ;;  %v4492_v9 = vmax.f32 %v4456_v15, 0.0 }
 0x4eb   : > { %5270 = vst.msk [vmem:[%s7856_s20 + $0x24] sm:$0xf] %vm5260_vm11, %v5237_v18  ;;  %v4453_v18 = vadd.f32 %v7822_v43, %v4394_v38  ;;  %v4993_v22 = vrot.slane %v4488_v47, 4 }
 0x4ec   : > { %5092 = vst [vmem:[#allocation1 + $0x22] ss:$4 sm:$0xff] %v4968_v16  ;;  %v5003_v45 = vrot.slane %v4492_v9, 2 }
 0x4ed   : > { %v5104_v14 = vld.sshfl [vmem:[#allocation1] sm:$0xff pattern:$0x73625140]  ;;  %5093 = vst [vmem:[#allocation1 + $0x23] ss:$4 sm:$0xff] %v4479_v63  ;;  %v7966_v19 = vpop.f32.mrf.mxu0  ;;  %v4489_v26 = vmax.f32 %v4453_v18, 0.0 }
 0x4ee   : > { %5106 = vst [vmem:[#allocation1] ss:$4 sm:$0xff] %v4975_v44  ;;  %v5240_v2 = vpack.c.bf16 %v5104_v14, %v5104_v14  ;;  %v4397_v14 = vadd.f32 %v7915_v58, %v7920_v13 }
 0x4ef   : > { %5107 = vst [vmem:[#allocation1 + $0x1] ss:$4 sm:$0xff] %v4482_v39  ;;  %v4986_v39 = vrot.slane %v4485_v53, 6  ;;  %v4252_v44 = vpop.f32.mrf.mxu3  ;;  %v4995_v12 = vrot.slane %v4489_v26, 2  ;;  %v4997_v57 = vrot.slane %v4489_v26, 6 }
 0x4f0   : > { %5108 = vst [vmem:[#allocation1 + $0x2] ss:$4 sm:$0xff] %v4976_v11 }
 0x4f1   : > { %5109 = vst [vmem:[#allocation1 + $0x3] ss:$4 sm:$0xff] %v4977_v51  ;;  %v4399_v51 = vadd.f32 %v7929_v31, %v7932_v36 }
 0x4f2   : > { %5273 = vst.msk [vmem:[%s7856_s20 + $0x30] sm:$0xf] %vm5260_vm11, %v5240_v2  ;;  %v4994_v2 = vrot.slane %v4488_v47, 6 }
 0x4f4   : > { %v5095_v7 = vld.sshfl [vmem:[#allocation1 + $0x20] sm:$0xff pattern:$0x73625140] }
 0x4f5   : > { %5100 = vst [vmem:[#allocation1 + $0x20] ss:$4 sm:$0xff] %v4972_v60  ;;  %v5239_v35 = vpack.c.bf16 %v5095_v7, %v5095_v7  ;;  %v4408_v16 = vpop.f32.mrf.mxu0  ;;  %v4454_v60 = vadd.f32 %v7822_v43, %v4397_v14  ;;  %v4991_v7 = vrot.slane %v4487_v46, 4 }
 0x4f6   : > { %5101 = vst [vmem:[#allocation1 + $0x21] ss:$4 sm:$0xff] %v4973_v5  ;;  %v4990_v5 = vrot.slane %v4487_v46, 2  ;;  %v4409_v40 = vadd.f32 %v4408_v16, %v4252_v44 }
 0x4f7   : > { %5102 = vst [vmem:[#allocation1 + $0x22] ss:$4 sm:$0xff] %v4481_v52  ;;  %v4985_v52 = vrot.slane %v4485_v53, 4  ;;  %v4490_v31 = vmax.f32 %v4454_v60, 0.0  ;;  %v4255_v36 = vpop.f32.mrf.mxu3 }
 0x4f8   : > { %v5114_v48 = vld.sshfl [vmem:[#allocation1] sm:$0xff pattern:$0x73625140]  ;;  %5103 = vst [vmem:[#allocation1 + $0x23] ss:$4 sm:$0xff] %v4974_v8  ;;  %v4992_v8 = vrot.slane %v4487_v46, 6 }
 0x4f9   : > { %v5242_v32 = vpack.c.bf16 %v5114_v48, %v5114_v48  ;;  %5272 = vst.msk [vmem:[%s7856_s20 + $0x2c] sm:$0xf] %vm5260_vm11, %v5239_v35  ;;  %v4455_v35 = vadd.f32 %v7822_v43, %v4399_v51  ;;  %v4999_v48 = vrot.slane %v4490_v31, 6  ;;  %v4998_v25 = vrot.slane %v4490_v31, 2 }
 0x4fa   : > { %5116 = vst [vmem:[#allocation1] ss:$4 sm:$0xff] %v4484_v3 }
 0x4fb   : > { %5275 = vst.msk [vmem:[%s7856_s20 + $0x38] sm:$0xf] %vm5260_vm11, %v5242_v32  ;;  %v4491_v3 = vmax.f32 %v4455_v35, 0.0 }
 0x4fc   : > { %5117 = vst [vmem:[#allocation1 + $0x1] ss:$4 sm:$0xff] %v4981_v21 }
 0x4fd   : > { %5118 = vst [vmem:[#allocation1 + $0x2] ss:$4 sm:$0xff] %v4982_v0  ;;  %v4411_v58 = vpop.f32.mrf.mxu0  ;;  %v5000_v21 = vrot.slane %v4491_v3, 2  ;;  %v5001_v0 = vrot.slane %v4491_v3, 4 }
 0x4fe   : > { %5119 = vst [vmem:[#allocation1 + $0x3] ss:$4 sm:$0xff] %v4983_v17  ;;  %v4996_v17 = vrot.slane %v4489_v26, 4 }
 0x4ff   : > { %v5105_v63 = vld.sshfl [vmem:[#allocation1 + $0x20] sm:$0xff pattern:$0x73625140] }
 0x500   : > { %5110 = vst [vmem:[#allocation1 + $0x20] ss:$4 sm:$0xff] %v4978_v41  ;;  %v5241_v23 = vpack.c.bf16 %v5105_v63, %v5105_v63  ;;  %v4257_v63 = vpop.f32.mrf.mxu3 }
 0x501   : > { %5111 = vst [vmem:[#allocation1 + $0x21] ss:$4 sm:$0xff] %v4483_v1 }
 0x502   : > { %5112 = vst [vmem:[#allocation1 + $0x22] ss:$4 sm:$0xff] %v4979_v59 }
 0x503   : > { %5113 = vst [vmem:[#allocation1 + $0x23] ss:$4 sm:$0xff] %v4980_v30 }
 0x504   : > { %5274 = vst.msk [vmem:[%s7856_s20 + $0x34] sm:$0xf] %vm5260_vm11, %v5241_v23  ;;  %v4493_v23 = vmax.f32 %v4457_v29, 0.0 }
 0x505   : > { %v5124_v33 = vld.sshfl [vmem:[#allocation1] sm:$0xff pattern:$0x73625140]  ;;  %v4413_v1 = vpop.f32.mrf.mxu0 }
 0x506   : > { %v5244_v56 = vpack.c.bf16 %v5124_v33, %v5124_v33  ;;  %5126 = vst [vmem:[#allocation1] ss:$4 sm:$0xff] %v4987_v37  ;;  %v5005_v28 = vrot.slane %v4493_v23, 2  ;;  %v5006_v49 = vrot.slane %v4493_v23, 4  ;;  %v5007_v54 = vrot.slane %v4493_v23, 6 }
 0x507   : > { %5127 = vst [vmem:[#allocation1 + $0x1] ss:$4 sm:$0xff] %v4988_v42  ;;  %v4459_v33 = vadd.f32 %v7822_v43, %v4409_v40  ;;  %v4414_v18 = vadd.f32 %v4413_v1, %v4257_v63 }
 0x508   : > { %5277 = vst.msk [vmem:[%s7856_s20 + $0x40] sm:$0xf] %vm5260_vm11, %v5244_v56  ;;  %v4260_v42 = vpop.f32.mrf.mxu3  ;;  %v5002_v56 = vrot.slane %v4491_v3, 6 }
 0x509   : > { %5128 = vst [vmem:[#allocation1 + $0x2] ss:$4 sm:$0xff] %v4989_v20  ;;  %v4407_v20 = vadd.f32 %v7966_v19, %v7973_v34  ;;  %v4495_v38 = vmax.f32 %v4459_v33, 0.0 }
 0x50a   : > { %v5115_v50 = vld.sshfl [vmem:[#allocation1 + $0x20] sm:$0xff pattern:$0x73625140]  ;;  %5129 = vst [vmem:[#allocation1 + $0x3] ss:$4 sm:$0xff] %v4487_v46 }
 0x50b   : > { %v5243_v24 = vpack.c.bf16 %v5115_v50, %v5115_v50  ;;  %5120 = vst [vmem:[#allocation1 + $0x20] ss:$4 sm:$0xff] %v4485_v53  ;;  %v4412_v50 = vadd.f32 %v4411_v58, %v4255_v36  ;;  %v5012_v34 = vrot.slane %v4495_v38, 4  ;;  %v5013_v14 = vrot.slane %v4495_v38, 6 }
 0x50c   : > { %5121 = vst [vmem:[#allocation1 + $0x21] ss:$4 sm:$0xff] %v4984_v4  ;;  %v5004_v4 = vrot.slane %v4492_v9, 4 }
 0x50d   : > { %5276 = vst.msk [vmem:[%s7856_s20 + $0x3c] sm:$0xf] %vm5260_vm11, %v5243_v24  ;;  %v4416_v61 = vpop.f32.mrf.mxu0  ;;  %v4458_v24 = vadd.f32 %v7822_v43, %v4407_v20 }
 0x50e   : > { %5122 = vst [vmem:[#allocation1 + $0x22] ss:$4 sm:$0xff] %v4985_v52  ;;  %v5011_v52 = vrot.slane %v4495_v38, 2 }
 0x50f   : > { %5123 = vst [vmem:[#allocation1 + $0x23] ss:$4 sm:$0xff] %v4986_v39  ;;  %v4494_v44 = vmax.f32 %v4458_v24, 0.0 }
 0x511   : > { %v5134_v11 = vld.sshfl [vmem:[#allocation1] sm:$0xff pattern:$0x73625140]  ;;  %v5008_v51 = vrot.slane %v4494_v44, 2 }
 0x512   : > { %v5246_v6 = vpack.c.bf16 %v5134_v11, %v5134_v11  ;;  %5136 = vst [vmem:[#allocation1] ss:$4 sm:$0xff] %v4993_v22  ;;  %v4262_v22 = vpop.f32.mrf.mxu3 }
 0x513   : > { %5137 = vst [vmem:[#allocation1 + $0x1] ss:$4 sm:$0xff] %v4994_v2  ;;  %v4461_v2 = vadd.f32 %v7822_v43, %v4414_v18 }
 0x514   : > { %5279 = vst.msk [vmem:[%s7856_s20 + $0x48] sm:$0xf] %vm5260_vm11, %v5246_v6 }
 0x515   : > { %5138 = vst [vmem:[#allocation1 + $0x2] ss:$4 sm:$0xff] %v4489_v26  ;;  %v4418_v16 = vpop.f32.mrf.mxu0  ;;  %v4417_v26 = vadd.f32 %v4416_v61, %v4260_v42 }
 0x516   : > { %v5125_v62 = vld.sshfl [vmem:[#allocation1 + $0x20] sm:$0xff pattern:$0x73625140]  ;;  %5139 = vst [vmem:[#allocation1 + $0x3] ss:$4 sm:$0xff] %v4995_v12 }
 0x517   : > { %v5245_v13 = vpack.c.bf16 %v5125_v62, %v5125_v62  ;;  %5130 = vst [vmem:[#allocation1 + $0x20] ss:$4 sm:$0xff] %v4990_v5  ;;  %v4462_v12 = vadd.f32 %v7822_v43, %v4417_v26  ;;  %v5009_v5 = vrot.slane %v4494_v44, 4  ;;  %v4497_v62 = vmax.f32 %v4461_v2, 0.0 }
 0x518   : > { %5131 = vst [vmem:[#allocation1 + $0x21] ss:$4 sm:$0xff] %v4991_v7  ;;  %v5010_v7 = vrot.slane %v4494_v44, 6 }
 0x519   : > { %5278 = vst.msk [vmem:[%s7856_s20 + $0x44] sm:$0xf] %vm5260_vm11, %v5245_v13  ;;  %v4498_v58 = vmax.f32 %v4462_v12, 0.0  ;;  %v4419_v13 = vadd.f32 %v4418_v16, %v4262_v22 }
 0x51a   : > { %5132 = vst [vmem:[#allocation1 + $0x22] ss:$4 sm:$0xff] %v4992_v8  ;;  %v5017_v8 = vrot.slane %v4497_v62, 4 }
 0x51b   : > { %5133 = vst [vmem:[#allocation1 + $0x23] ss:$4 sm:$0xff] %v4488_v47  ;;  %v4460_v47 = vadd.f32 %v7822_v43, %v4412_v50  ;;  %v5019_v55 = vrot.slane %v4498_v58, 2  ;;  %v5021_v61 = vrot.slane %v4498_v58, 6 }
 0x51d   : > { %v5144_v10 = vld.sshfl [vmem:[#allocation1] sm:$0xff pattern:$0x73625140]  ;;  %v4496_v11 = vmax.f32 %v4460_v47, 0.0  ;;  %v4421_v35 = vpop.f32.mrf.mxu0 }
 0x51e   : > { %v5248_v32 = vpack.c.bf16 %v5144_v10, %v5144_v10  ;;  %5146 = vst [vmem:[#allocation1] ss:$4 sm:$0xff] %v4999_v48 }
 0x51f   : > { %5147 = vst [vmem:[#allocation1 + $0x1] ss:$4 sm:$0xff] %v4491_v3  ;;  %v5018_v3 = vrot.slane %v4497_v62, 6 }
 0x520   : > { %5281 = vst.msk [vmem:[%s7856_s20 + $0x50] sm:$0xf] %vm5260_vm11, %v5248_v32  ;;  %v4463_v32 = vadd.f32 %v7822_v43, %v4419_v13 }
 0x521   : > { %5148 = vst [vmem:[#allocation1 + $0x2] ss:$4 sm:$0xff] %v5000_v21  ;;  %v5014_v21 = vrot.slane %v4496_v11, 2 }
 0x522   : > { %v5135_v41 = vld.sshfl [vmem:[#allocation1 + $0x20] sm:$0xff pattern:$0x73625140]  ;;  %5149 = vst [vmem:[#allocation1 + $0x3] ss:$4 sm:$0xff] %v5001_v0  ;;  %v5015_v0 = vrot.slane %v4496_v11, 4 }
 0x523   : > { %v5247_v59 = vpack.c.bf16 %v5135_v41, %v5135_v41  ;;  %5140 = vst [vmem:[#allocation1 + $0x20] ss:$4 sm:$0xff] %v4996_v17  ;;  %v4499_v29 = vmax.f32 %v4463_v32, 0.0 }
 0x524   : > { %5141 = vst [vmem:[#allocation1 + $0x21] ss:$4 sm:$0xff] %v4997_v57  ;;  %v5016_v57 = vrot.slane %v4496_v11, 6 }
 0x525   : > { %5280 = vst.msk [vmem:[%s7856_s20 + $0x4c] sm:$0xf] %vm5260_vm11, %v5247_v59  ;;  %v5023_v59 = vrot.slane %v4499_v29, 6  ;;  %v4423_v40 = vpop.f32.mrf.mxu0 }
 0x526   : > { %5142 = vst [vmem:[#allocation1 + $0x22] ss:$4 sm:$0xff] %v4490_v31  ;;  %v4265_v31 = vpop.f32.mrf.mxu3 }
 0x527   : > { %5143 = vst [vmem:[#allocation1 + $0x23] ss:$4 sm:$0xff] %v4998_v25  ;;  %v4422_v48 = vadd.f32 %v4421_v35, %v4265_v31 }
 0x529   : > { %v5154_v30 = vld.sshfl [vmem:[#allocation1] sm:$0xff pattern:$0x73625140]  ;;  %v4464_v1 = vadd.f32 %v7822_v43, %v4422_v48 }
 0x52a   : > { %v5250_v37 = vpack.c.bf16 %v5154_v30, %v5154_v30  ;;  %5156 = vst [vmem:[#allocation1] ss:$4 sm:$0xff] %v4493_v23  ;;  %v5020_v30 = vrot.slane %v4498_v58, 4 }
 0x52b   : > { %5157 = vst [vmem:[#allocation1 + $0x1] ss:$4 sm:$0xff] %v5005_v28  ;;  %v4500_v63 = vmax.f32 %v4464_v1, 0.0 }
 0x52c   : > { %5283 = vst.msk [vmem:[%s7856_s20 + $0x58] sm:$0xf] %vm5260_vm11, %v5250_v37 }
 0x52d   : > { %5158 = vst [vmem:[#allocation1 + $0x2] ss:$4 sm:$0xff] %v5006_v49  ;;  %v5024_v25 = vrot.slane %v4500_v63, 2  ;;  %v5025_v15 = vrot.slane %v4500_v63, 4  ;;  %v5026_v20 = vrot.slane %v4500_v63, 6 }
 0x52e   : > { %v5145_v53 = vld.sshfl [vmem:[#allocation1 + $0x20] sm:$0xff pattern:$0x73625140]  ;;  %5159 = vst [vmem:[#allocation1 + $0x3] ss:$4 sm:$0xff] %v5007_v54  ;;  %v4267_v28 = vpop.f32.mrf.mxu3  ;;  %v5022_v54 = vrot.slane %v4499_v29, 2 }
 0x52f   : > { %v5249_v46 = vpack.c.bf16 %v5145_v53, %v5145_v53  ;;  %5150 = vst [vmem:[#allocation1 + $0x20] ss:$4 sm:$0xff] %v5002_v56  ;;  %v4424_v49 = vadd.f32 %v4423_v40, %v4267_v28 }
 0x530   : > { %5151 = vst [vmem:[#allocation1 + $0x21] ss:$4 sm:$0xff] %v4492_v9 }
 0x531   : > { %5282 = vst.msk [vmem:[%s7856_s20 + $0x54] sm:$0xf] %vm5260_vm11, %v5249_v46  ;;  %v4465_v33 = vadd.f32 %v7822_v43, %v4424_v49 }
 0x532   : > { %5152 = vst [vmem:[#allocation1 + $0x22] ss:$4 sm:$0xff] %v5003_v45 }
 0x533   : > { %5153 = vst [vmem:[#allocation1 + $0x23] ss:$4 sm:$0xff] %v5004_v4  ;;  %v4501_v53 = vmax.f32 %v4465_v33, 0.0 }
 0x535   : > { %v5164_v19 = vld.sshfl [vmem:[#allocation1] sm:$0xff pattern:$0x73625140]  ;;  %v5027_v45 = vrot.slane %v4501_v53, 2  ;;  %v5028_v50 = vrot.slane %v4501_v53, 4 }
 0x536   : > { %v5252_v39 = vpack.c.bf16 %v5164_v19, %v5164_v19  ;;  %5166 = vst [vmem:[#allocation1] ss:$4 sm:$0xff] %v5011_v52 }
 0x537   : > { %5167 = vst [vmem:[#allocation1 + $0x1] ss:$4 sm:$0xff] %v5012_v34 }
 0x538   : > { %5285 = vst.msk [vmem:[%s7856_s20 + $0x60] sm:$0xf] %vm5260_vm11, %v5252_v39 }
 0x539   : > { %5168 = vst [vmem:[#allocation1 + $0x2] ss:$4 sm:$0xff] %v5013_v14 }
 0x53a   : > { %v5155_v6 = vld.sshfl [vmem:[#allocation1 + $0x20] sm:$0xff pattern:$0x73625140]  ;;  %5169 = vst [vmem:[#allocation1 + $0x3] ss:$4 sm:$0xff] %v4496_v11 }
 0x53b   : > { %v5251_v60 = vpack.c.bf16 %v5155_v6, %v5155_v6  ;;  %5160 = vst [vmem:[#allocation1 + $0x20] ss:$4 sm:$0xff] %v4494_v44 }
 0x53c   : > { %5161 = vst [vmem:[#allocation1 + $0x21] ss:$4 sm:$0xff] %v5008_v51 }
 0x53d   : > { %5284 = vst.msk [vmem:[%s7856_s20 + $0x5c] sm:$0xf] %vm5260_vm11, %v5251_v60 }
 0x53e   : > { %5162 = vst [vmem:[#allocation1 + $0x22] ss:$4 sm:$0xff] %v5009_v5 }
 0x53f   : > { %5163 = vst [vmem:[#allocation1 + $0x23] ss:$4 sm:$0xff] %v5010_v7 }
 0x541   : > { %v5174_v36 = vld.sshfl [vmem:[#allocation1] sm:$0xff pattern:$0x73625140] }
 0x542   : > { %v5254_v10 = vpack.c.bf16 %v5174_v36, %v5174_v36  ;;  %5176 = vst [vmem:[#allocation1] ss:$4 sm:$0xff] %v5017_v8 }
 0x543   : > { %5177 = vst [vmem:[#allocation1 + $0x1] ss:$4 sm:$0xff] %v5018_v3 }
 0x544   : > { %5287 = vst.msk [vmem:[%s7856_s20 + $0x68] sm:$0xf] %vm5260_vm11, %v5254_v10 }
 0x545   : > { %5178 = vst [vmem:[#allocation1 + $0x2] ss:$4 sm:$0xff] %v4498_v58 }
 0x546   : > { %v5165_v17 = vld.sshfl [vmem:[#allocation1 + $0x20] sm:$0xff pattern:$0x73625140]  ;;  %5179 = vst [vmem:[#allocation1 + $0x3] ss:$4 sm:$0xff] %v5019_v55 }
 0x547   : > { %v5253_v41 = vpack.c.bf16 %v5165_v17, %v5165_v17  ;;  %5170 = vst [vmem:[#allocation1 + $0x20] ss:$4 sm:$0xff] %v5014_v21 }
 0x548   : > { %5171 = vst [vmem:[#allocation1 + $0x21] ss:$4 sm:$0xff] %v5015_v0 }
 0x549   : > { %5286 = vst.msk [vmem:[%s7856_s20 + $0x64] sm:$0xf] %vm5260_vm11, %v5253_v41 }
 0x54a   : > { %5172 = vst [vmem:[#allocation1 + $0x22] ss:$4 sm:$0xff] %v5016_v57 }
 0x54b   : > { %5173 = vst [vmem:[#allocation1 + $0x23] ss:$4 sm:$0xff] %v4497_v62 }
 0x54d   : > { %v5184_v27 = vld.sshfl [vmem:[#allocation1] sm:$0xff pattern:$0x73625140] }
 0x54e   : > { %v5256_v23 = vpack.c.bf16 %v5184_v27, %v5184_v27  ;;  %5186 = vst [vmem:[#allocation1] ss:$4 sm:$0xff] %v5023_v59 }
 0x54f   : > { %5187 = vst [vmem:[#allocation1 + $0x1] ss:$4 sm:$0xff] %v4500_v63 }
 0x550   : > { %5289 = vst.msk [vmem:[%s7856_s20 + $0x70] sm:$0xf] %vm5260_vm11, %v5256_v23 }
 0x551   : > { %5188 = vst [vmem:[#allocation1 + $0x2] ss:$4 sm:$0xff] %v5024_v25 }
 0x552   : > { %v5175_v37 = vld.sshfl [vmem:[#allocation1 + $0x20] sm:$0xff pattern:$0x73625140]  ;;  %5189 = vst [vmem:[#allocation1 + $0x3] ss:$4 sm:$0xff] %v5025_v15 }
 0x553   : > { %v5255_v9 = vpack.c.bf16 %v5175_v37, %v5175_v37  ;;  %5180 = vst [vmem:[#allocation1 + $0x20] ss:$4 sm:$0xff] %v5020_v30 }
 0x554   : > { %5181 = vst [vmem:[#allocation1 + $0x21] ss:$4 sm:$0xff] %v5021_v61 }
 0x555   : > { %5288 = vst.msk [vmem:[%s7856_s20 + $0x6c] sm:$0xf] %vm5260_vm11, %v5255_v9 }
 0x556   : > { %5182 = vst [vmem:[#allocation1 + $0x22] ss:$4 sm:$0xff] %v4499_v29 }
 0x557   : > { %5183 = vst [vmem:[#allocation1 + $0x23] ss:$4 sm:$0xff] %v5022_v54 }
 0x559   : > { %v5194_v42 = vld.sshfl [vmem:[#allocation1] sm:$0xff pattern:$0x73625140] }
 0x55a   : > { %v5258_v56 = vpack.c.bf16 %v5194_v42, %v5194_v42 }
 0x55c   : > { %5291 = vst.msk [vmem:[%s7856_s20 + $0x78] sm:$0xf] %vm5260_vm11, %v5258_v56 }
 0x55e   : > { %v5185_v46 = vld.sshfl [vmem:[#allocation1 + $0x20] sm:$0xff pattern:$0x73625140] }
 0x55f   : > { %v5257_v38 = vpack.c.bf16 %v5185_v46, %v5185_v46  ;;  %5190 = vst [vmem:[#allocation1 + $0x20] ss:$4 sm:$0xff] %v5026_v20 }
 0x560   : > { %5191 = vst [vmem:[#allocation1 + $0x21] ss:$4 sm:$0xff] %v4501_v53 }
 0x561   : > { %5290 = vst.msk [vmem:[%s7856_s20 + $0x74] sm:$0xf] %vm5260_vm11, %v5257_v38 }
 0x562   : > { %5192 = vst [vmem:[#allocation1 + $0x22] ss:$4 sm:$0xff] %v5027_v45 }
 0x563   : > { %5193 = vst [vmem:[#allocation1 + $0x23] ss:$4 sm:$0xff] %v5028_v50 }
 0x56a   : > { %v5195_v4 = vld.sshfl [vmem:[#allocation1 + $0x20] sm:$0xff pattern:$0x73625140] }
 0x56b   : > { %v5259_v43 = vpack.c.bf16 %v5195_v4, %v5195_v4 }
 0x56d   : > { %5292 = vst.msk [vmem:[%s7856_s20 + $0x7c] sm:$0xf] %vm5260_vm11, %v5259_v43 }
 0x56e PF: > { %s21_s13 = sadd.s32 1, %s6029_s13  }
 0x56f   : > { %p18_p4 = scmp.ge.s32.totalorder %s21_s13, 4  }
 0x571   :  { %20 = sbr.rel (!%p18_p4) target bundleno = 1 (0x1), region = 120 }

</bundles_post_ra>
